<compile_context>
chip_gen: v7x
topology: tpu7x:2x2x1
jax: 0.10.0
libtpu: 0.0.40
codegen_flags: <defaults>
</compile_context>

<pallas_src>
import math

import jax
import jax.numpy as jnp
from jax.experimental import pallas as pl
from jax.experimental.pallas import tpu as pltpu


def _round_up(x: int, m: int) -> int:
    return (x + m - 1) // m * m


def scaled_embedding_kernel(idx_ref, w_ref, out_ref):
    """One (TILE_L, D_pad) output tile of the embedding lookup.

    idx_ref : (TILE_L, 1)     int32   flattened lookup indices (this tile)
    w_ref   : (N_pad, D_pad)  float32 folded table (W + alpha*U@V)*scale,
                                      VMEM-resident across all grid steps
    out_ref : (TILE_L, D_pad) float32 gathered embeddings
    """
    idx = idx_ref[...]                                      # (TILE_L, 1)
    tl = idx.shape[0]
    n = w_ref.shape[0]
    # 32-bit iota + compare; each one-hot row has a single exact 1.0.
    col = jax.lax.broadcasted_iota(jnp.int32, (tl, n), 1)   # (TILE_L, N_pad)
    one_hot = (idx == col).astype(jnp.float32)              # (TILE_L, N_pad)

    # Row gather on the MXU.  HIGHEST precision keeps the gathered f32
    # table values exact (default precision would bf16-round them).
    out_ref[...] = jnp.dot(one_hot, w_ref[...],
                           preferred_element_type=jnp.float32,
                           precision=jax.lax.Precision.HIGHEST)


def scaled_embedding(x, emb_weight, lora_U, lora_V, *,
                     scale: float = 10.0, lora_alpha: float = 1.0,
                     tile_l: int = 1024):
    """JAX wrapper mirroring ScaledEmbedding.forward (inference)."""
    orig_shape = x.shape
    L = int(math.prod(orig_shape)) if orig_shape else 1
    N, D = emb_weight.shape

    # Fold LoRA + learning-rate scale into the table once, in plain XLA.
    # This is a tiny N x R x D matmul; the kernel then only gathers rows.
    w_eff = (emb_weight.astype(jnp.float32)
             + (lora_U.astype(jnp.float32) @ lora_V.astype(jnp.float32))
             * float(lora_alpha)) * float(scale)

    # Lane-dense output & full MXU contraction width.
    D_pad = _round_up(D, 128)
    N_pad = _round_up(N, 128)

    # Row tile: multiple of 128, default large (amortize per-step overhead),
    # but clamped so the grid has >= 2 steps when L allows it (megacore).
    tile_l = _round_up(max(int(tile_l), 128), 128)
    L_ceil = _round_up(max(L, 1), 128)
    half = _round_up(pl.cdiv(L_ceil, 2), 128) if L_ceil >= 256 else L_ceil
    TILE_L = min(tile_l, half)
    L_pad = _round_up(L, TILE_L)

    idx = jnp.pad(x.reshape(L).astype(jnp.int32),
                  (0, L_pad - L)).reshape(L_pad, 1)
    w_p = jnp.pad(w_eff, ((0, N_pad - N), (0, D_pad - D)))

    grid = (L_pad // TILE_L,)

    # Honest scheduler hint for the folded version: a single gather matmul.
    flops = 2 * L_pad * N_pad * D_pad
    bytes_accessed = 4 * (L_pad + N_pad * D_pad + L_pad * D_pad)

    # VMEM footprint: double-buffered idx (lane-padded to 128) + output
    # tiles, resident table, one-hot intermediate, plus headroom.
    vmem_bytes = (2 * TILE_L * 128 * 4
                  + 2 * TILE_L * D_pad * 4
                  + N_pad * D_pad * 4
                  + TILE_L * N_pad * 4
                  + (4 << 20))
    vmem_limit = int(min(max(vmem_bytes, 32 << 20), 64 << 20))

    out = pl.pallas_call(
        scaled_embedding_kernel,
        out_shape=jax.ShapeDtypeStruct((L_pad, D_pad), jnp.float32),
        grid=grid,
        in_specs=[
            pl.BlockSpec((TILE_L, 1), lambda i: (i, 0)),     # idx: tiled over L
            pl.BlockSpec((N_pad, D_pad), lambda i: (0, 0)),  # W_eff: resident
        ],
        out_specs=pl.BlockSpec((TILE_L, D_pad), lambda i: (i, 0)),
        compiler_params=pltpu.CompilerParams(
            dimension_semantics=("parallel",),
            vmem_limit_bytes=vmem_limit),
        cost_estimate=pl.CostEstimate(flops=flops, transcendentals=0,
                                      bytes_accessed=bytes_accessed),
    )(idx, w_p)

    return out[:L, :D].reshape(orig_shape + (D,))


def init_scaled_embedding_params(key, num_embeddings, embedding_dim,
                                 scale=10.0, smooth=False, lora_rank=4):
    """Deterministic parameter init matching ScaledEmbedding.__init__."""
    k_emb, k_u, k_v = jax.random.split(key, 3)
    # nn.Embedding default init: N(0, 1)
    w = jax.random.normal(k_emb, (num_embeddings, embedding_dim), jnp.float32)
    if smooth:
        w = jnp.cumsum(w, axis=0)
        denom = jnp.sqrt(jnp.arange(1, num_embeddings + 1, dtype=jnp.float32))
        w = w / denom[:, None]
    w = w / scale
    # LoRA: normal with std = 1/sqrt(embedding_dim)
    std = 1.0 / math.sqrt(embedding_dim)
    U = jax.random.normal(k_u, (num_embeddings, lora_rank), jnp.float32) * std
    V = jax.random.normal(k_v, (lora_rank, embedding_dim), jnp.float32) * std
    return w, U, V


if __name__ == "__main__":
    key = jax.random.PRNGKey(0)
    k_params, k_idx = jax.random.split(key)

    num_embeddings = 512   # e.g. frequency bins after the first encoder
    embedding_dim = 48     # demucs-like channel count (lane-padded to 128)
    lora_rank = 4
    scale = 10.0
    lora_alpha = 1.0

    emb_w, lora_U, lora_V = init_scaled_embedding_params(
        k_params, num_embeddings, embedding_dim,
        scale=scale, smooth=False, lora_rank=lora_rank)

    # Indices, e.g. frequency positions for a small batch: shape (2, 8)
    x = jax.random.randint(k_idx, (2, 8), 0, num_embeddings, dtype=jnp.int32)

    out = scaled_embedding(x, emb_w, lora_U, lora_V,
                           scale=scale, lora_alpha=lora_alpha)
    out = jax.block_until_ready(out)

    # Pure-JAX reference for correctness.
    w_eff = (emb_w + lora_U @ lora_V * lora_alpha) * scale
    ref = w_eff[x]
    assert out.shape == x.shape + (embedding_dim,)
    assert jnp.allclose(out, ref, atol=1e-5, rtol=1e-5), \
        float(jnp.max(jnp.abs(out - ref)))

    print("KERNEL_OK")
</pallas_src>

<mosaic_0001>
module attributes {stable_mosaic.version = 11 : i64} {
  func.func @scaled_embedding_kernel(%arg0: i32, %arg1: memref<128x1xi32, #tpu.memory_space<vmem>>, %arg2: memref<512x128xf32, #tpu.memory_space<vmem>>, %arg3: memref<128x128xf32, #tpu.memory_space<vmem>>) attributes {dimension_semantics = [#tpu.dimension_semantics<parallel>], iteration_bounds = array<i64: 1>, scalar_prefetch = 0 : i64, scratch_operands = 0 : i64, tpu.core_type = #tpu.core_type<tc>, window_params = [{transform_indices = @transform_0, window_bounds = array<i64: 128, 1>}, {pipeline_mode = #tpu.pipeline_mode<synchronous>, transform_indices = @transform_1, window_bounds = array<i64: 512, 128>}, {transform_indices = @transform_2, window_bounds = array<i64: 128, 128>}]} {
    %c0 = arith.constant 0 : index
    %c0_0 = arith.constant 0 : index
    %0 = vector.load %arg1[%c0, %c0_0] : memref<128x1xi32, #tpu.memory_space<vmem>>, vector<128x1xi32>
    %1 = tpu.iota {dimensions = array<i32: 1>} : vector<128x512xi32>
    %2 = vector.broadcast %0 : vector<128x1xi32> to vector<128x512xi32>
    %3 = arith.cmpi eq, %2, %1 : vector<128x512xi32>
    %4 = arith.extui %3 : vector<128x512xi1> to vector<128x512xi32>
    %5 = arith.sitofp %4 : vector<128x512xi32> to vector<128x512xf32>
    %c0_1 = arith.constant 0 : index
    %c0_2 = arith.constant 0 : index
    %6 = vector.load %arg2[%c0_1, %c0_2] : memref<512x128xf32, #tpu.memory_space<vmem>>, vector<512x128xf32>
    %cst = arith.constant dense<0.000000e+00> : vector<128x128xf32>
    %7 = tpu.matmul %5, %6, %cst {dimension_numbers = #tpu.dot_dimension_numbers<[1], [0], [0], [1], [0, 0, 1, 1], [], []>, precision = #tpu.contract_precision<fp32>} : vector<128x512xf32>, vector<512x128xf32>, vector<128x128xf32> -> vector<128x128xf32>
    %c0_3 = arith.constant 0 : index
    %c0_4 = arith.constant 0 : index
    %8 = vector.load %arg3[%c0_3, %c0_4] : memref<128x128xf32, #tpu.memory_space<vmem>>, vector<128x128xf32>
    tpu.vector_store %arg3[%c0_3, %c0_4], %7 {strides = array<i32>} : memref<128x128xf32, #tpu.memory_space<vmem>>, vector<128x128xf32>,
    return
  }
  func.func @transform_0(%arg0: i32) -> (i32, i32) {
    %c0_i32 = arith.constant 0 : i32
    %c0_i32_0 = arith.constant 0 : i32
    return %arg0, %c0_i32 : i32, i32
  }
  func.func @transform_1(%arg0: i32) -> (i32, i32) {
    %c0_i32 = arith.constant 0 : i32
    %c0_i32_0 = arith.constant 0 : i32
    %c0_i32_1 = arith.constant 0 : i32
    return %c0_i32, %c0_i32_0 : i32, i32
  }
  func.func @transform_2(%arg0: i32) -> (i32, i32) {
    %c0_i32 = arith.constant 0 : i32
    %c0_i32_0 = arith.constant 0 : i32
    return %arg0, %c0_i32 : i32, i32
  }
}

</mosaic_0001>

<bundles_post_ra>
// kernel: tpu_custom_call.1
= control target key start
LH: loop header
LB: loop body
LE: loop exit
PB: predicated region body
PF: predicated region fallthrough
CT: control target
= control target key end

     0   :  { %7 = vsyncpa [#allocation3], 0  ;;  %s8831_s0 = inlined_call_operand.vmem [shape: s32[128,1], index: 0, kind: input, shape index: {}]   ;;  %s8832_s1 = inlined_call_operand.hbm [shape: f32[512,128], index: 1, kind: input, shape index: {}]   ;;  %s8833_s2 = inlined_call_operand.hbm [shape: f32[128,128], index: 2, kind: output, shape index: {}]  }
   0x1   :  { %8 = vsyncpa [#allocation4], 0  ;;  %s5445_s9 = smov [#allocation2]   ;;  %s5397_s13 = scalar_lea.hbm %s8832_s1, 8192 }
   0x2   :  { %s16_s10 = sshll.u32 %s5445_s9, 4  ;;  %p5398_p0 = scmp.ne.s32.totalorder %s8832_s1, %s5397_s13  ;;  %s17_s10 = int_to_ptr.vmem [resolvable:$true] %s16_s10 }
   0x3   :  { %p5401_p1 = scmp.lt.u32.totalorder %s5397_s13, %s8832_s1 }
   0x5   :  { %p5403_p2 = pnand %p5401_p1, %p5398_p0 }
   0x7   :  { %5406 = shalt.err (!%p5403_p2)
}
   0x8   :  { %s5407_s18 = scalar_lea.vmem %s17_s10, 8192  ;;  %p5412_p4 = scmp.lt.s32.totalorder %s17_s10, %s17_s10 }
   0x9   :  { %p5408_p3 = scmp.ne.s32.totalorder %s17_s10, %s5407_s18  ;;  %p5413_p5 = scmp.lt.s32.totalorder %s5407_s18, %s5407_s18 }
   0xb   :  { %p5414_p6 = por %p5413_p5, %p5412_p4 }
   0xd   :  { %p5415_p7 = pnand %p5414_p6, %p5408_p3 }
   0xf   :  { %5418 = shalt.err (!%p5415_p7)
}
  0x10   :  { %s5446_s19 = smov 128   ;;  %s5447_s20 = smov 8  }
  0x11   :  { %22 = dma.hbm_to_vmem [thread:$0]  %s8832_s1, 8192, %s17_s10, [#allocation3], %s5446_s19, %s5446_s19, %s5447_s20  }
  0x12   :  { %5441 = dma.done.wait [#allocation3], 8192  }
  0x13   :  { %5442 = vsyncadd [#allocation3], 4294959104  ;;  %v5448_v0 = vmov 0   ;;  %v28_v1 = vld [vmem:[%s8831_s0 + $0x10] sm:$0xff]  ;;  %v26_v2 = vld [vmem:[%s8831_s0] sm:$0xff] }
  0x14   :  { %5396 = vset.pattern.permute.xlu1 %v5448_v0  ;;  %5395 = vset.pattern.permute.xlu0 %v5448_v0  ;;  %v29_v3 = vld [vmem:[%s8831_s0 + $0x18] sm:$0xff]  ;;  %v27_v4 = vld [vmem:[%s8831_s0 + $0x8] sm:$0xff]  ;;  %v30_v6 = vld [vmem:[%s8831_s0 + $0x20] sm:$0xff] }
  0x15   :  { %54 = vperm.xlu1 %5396, %v28_v1   ;;  %48 = vperm.xlu0 %5395, %v26_v2   ;;  %v31_v5 = vld [vmem:[%s8831_s0 + $0x28] sm:$0xff]  ;;  %v303_v7 = vld [vmem:[#allocation2 + $0x80] sm:$0xff]  ;;  %v5504_v13 = vld [vmem:[#allocation2 + $0x90] sm:$0xff] }
  0x16   :  { %v304_v8 = vld [vmem:[#allocation2 + $0x88] sm:$0xff]  ;;  %v400_v9 = vand.u32 4294901760, %v303_v7  ;;  %v5500_v11 = vld [vmem:[#allocation2] sm:$0xff]  ;;  %v5508_v16 = vld [vmem:[#allocation2 + $0x98] sm:$0xff]  ;;  %v406_v17 = vand.u32 4294901760, %v5504_v13 }
  0x17   :  { %v403_v10 = vand.u32 4294901760, %v304_v8  ;;  %v5502_v12 = vld [vmem:[#allocation2 + $0x8] sm:$0xff]  ;;  %v352_v14 = vand.u32 4294901760, %v5500_v11  ;;  %v5511_v18 = vld [vmem:[#allocation2 + $0x10] sm:$0xff]  ;;  %v5513_v19 = vld [vmem:[#allocation2 + $0x18] sm:$0xff]  ;;  %v409_v22 = vand.u32 4294901760, %v5508_v16 }
  0x18   :  { %v355_v15 = vand.u32 4294901760, %v5502_v12  ;;  %v5515_v20 = vsub.f32 %v303_v7, %v400_v9  ;;  %v358_v23 = vand.u32 4294901760, %v5511_v18  ;;  %v5534_v26 = vsub.f32 %v5504_v13, %v406_v17  ;;  %v33_v28 = vld [vmem:[%s8831_s0 + $0x38] sm:$0xff]  ;;  %v32_v29 = vld [vmem:[%s8831_s0 + $0x30] sm:$0xff]  ;;  %v35_v42 = vld [vmem:[%s8831_s0 + $0x48] sm:$0xff] }
  0x19   :  { %57 = vperm.xlu1 %5396, %v29_v3   ;;  %51 = vperm.xlu0 %5395, %v27_v4   ;;  %v5517_v21 = vsub.f32 %v304_v8, %v403_v10  ;;  %v5524_v24 = vsub.f32 %v5500_v11, %v352_v14  ;;  %v361_v27 = vand.u32 4294901760, %v5513_v19  ;;  %v5548_v32 = vsub.f32 %v5508_v16, %v409_v22  ;;  %v34_v47 = vld [vmem:[%s8831_s0 + $0x40] sm:$0xff]  ;;  %v5595_v53 = vld [vmem:[#allocation2 + $0xa8] sm:$0xff]  ;;  %v5608_v4 = vld [vmem:[#allocation2 + $0xb0] sm:$0xff] }
  0x1a   :  { %v5529_v25 = vsub.f32 %v5502_v12, %v355_v15  ;;  %v8859_v30 = vand.u32 4294901760, %v5515_v20  ;;  %v5553_v33 = vsub.f32 %v5511_v18, %v358_v23  ;;  %v8850_v36 = vand.u32 4294901760, %v5534_v26  ;;  %v5593_v52 = vld [vmem:[#allocation2 + $0xa0] sm:$0xff]  ;;  %v5602_v59 = vld [vmem:[#allocation2 + $0x28] sm:$0xff]  ;;  %v36_v7 = vld [vmem:[%s8831_s0 + $0x50] sm:$0xff] }
  0x1b   :  { %v8856_v31 = vand.u32 4294901760, %v5517_v21  ;;  %v8854_v34 = vand.u32 4294901760, %v5524_v24  ;;  %v5561_v37 = vsub.f32 %v5513_v19, %v361_v27  ;;  %v8849_v40 = vand.u32 4294901760, %v5548_v32  ;;  %v5600_v58 = vld [vmem:[#allocation2 + $0x20] sm:$0xff]  ;;  %v5658_v16 = vld [vmem:[#allocation2 + $0x38] sm:$0xff] }
  0x1c   :  { %v8851_v35 = vand.u32 4294901760, %v5529_v25  ;;  %v804_v38 = vsub.f32 %v5515_v20, %v8859_v30  ;;  %v8848_v41 = vand.u32 4294901760, %v5553_v33  ;;  %v818_v45 = vsub.f32 %v5534_v26, %v8850_v36 }
  0x1d   :  { %63 = vperm.xlu1 %5396, %v31_v5   ;;  %60 = vperm.xlu0 %5395, %v30_v6   ;;  %v811_v39 = vsub.f32 %v5517_v21, %v8856_v31  ;;  %v692_v43 = vsub.f32 %v5524_v24, %v8854_v34  ;;  %v8846_v46 = vand.u32 4294901760, %v5561_v37  ;;  %v825_v50 = vsub.f32 %v5548_v32, %v8849_v40  ;;  %v5610_v5 = vld [vmem:[#allocation2 + $0xb8] sm:$0xff]  ;;  %v300_v40 = vld [vmem:[#allocation2 + $0x68] sm:$0xff] }
  0x1e   :  { %v699_v44 = vsub.f32 %v5529_v25, %v8851_v35  ;;  %v805_v48 = vand.u32 4294901760, %v804_v38  ;;  %v706_v51 = vsub.f32 %v5553_v33, %v8848_v41  ;;  %v819_v56 = vand.u32 4294901760, %v818_v45  ;;  %v37_v6 = vld [vmem:[%s8831_s0 + $0x58] sm:$0xff]  ;;  %v39_v45 = vld [vmem:[%s8831_s0 + $0x68] sm:$0xff] }
  0x1f   :  { %v812_v49 = vand.u32 4294901760, %v811_v39  ;;  %v693_v54 = vand.u32 4294901760, %v692_v43  ;;  %v713_v57 = vsub.f32 %v5561_v37, %v8846_v46  ;;  %v826_v61 = vand.u32 4294901760, %v825_v50  ;;  %v5838_v46 = vld [vmem:[#allocation2 + $0x60] sm:$0xff] }
  0x20   :  { %v700_v55 = vand.u32 4294901760, %v699_v44  ;;  %v707_v62 = vand.u32 4294901760, %v706_v51  ;;  %v5604_v63 = vpack.c.bf16 %v403_v10, %v400_v9  ;;  %v412_v2 = vand.u32 4294901760, %v5593_v52 }
  0x21   :  { %69 = vperm.xlu1 %5396, %v33_v28   ;;  %66 = vperm.xlu0 %5395, %v32_v29   ;;  %v5036_v60 = vpack.c.bf16 %v812_v49, %v805_v48  ;;  %v714_v1 = vand.u32 4294901760, %v713_v57  ;;  %v415_v3 = vand.u32 4294901760, %v5595_v53  ;;  %v5040_v8 = vpack.c.bf16 %v826_v61, %v819_v56  ;;  %v5627_v29 = vld [vmem:[#allocation2 + $0x30] sm:$0xff] }
  0x22   :  { %v5038_v0 = vpack.c.bf16 %v700_v55, %v693_v54  ;;  %5005 = vmatprep.subr.bf16.mxu0 %v5604_v63  ;;  %v5623_v9 = vpack.c.bf16 %v355_v15, %v352_v14  ;;  %v364_v10 = vand.u32 4294901760, %v5600_v58  ;;  %v367_v28 = vand.u32 4294901760, %v5602_v59 }
  0x23   :  { %5037 = vmatprep.subr.bf16.mxu1 %v5036_v60  ;;  %v5042_v38 = vpack.c.bf16 %v714_v1, %v707_v62  ;;  %v5632_v39 = vsub.f32 %v5593_v52, %v412_v2  ;;  %v5637_v11 = vsub.f32 %v5595_v53, %v415_v3  ;;  %v5643_v12 = vpack.c.bf16 %v409_v22, %v406_v17  ;;  %v5713_v1 = vld [vmem:[#allocation2 + $0xc0] sm:$0xff] }
  0x24   :  { %9141 = vst [vmem:[#allocation8_spill] sm:$0xff] %v5623_v9  ;;  %5039 = vmatpush3.bf16.msra.mxu1 %v5038_v0  ;;  %5007 = vmatpush3.bf16.msra.mxu0 %v5623_v9  ;;  %v5649_v14 = vsub.f32 %v5600_v58, %v364_v10  ;;  %v5654_v15 = vsub.f32 %v5602_v59, %v367_v28  ;;  %v421_v13 = vand.u32 4294901760, %v5610_v5  ;;  %v370_v44 = vand.u32 4294901760, %v5627_v29 }
  0x25   :  { %75 = vperm.xlu1 %5396, %v35_v42   ;;  %72 = vperm.xlu0 %5395, %v34_v47   ;;  %9142 = vst [vmem:[#allocation9_spill] sm:$0xff] %v5643_v12  ;;  %v418_v42 = vand.u32 4294901760, %v5608_v4  ;;  %v8844_v17 = vand.u32 4294901760, %v5632_v39  ;;  %v8838_v22 = vand.u32 4294901760, %v5637_v11  ;;  %v5666_v43 = vpack.c.bf16 %v361_v27, %v358_v23  ;;  %v38_v47 = vld [vmem:[%s8831_s0 + $0x60] sm:$0xff] }
  0x26   :  { %5041 = vmatprep.subr.bf16.mxu1 %v5040_v8  ;;  %v8837_v48 = vand.u32 4294901760, %v5649_v14  ;;  %v8834_v49 = vand.u32 4294901760, %v5654_v15  ;;  %5009 = vmatprep.subr.bf16.mxu0 %v5643_v12  ;;  %v5686_v19 = vsub.f32 %v5610_v5, %v421_v13  ;;  %v373_v50 = vand.u32 4294901760, %v5658_v16 }
  0x27   :  { %9143 = vst [vmem:[#allocation10_spill] sm:$0xff] %v5666_v43  ;;  %v5681_v18 = vsub.f32 %v5608_v4, %v418_v42  ;;  %v832_v23 = vsub.f32 %v5632_v39, %v8844_v17  ;;  %v839_v27 = vsub.f32 %v5637_v11, %v8838_v22  ;;  %v5698_v51 = vsub.f32 %v5627_v29, %v370_v44  ;;  %v5785_v4 = vld [vmem:[#allocation2 + $0x58] sm:$0xff] }
  0x28   :  { %9145 = vst [vmem:[#allocation12_spill] sm:$0xff] %v5686_v19  ;;  %5043 = vmatpush3.bf16.msra.mxu1 %v5042_v38  ;;  %v720_v54 = vsub.f32 %v5649_v14, %v8837_v48  ;;  %v727_v55 = vsub.f32 %v5654_v15, %v8834_v49  ;;  %v8836_v57 = vand.u32 4294901760, %v5686_v19  ;;  %5011 = vmatpush3.bf16.msra.mxu0 %v5666_v43 }
  0x29   :  { %81 = vperm.xlu1 %5396, %v37_v6   ;;  %78 = vperm.xlu0 %5395, %v36_v7   ;;  %9144 = vst [vmem:[#allocation11_spill] sm:$0xff] %v5681_v18  ;;  %v8835_v56 = vand.u32 4294901760, %v5681_v18  ;;  %v833_v60 = vand.u32 4294901760, %v832_v23  ;;  %v840_v61 = vand.u32 4294901760, %v839_v27  ;;  %v8839_v62 = vand.u32 4294901760, %v5698_v51  ;;  %v41_v6 = vld [vmem:[%s8831_s0 + $0x78] sm:$0xff] }
  0x2a   :  { %v5711_v0 = vsub.f32 %v5658_v16, %v373_v50  ;;  %v40_v7 = vld [vmem:[%s8831_s0 + $0x70] sm:$0xff]  ;;  %v721_v8 = vand.u32 4294901760, %v720_v54  ;;  %v728_v38 = vand.u32 4294901760, %v727_v55  ;;  %v853_v16 = vsub.f32 %v5686_v19, %v8836_v57  ;;  %v5739_v55 = vld [vmem:[#allocation2 + $0x40] sm:$0xff]  ;;  %s5451_s0 = smov [#allocation5]  }
  0x2b   :  { %v5044_v23 = vpack.c.bf16 %v840_v61, %v833_v60  ;;  %v734_v27 = vsub.f32 %v5698_v51, %v8839_v62  ;;  %v5737_v54 = vpack.c.bf16 %v415_v3, %v412_v2  ;;  %v424_v60 = vand.u32 4294901760, %v5713_v1  ;;  %v5744_v61 = vld [vmem:[#allocation2 + $0xd0] sm:$0xff]  ;;  %v5756_v3 = vld [vmem:[#allocation2 + $0xd8] sm:$0xff]  ;;  %s3776_s28 = sshll.u32 %s5451_s0, 4  ;;  %s3777_s28 = int_to_ptr.vmem [resolvable:$true] %s3776_s28 }
  0x2c   :  { %v8843_v49 = vand.u32 4294901760, %v5711_v0  ;;  %v5046_v57 = vpack.c.bf16 %v728_v38, %v721_v8  ;;  %v854_v22 = vand.u32 4294901760, %v853_v16  ;;  %v5754_v2 = vpack.c.bf16 %v367_v28, %v364_v10  ;;  %s5419_s1 = scalar_lea.vmem %s3777_s28, 2048  ;;  %p5424_p9 = scmp.lt.s32.totalorder %s3777_s28, %s3777_s28 }
  0x2d   :  { %87 = vperm.xlu1 %5396, %v39_v45   ;;  %84 = vperm.xlu0 %5395, %v38_v47   ;;  %v846_v45 = vsub.f32 %v5681_v18, %v8835_v56  ;;  %v5727_v47 = vld [vmem:[#allocation2 + $0xc8] sm:$0xff]  ;;  %9146 = vst [vmem:[#allocation13_spill] sm:$0xff] %v5737_v54  ;;  %v735_v62 = vand.u32 4294901760, %v734_v27  ;;  %v5772_v59 = vpack.c.bf16 %v421_v13, %v418_v42  ;;  %v430_v10 = vand.u32 4294901760, %v5744_v61  ;;  %p5420_p8 = scmp.ne.s32.totalorder %s3777_s28, %s5419_s1  ;;  %p5425_p10 = scmp.lt.s32.totalorder %s5419_s1, %s5419_s1 }
  0x2e   :  { %v5741_v56 = vld [vmem:[#allocation2 + $0x48] sm:$0xff]  ;;  %v741_v52 = vsub.f32 %v5711_v0, %v8843_v49  ;;  %v427_v53 = vand.u32 4294901760, %v5727_v47  ;;  %5045 = vmatprep.subr.bf16.mxu1 %v5044_v23  ;;  %5013 = vmatprep.subr.bf16.mxu0 %v5737_v54 }
  0x2f   :  { %v847_v48 = vand.u32 4294901760, %v846_v45  ;;  %v379_v38 = vand.u32 4294901760, %v5741_v56  ;;  %5047 = vmatpush3.bf16.msra.mxu1 %v5046_v57  ;;  %5015 = vmatpush3.bf16.msra.mxu0 %v5754_v2  ;;  %9147 = vst [vmem:[#allocation14_spill] sm:$0xff] %v5772_v59  ;;  %v433_v57 = vand.u32 4294901760, %v5756_v3  ;;  %v5792_v13 = vsub.f32 %v5744_v61, %v430_v10  ;;  %p5426_p11 = por %p5425_p10, %p5424_p9 }
  0x30   :  { %v742_v45 = vand.u32 4294901760, %v741_v52  ;;  %v5765_v58 = vsub.f32 %v5727_v47, %v427_v53  ;;  %5017 = vmatprep.subr.bf16.mxu0 %v5772_v59 }
  0x31   :  { %93 = vperm.xlu1 %5396, %v41_v6   ;;  %90 = vperm.xlu0 %5395, %v40_v7   ;;  %v5048_v8 = vpack.c.bf16 %v854_v22, %v847_v48  ;;  %v5760_v6 = vsub.f32 %v5713_v1, %v424_v60  ;;  %v376_v7 = vand.u32 4294901760, %v5739_v55  ;;  %v5780_v48 = vsub.f32 %v5741_v56, %v379_v38  ;;  %v5783_v1 = vld [vmem:[#allocation2 + $0x50] sm:$0xff]  ;;  %p5427_p12 = pnand %p5426_p11, %p5420_p8 }
  0x32   :  { %v5050_v5 = vpack.c.bf16 %v742_v45, %v735_v62  ;;  %v8840_v42 = vand.u32 4294901760, %v5765_v58  ;;  %v5796_v56 = vpack.c.bf16 %v373_v50, %v370_v44  ;;  %v5804_v23 = vsub.f32 %v5756_v3, %v433_v57 }
  0x33   :  { %5049 = vmatprep.subr.bf16.mxu1 %v5048_v8  ;;  %v8841_v28 = vand.u32 4294901760, %v5760_v6  ;;  %v5777_v22 = vsub.f32 %v5739_v55, %v376_v7  ;;  %v8845_v62 = vand.u32 4294901760, %v5780_v48  ;;  %v8847_v29 = vand.u32 4294901760, %v5792_v13 }
  0x34   :  { %9148 = vst [vmem:[#allocation15_spill] sm:$0xff] %v5796_v56  ;;  %5051 = vmatpush3.bf16.msra.mxu1 %v5050_v5  ;;  %v867_v27 = vsub.f32 %v5765_v58, %v8840_v42  ;;  %5019 = vmatpush3.bf16.msra.mxu0 %v5796_v56  ;;  %v382_v44 = vand.u32 4294901760, %v5783_v1  ;;  %v385_v50 = vand.u32 4294901760, %v5785_v4  ;;  %v8852_v8 = vand.u32 4294901760, %v5804_v23 }
  0x35   :  { %v860_v16 = vsub.f32 %v5760_v6, %v8841_v28  ;;  %v8842_v47 = vand.u32 4294901760, %v5777_v22  ;;  %v755_v3 = vsub.f32 %v5780_v48, %v8845_v62  ;;  %v874_v5 = vsub.f32 %v5792_v13, %v8847_v29  ;;  %v5829_v28 = vld [vmem:[#allocation2 + $0xe0] sm:$0xff] }
  0x36   :  { %v868_v45 = vand.u32 4294901760, %v867_v27  ;;  %v5824_v42 = vsub.f32 %v5783_v1, %v382_v44  ;;  %v881_v27 = vsub.f32 %v5804_v23, %v8852_v8  ;;  %v5836_v62 = vpack.c.bf16 %v427_v53, %v424_v60  ;;  %v318_v8 = vld [vmem:[#allocation2 + $0xf8] sm:$0xff] }
  0x37   :  { %v861_v55 = vand.u32 4294901760, %v860_v16  ;;  %v748_v52 = vsub.f32 %v5777_v22, %v8842_v47  ;;  %v5827_v16 = vsub.f32 %v5785_v4, %v385_v50  ;;  %v5831_v47 = vld [vmem:[#allocation2 + $0xe8] sm:$0xff]  ;;  %v756_v17 = vand.u32 4294901760, %v755_v3 }
  0x38   :  { %9149 = vst [vmem:[#allocation16_spill] sm:$0xff] %v5836_v62  ;;  %v875_v1 = vand.u32 4294901760, %v874_v5  ;;  %v8853_v41 = vand.u32 4294901760, %v5824_v42  ;;  %v882_v35 = vand.u32 4294901760, %v881_v27  ;;  %5021 = vmatprep.subr.bf16.mxu0 %v5836_v62  ;;  %v439_v3 = vand.u32 4294901760, %v5831_v47 }
  0x39   :  { %v749_v49 = vand.u32 4294901760, %v748_v52  ;;  %v5052_v29 = vpack.c.bf16 %v868_v45, %v861_v55  ;;  %v8855_v4 = vand.u32 4294901760, %v5827_v16  ;;  %v436_v52 = vand.u32 4294901760, %v5829_v28 }
  0x3a   :  { %v762_v60 = vsub.f32 %v5824_v42, %v8853_v41  ;;  %v5851_v55 = vpack.c.bf16 %v379_v38, %v376_v7  ;;  %v5056_v45 = vpack.c.bf16 %v882_v35, %v875_v1  ;;  %v391_v27 = vand.u32 4294901760, %v300_v40  ;;  %v301_v1 = vld [vmem:[#allocation2 + $0x70] sm:$0xff] }
  0x3b   :  { %v5054_v36 = vpack.c.bf16 %v756_v17, %v749_v49  ;;  %5053 = vmatprep.subr.bf16.mxu1 %v5052_v29  ;;  %v769_v53 = vsub.f32 %v5827_v16, %v8855_v4  ;;  %v388_v17 = vand.u32 4294901760, %v5838_v46  ;;  %v317_v49 = vld [vmem:[#allocation2 + $0xf0] sm:$0xff]  ;;  %v5855_v5 = vsub.f32 %v5829_v28, %v436_v52 }
  0x3c   :  { %9150 = vst [vmem:[#allocation17_spill] sm:$0xff] %v5851_v55  ;;  %v5858_v29 = vsub.f32 %v5831_v47, %v439_v3  ;;  %v763_v41 = vand.u32 4294901760, %v762_v60  ;;  %5023 = vmatpush3.bf16.msra.mxu0 %v5851_v55  ;;  %v5866_v38 = vpack.c.bf16 %v433_v57, %v430_v10  ;;  %v5870_v28 = vsub.f32 %v300_v40, %v391_v27  ;;  %v302_v60 = vld [vmem:[#allocation2 + $0x78] sm:$0xff] }
  0x3d   :  { %5055 = vmatpush3.bf16.msra.mxu1 %v5054_v36  ;;  %v770_v34 = vand.u32 4294901760, %v769_v53  ;;  %v5862_v7 = vsub.f32 %v5838_v46, %v388_v17  ;;  %v8857_v35 = vand.u32 4294901760, %v5855_v5  ;;  %v442_v47 = vand.u32 4294901760, %v317_v49 }
  0x3e   :  { %9151 = vst [vmem:[#allocation18_spill] sm:$0xff] %v5866_v38  ;;  %5057 = vmatprep.subr.bf16.mxu1 %v5056_v45  ;;  %v8858_v36 = vand.u32 4294901760, %v5858_v29  ;;  %5025 = vmatprep.subr.bf16.mxu0 %v5866_v38  ;;  %v445_v46 = vand.u32 4294901760, %v318_v8  ;;  %v5874_v31 = vpack.c.bf16 %v385_v50, %v382_v44  ;;  %v8865_v10 = vand.u32 4294901760, %v5870_v28 }
  0x3f   :  { %v5058_v53 = vpack.c.bf16 %v770_v34, %v763_v41  ;;  %v8862_v4 = vand.u32 4294901760, %v5862_v7  ;;  %v888_v61 = vsub.f32 %v5855_v5, %v8857_v35  ;;  %v5883_v57 = vsub.f32 %v317_v49, %v442_v47 }
  0x40   :  { %9152 = vst [vmem:[#allocation19_spill] sm:$0xff] %v5874_v31  ;;  %v895_v40 = vsub.f32 %v5858_v29, %v8858_v36  ;;  %v5888_v41 = vsub.f32 %v318_v8, %v445_v46  ;;  %5027 = vmatpush3.bf16.msra.mxu0 %v5874_v31  ;;  %v394_v44 = vand.u32 4294901760, %v301_v1  ;;  %v397_v50 = vand.u32 4294901760, %v302_v60 }
  0x41   :  { %5059 = vmatpush3.bf16.msra.mxu1 %v5058_v53  ;;  %v776_v34 = vsub.f32 %v5862_v7, %v8862_v4  ;;  %v889_v45 = vand.u32 4294901760, %v888_v61  ;;  %v783_v36 = vsub.f32 %v5870_v28, %v8865_v10  ;;  %v8871_v49 = vand.u32 4294901760, %v5883_v57 }
  0x42   :  { %9153 = vst [vmem:[#allocation20_spill] sm:$0xff] %v5888_v41  ;;  %v896_v35 = vand.u32 4294901760, %v895_v40  ;;  %v8868_v53 = vand.u32 4294901760, %v5888_v41  ;;  %v5896_v38 = vsub.f32 %v301_v1, %v394_v44  ;;  %v5898_v4 = vsub.f32 %v302_v60, %v397_v50 }
  0x43   :  { %v777_v30 = vand.u32 4294901760, %v776_v34  ;;  %v784_v55 = vand.u32 4294901760, %v783_v36  ;;  %v902_v61 = vsub.f32 %v5883_v57, %v8871_v49  ;;  %v5903_v40 = vpack.c.bf16 %v439_v3, %v436_v52 }
  0x44   :  { %v5060_v8 = vpack.c.bf16 %v896_v35, %v889_v45  ;;  %v909_v10 = vsub.f32 %v5888_v41, %v8868_v53  ;;  %v8870_v34 = vand.u32 4294901760, %v5896_v38  ;;  %v8869_v31 = vand.u32 4294901760, %v5898_v4 }
  0x45   :  { %9154 = vst [vmem:[#allocation21_spill] sm:$0xff] %v5903_v40  ;;  %v5910_v1 = vpack.c.bf16 %v391_v27, %v388_v17  ;;  %v5062_v60 = vpack.c.bf16 %v784_v55, %v777_v30  ;;  %v903_v35 = vand.u32 4294901760, %v902_v61  ;;  %5029 = vmatprep.subr.bf16.mxu0 %v5903_v40  ;;  %v5913_v36 = vpack.c.bf16 %v445_v46, %v442_v47 }
  0x46   :  { %5061 = vmatprep.subr.bf16.mxu1 %v5060_v8  ;;  %v5915_v45 = vpack.c.bf16 %v397_v50, %v394_v44  ;;  %v910_v52 = vand.u32 4294901760, %v909_v10  ;;  %v790_v3 = vsub.f32 %v5896_v38, %v8870_v34  ;;  %v797_v53 = vsub.f32 %v5898_v4, %v8869_v31 }
  0x47   :  { %9155 = vst [vmem:[#allocation22_spill] sm:$0xff] %v5913_v36  ;;  %5031 = vmatpush3.bf16.msra.mxu0 %v5910_v1  ;;  %v5068_v30 = vpack.c.bf16 %v5517_v21, %v5515_v20  ;;  %5063 = vmatpush3.bf16.msra.mxu1 %v5062_v60  ;;  %v9157_v34 = vand.u32 4294901760, %v5517_v21  ;;  %v8887_v21 = vmov 0.0  }
  0x48   :  { %5033 = vmatprep.subr.bf16.mxu0 %v5913_v36  ;;  %v5064_v47 = vpack.c.bf16 %v910_v52, %v903_v35  ;;  %v791_v46 = vand.u32 4294901760, %v790_v3  ;;  %v798_v10 = vand.u32 4294901760, %v797_v53  ;;  %v9159_v3 = vand.u32 4294901760, %v5529_v25 }
  0x49   :  { %v42_v35 = vlaneseq }
  0x4a   :  { %5065 = vmatprep.subr.bf16.mxu1 %v5064_v47  ;;  %v5066_v31 = vpack.c.bf16 %v798_v10, %v791_v46 }
  0x4b   :  { %5035 = vmatpush3.bf16.msra.mxu0 %v5915_v45  ;;  %v5971_v47 = vand.u32 127, %v42_v35 }
  0x4c   :  { %5069 = vmatprep.subr.bf16.mxu0 %v5068_v30  ;;  %5067 = vmatpush3.bf16.msra.mxu1 %v5066_v31  ;;  %v9156_v30 = vand.u32 4294901760, %v5515_v20  ;;  %v9158_v31 = vand.u32 4294901760, %v5524_v24  ;;  %v8877_v20 = vmov 1.0  }
  0x4d   :  { %5101 = vmatprep.subr.bf16.mxu1 %v5604_v63  ;;  %9161 = vst [vmem:[#allocation24_spill] sm:$0xff] %v5971_v47  ;;  %v5974_v46 = vadd.s32 128, %v5971_v47 }
  0x4e   :  { %v5963_v49 = vpack.c.bf16 %v9157_v34, %v9156_v30  ;;  %v5969_v52 = vpack.c.bf16 %v9159_v3, %v9158_v31 }
  0x4f   :  { %9162 = vst [vmem:[#allocation25_spill] sm:$0xff] %v5974_v46 }
  0x50   :  { %9160 = vst [vmem:[#allocation23_spill] sm:$0xff] %v5969_v52 }
  0x94   :  { %v5976_v53 = vpop.permute.xlu1 %54  ;;  %v5978_v10 = vpop.permute.xlu0 %48 }
  0x95   :  { %9163 = vst [vmem:[#allocation26_spill] sm:$0xff] %v5976_v53  ;;  %9164 = vst [vmem:[#allocation27_spill] sm:$0xff] %v5978_v10  ;;  %vm96_vm0 = vcmp.eq.s32.totalorder %v5978_v10, %v5974_v46  ;;  %vm95_vm1 = vcmp.eq.s32.totalorder %v5978_v10, %v5971_v47  ;;  %vm104_vm2 = vcmp.eq.s32.totalorder %v5976_v53, %v5974_v46 }
  0x96   :  { %3852 = vmatprep.mubr.msk.f32.mxu1 %vm96_vm0, %v8877_v20  ;;  %v3788_v34 = vsel %vm95_vm1, 1.0, %v8887_v21  ;;  %v3797_v35 = vsel %vm104_vm2, 1.0, %v8887_v21  ;;  %v3789_v3 = vsel %vm96_vm0, 1.0, %v8887_v21  ;;  %vm103_vm3 = vcmp.eq.s32.totalorder %v5976_v53, %v5971_v47 }
  0x97   :  { %v6002_v30 = vsub.f32 %v3788_v34, %v3788_v34  ;;  %3853 = vmatmul.mubr.msk.f32.vlgmr.msra.gmra.mrb[0].mxu1 %vm95_vm1, %v8877_v20  ;;  %v6008_v31 = vsub.f32 %v3789_v3, %v3789_v3  ;;  %v6014_v8 = vsub.f32 %v3797_v35, %v3797_v35  ;;  %v3796_v3 = vsel %vm103_vm3, 1.0, %v8887_v21 }
  0x98   :  { %v6010_v60 = vpop.permute.xlu1 %57  ;;  %v6012_v61 = vpop.permute.xlu0 %51  ;;  %5103 = vmatpush3.bf16.msra.mxu1 %v5623_v9  ;;  %v6041_v44 = vsub.f32 %v3796_v3, %v3796_v3 }
  0x99   :  { %9165 = vst [vmem:[#allocation28_spill] sm:$0xff] %v6002_v30  ;;  %9166 = vst [vmem:[#allocation29_spill] sm:$0xff] %v6008_v31  ;;  %vm100_vm4 = vcmp.eq.s32.totalorder %v6012_v61, %v5974_v46  ;;  %vm99_vm5 = vcmp.eq.s32.totalorder %v6012_v61, %v5971_v47  ;;  %v8874_v34 = vand.u32 4294901760, %v6008_v31  ;;  %5105 = vmatprep.subr.bf16.mxu1 %v5643_v12  ;;  %v8880_v27 = vand.u32 4294901760, %v6002_v30 }
  0x9a   :  { %9167 = vst [vmem:[#allocation30_spill] sm:$0xff] %v6010_v60  ;;  %9168 = vst [vmem:[#allocation31_spill] sm:$0xff] %v6012_v61  ;;  %v3793_v35 = vsel %vm100_vm4, 1.0, %v8887_v21  ;;  %3854 = vmatprep.mubr.msk.f32.mxu1 %vm100_vm4, %v8877_v20  ;;  %v3792_v50 = vsel %vm99_vm5, 1.0, %v8887_v21  ;;  %vm108_vm6 = vcmp.eq.s32.totalorder %v6010_v60, %v5974_v46  ;;  %vm107_vm7 = vcmp.eq.s32.totalorder %v6010_v60, %v5971_v47 }
  0x9b   :  { %9169 = vst [vmem:[#allocation32_spill] sm:$0xff] %v6014_v8  ;;  %v6044_v17 = vsub.f32 %v3793_v35, %v3793_v35  ;;  %v6046_v55 = vsub.f32 %v3792_v50, %v3792_v50  ;;  %3855 = vmatmul.mubr.msk.f32.gmra.mrb[2].mxu1 %vm99_vm5, %v8877_v20  ;;  %v450_v10 = vsub.f32 %v6008_v31, %v8874_v34  ;;  %v3801_v35 = vsel %vm108_vm6, 1.0, %v8887_v21 }
  0x9c   :  { %v6057_v3 = vpop.permute.xlu0 %60  ;;  %3856 = vmatprep.mubr.msk.f32.mxu1 %vm104_vm2, %v8877_v20  ;;  %v456_v50 = vsub.f32 %v6002_v30, %v8880_v27  ;;  %5107 = vmatpush3.bf16.msra.mxu1 %v5666_v43  ;;  %v6074_v61 = vpop.permute.xlu1 %63  ;;  %v6076_v20 = vsub.f32 %v3801_v35, %v3801_v35  ;;  %v3800_v27 = vsel %vm107_vm7, 1.0, %v8887_v21  ;;  %v9179_v43 = vpack.c.bf16 %v5529_v25, %v5524_v24 }
  0x9d   :  { %9170 = vst [vmem:[#allocation33_spill] sm:$0xff] %v6044_v17  ;;  %9171 = vst [vmem:[#allocation34_spill] sm:$0xff] %v6046_v55  ;;  %v451_v52 = vand.u32 4294901760, %v450_v10  ;;  %v8884_v12 = vand.u32 4294901760, %v6044_v17  ;;  %5109 = vmatprep.subr.bf16.mxu1 %v5737_v54  ;;  %v6084_v30 = vsub.f32 %v3800_v27, %v3800_v27  ;;  %vm112_vm8 = vcmp.eq.s32.totalorder %v6057_v3, %v5974_v46 }
  0x9e   :  { %9172 = vst [vmem:[#allocation35_spill] sm:$0xff] %v6057_v3  ;;  %9173 = vst [vmem:[#allocation36_spill] sm:$0xff] %v6074_v61  ;;  %v457_v9 = vand.u32 4294901760, %v456_v50  ;;  %v9174_v10 = vmov 1.0   ;;  %v3805_v27 = vsel %vm112_vm8, 1.0, %v8887_v21  ;;  %v9175_v50 = vand.u32 4294901760, %v6014_v8 }
  0x9f   :  { %452 = vmatprep.mubr.f32.mxu0 %v451_v52  ;;  %3857 = vmatmul.mubr.msk.f32.gmra.mrb[4].mxu1 %vm103_vm3, %v9174_v10  ;;  %v465_v35 = vsub.f32 %v6044_v17, %v8884_v12  ;;  %vm8913_vm9 = vcmp.eq.s32.totalorder %v6057_v3, %v5971_v47  ;;  %v9177_v12 = vand.u32 4294901760, %v6046_v55  ;;  %v6114_v21 = vsub.f32 %v3805_v27, %v3805_v27 }
  0xa0   :  { %v480_v34 = vsub.f32 %v6014_v8, %v9175_v50  ;;  %458 = vmatmul.mubr.f32.vlgmr.msra.gmra.mrb[0].mxu0 %v457_v9  ;;  %3858 = vmatprep.mubr.msk.f32.mxu1 %vm108_vm6, %v9174_v10  ;;  %v6109_v52 = vpop.permute.xlu0 %66  ;;  %v9178_v54 = vmov 0.0   ;;  %v8900_v9 = vand.u32 4294901760, %v6041_v44  ;;  %vm8908_vm10 = vcmp.eq.s32.totalorder %v6074_v61, %v5974_v46 }
  0xa1   :  { %9176 = vst [vmem:[#allocation37_spill] sm:$0xff] %v6109_v52  ;;  %v471_v53 = vsub.f32 %v6046_v55, %v9177_v12  ;;  %v3804_v50 = vsel %vm8913_vm9, 1.0, %v9178_v54  ;;  %5071 = vmatpush3.bf16.msra.mxu0 %v9179_v43  ;;  %v466_v8 = vand.u32 4294901760, %v465_v35  ;;  %5111 = vmatpush3.bf16.msra.mxu1 %v5754_v2  ;;  %v9181_v27 = vpack.c.bf16 %v5548_v32, %v5534_v26  ;;  %v6141_v43 = vpop.permute.xlu1 %69 }
  0xa2   :  { %v481_v17 = vand.u32 4294901760, %v480_v34  ;;  %v6124_v31 = vsub.f32 %v3804_v50, %v3804_v50  ;;  %v486_v55 = vsub.f32 %v6041_v44, %v8900_v9  ;;  %v3809_v24 = vsel %vm8908_vm10, 1.0, %v9178_v54  ;;  %5113 = vmatprep.subr.bf16.mxu1 %v5772_v59  ;;  %9182 = vst [vmem:[#allocation39_spill] sm:$0xff] %v6141_v43 }
  0xa3   :  { %v472_v12 = vand.u32 4294901760, %v471_v53  ;;  %5073 = vmatprep.subr.bf16.mxu0 %v9181_v27  ;;  %v8899_v25 = vand.u32 4294901760, %v6076_v20  ;;  %467 = vmatprep.mubr.f32.mxu0 %v466_v8  ;;  %vm8914_vm11 = vcmp.eq.s32.totalorder %v6074_v61, %v5971_v47  ;;  %v8905_v53 = vand.u32 4294901760, %v6084_v30 }
  0xa4   :  { %9180 = vst [vmem:[#allocation38_spill] sm:$0xff] %v6124_v31  ;;  %3859 = vmatmul.mubr.msk.f32.gmra.mrb[6].mxu1 %vm107_vm7, %v9174_v10  ;;  %vm8921_vm12 = vcmp.eq.s32.totalorder %v6109_v52, %v5974_v46  ;;  %v6156_v8 = vsub.f32 %v3809_v24, %v3809_v24  ;;  %v3808_v35 = vsel %vm8914_vm11, 1.0, %v9178_v54  ;;  %v9184_v27 = vpack.c.bf16 %v5561_v37, %v5553_v33  ;;  %v6178_v60 = vpop.permute.xlu0 %72 }
  0xa5   :  { %473 = vmatmul.mubr.f32.gmra.mrb[2].mxu0 %v472_v12  ;;  %3860 = vmatprep.mubr.msk.f32.mxu1 %vm112_vm8, %v9174_v10  ;;  %v495_v34 = vsub.f32 %v6076_v20, %v8899_v25  ;;  %v3813_v50 = vsel %vm8921_vm12, 1.0, %v9178_v54  ;;  %v487_v12 = vand.u32 4294901760, %v486_v55  ;;  %v6172_v24 = vsub.f32 %v3808_v35, %v3808_v35  ;;  %9185 = vst [vmem:[#allocation41_spill] sm:$0xff] %v6178_v60 }
  0xa6   :  { %9183 = vst [vmem:[#allocation40_spill] sm:$0xff] %v6156_v8  ;;  %482 = vmatprep.mubr.f32.mxu0 %v481_v17  ;;  %5075 = vmatpush3.bf16.msra.mxu0 %v9184_v27  ;;  %v501_v25 = vsub.f32 %v6084_v30, %v8905_v53  ;;  %v8904_v9 = vand.u32 4294901760, %v6114_v21  ;;  %v6180_v59 = vsub.f32 %v3813_v50, %v3813_v50  ;;  %v6212_v53 = vpop.permute.xlu1 %75 }
  0xa7   :  { %vm8922_vm13 = vcmp.eq.s32.totalorder %v6109_v52, %v5971_v47  ;;  %v9187_v55 = vpack.c.bf16 %v5637_v11, %v5632_v39  ;;  %vm8928_vm14 = vcmp.eq.s32.totalorder %v6141_v43, %v5974_v46  ;;  %5115 = vmatpush3.bf16.msra.mxu1 %v5796_v56  ;;  %v496_v35 = vand.u32 4294901760, %v495_v34  ;;  %9188 = vst [vmem:[#allocation43_spill] sm:$0xff] %v6212_v53  ;;  %v9193_v56 = vld [vmem:[#allocation17_spill] sm:$0xff] }
  0xa8   :  { %9186 = vst [vmem:[#allocation42_spill] sm:$0xff] %v6180_v59  ;;  %3861 = vmatmul.mubr.msk.f32.gmra.mrb[8].mxu1 %vm8913_vm9, %v9174_v10  ;;  %v510_v50 = vsub.f32 %v6114_v21, %v8904_v9  ;;  %v3812_v27 = vsel %vm8922_vm13, 1.0, %v9178_v54  ;;  %5117 = vmatprep.subr.bf16.mxu1 %v5836_v62  ;;  %v502_v34 = vand.u32 4294901760, %v501_v25  ;;  %v9189_v3 = vpack.c.bf16 %v5654_v15, %v5649_v14 }
  0xa9   :  { %5077 = vmatprep.subr.bf16.mxu0 %v9187_v55  ;;  %v3817_v55 = vsel %vm8928_vm14, 1.0, %v9178_v54  ;;  %488 = vmatmul.mubr.f32.gmra.mrb[4].mxu0 %v487_v12  ;;  %v6214_v17 = vsub.f32 %v3812_v27, %v3812_v27  ;;  %vm8929_vm15 = vcmp.eq.s32.totalorder %v6141_v43, %v5971_v47  ;;  %v9190_v25 = vand.u32 4294901760, %v6124_v31 }
  0xaa   :  { %3862 = vmatprep.mubr.msk.f32.mxu1 %vm8908_vm10, %v9174_v10  ;;  %497 = vmatprep.mubr.f32.mxu0 %v496_v35  ;;  %vm8934_vm10 = vcmp.eq.s32.totalorder %v6178_v60, %v5974_v46  ;;  %v6227_v62 = vsub.f32 %v3817_v55, %v3817_v55  ;;  %v9191_v35 = vand.u32 4294901760, %v6156_v8  ;;  %v9192_v12 = vpack.c.bf16 %v5686_v19, %v5681_v18 }
  0xab   :  { %5079 = vmatpush3.bf16.msra.mxu0 %v9189_v3  ;;  %v516_v9 = vsub.f32 %v6124_v31, %v9190_v25  ;;  %v3816_v3 = vsel %vm8929_vm15, 1.0, %v9178_v54  ;;  %5119 = vmatpush3.bf16.msra.mxu1 %v9193_v56  ;;  %v511_v55 = vand.u32 4294901760, %v510_v50  ;;  %v3821_v25 = vsel %vm8934_vm10, 1.0, %v9178_v54  ;;  %v6258_v50 = vpop.permute.xlu0 %78 }
  0xac   :  { %v525_v27 = vsub.f32 %v6156_v8, %v9191_v35  ;;  %5081 = vmatprep.subr.bf16.mxu0 %v9192_v12  ;;  %3863 = vmatmul.mubr.msk.f32.gmra.mrb[10].mxu1 %vm8914_vm11, %v9174_v10  ;;  %v9194_v8 = vld [vmem:[#allocation18_spill] sm:$0xff]  ;;  %vm8935_vm9 = vcmp.eq.s32.totalorder %v6178_v60, %v5971_v47  ;;  %vm8941_vm11 = vcmp.eq.s32.totalorder %v6212_v53, %v5974_v46  ;;  %v9196_v35 = vand.u32 4294901760, %v6172_v24 }
  0xad   :  { %5121 = vmatprep.subr.bf16.mxu1 %v9194_v8  ;;  %503 = vmatmul.mubr.f32.gmra.mrb[6].mxu0 %v502_v34  ;;  %9195 = vst [vmem:[#allocation44_spill] sm:$0xff] %v6258_v50  ;;  %v6260_v12 = vsub.f32 %v3816_v3, %v3816_v3  ;;  %v8930_v61 = vand.u32 4294901760, %v6214_v17  ;;  %v9197_v8 = vpack.c.bf16 %v5711_v0, %v5698_v51  ;;  %v517_v56 = vand.u32 4294901760, %v516_v9 }
  0xae   :  { %3864 = vmatprep.mubr.msk.f32.mxu1 %vm8921_vm12, %v9174_v10  ;;  %512 = vmatprep.mubr.f32.mxu0 %v511_v55  ;;  %v531_v34 = vsub.f32 %v6172_v24, %v9196_v35  ;;  %v526_v31 = vand.u32 4294901760, %v525_v27  ;;  %v6269_v19 = vsub.f32 %v3821_v25, %v3821_v25  ;;  %v9198_v3 = vpack.c.bf16 %v5765_v58, %v5760_v6  ;;  %v9199_v55 = vld [vmem:[#allocation19_spill] sm:$0xff]  ;;  %v6300_v25 = vpop.permute.xlu1 %81 }
  0xaf   :  { %5083 = vmatpush3.bf16.msra.mxu0 %v9197_v8  ;;  %5123 = vmatpush3.bf16.msra.mxu1 %v9199_v55  ;;  %v9200_v35 = vand.u32 4294901760, %v6180_v59  ;;  %v3820_v8 = vsel %vm8935_vm9, 1.0, %v9178_v54  ;;  %v3825_v27 = vsel %vm8941_vm11, 1.0, %v9178_v54  ;;  %vm8940_vm12 = vcmp.eq.s32.totalorder %v6212_v53, %v5971_v47  ;;  %9201 = vst [vmem:[#allocation45_spill] sm:$0xff] %v6300_v25 }
  0xb0   :  { %5085 = vmatprep.subr.bf16.mxu0 %v9198_v3  ;;  %3865 = vmatmul.mubr.msk.f32.gmra.mrb[12].mxu1 %vm8922_vm13, %v9174_v10  ;;  %vm8950_vm13 = vcmp.eq.s32.totalorder %v6258_v50, %v5974_v46  ;;  %v532_v3 = vand.u32 4294901760, %v531_v34  ;;  %v8936_v18 = vand.u32 4294901760, %v6260_v12  ;;  %v6309_v52 = vsub.f32 %v3820_v8, %v3820_v8 }
  0xb1   :  { %v540_v9 = vsub.f32 %v6180_v59, %v9200_v35  ;;  %5125 = vmatprep.subr.bf16.mxu1 %v5903_v40  ;;  %518 = vmatmul.mubr.f32.gmra.mrb[8].mxu0 %v517_v56  ;;  %v546_v35 = vsub.f32 %v6214_v17, %v8930_v61  ;;  %v9202_v56 = vpack.c.bf16 %v5780_v48, %v5777_v22  ;;  %v9205_v55 = vand.u32 4294901760, %v6227_v62 }
  0xb2   :  { %3866 = vmatprep.mubr.msk.f32.mxu1 %vm8928_vm14, %v9174_v10  ;;  %527 = vmatprep.mubr.f32.mxu0 %v526_v31  ;;  %9203 = vst [vmem:[#allocation46_spill] sm:$0xff] %v6309_v52  ;;  %v6311_v40 = vsub.f32 %v3825_v27, %v3825_v27  ;;  %v3824_v31 = vsel %vm8940_vm12, 1.0, %v9178_v54  ;;  %v9206_v34 = vpack.c.bf16 %v5804_v23, %v5792_v13 }
  0xb3   :  { %5087 = vmatpush3.bf16.msra.mxu0 %v9202_v56  ;;  %v555_v59 = vsub.f32 %v6227_v62, %v9205_v55  ;;  %5127 = vmatpush3.bf16.msra.mxu1 %v5910_v1  ;;  %v541_v8 = vand.u32 4294901760, %v540_v9  ;;  %v3829_v55 = vsel %vm8950_vm13, 1.0, %v9178_v54  ;;  %vm8949_vm14 = vcmp.eq.s32.totalorder %v6258_v50, %v5971_v47  ;;  %v6342_v9 = vpop.permute.xlu0 %84 }
  0xb4   :  { %9204 = vst [vmem:[#allocation47_spill] sm:$0xff] %v6311_v40  ;;  %5089 = vmatprep.subr.bf16.mxu0 %v9206_v34  ;;  %3867 = vmatmul.mubr.msk.f32.gmra.mrb[14].mxu1 %vm8929_vm15, %v9174_v10  ;;  %vm8957_vm15 = vcmp.eq.s32.totalorder %v6300_v25, %v5974_v46  ;;  %9207 = vst [vmem:[#allocation48_spill] sm:$0xff] %v6342_v9  ;;  %v547_v56 = vand.u32 4294901760, %v546_v35  ;;  %v6344_v34 = vsub.f32 %v3824_v31, %v3824_v31 }
  0xb5   :  { %5129 = vmatprep.subr.bf16.mxu1 %v5913_v36  ;;  %533 = vmatmul.mubr.f32.gmra.mrb[10].mxu0 %v532_v3  ;;  %v561_v61 = vsub.f32 %v6260_v12, %v8936_v18  ;;  %v9208_v3 = vpack.c.bf16 %v5827_v16, %v5824_v42  ;;  %v556_v27 = vand.u32 4294901760, %v555_v59  ;;  %v6352_v43 = vsub.f32 %v3829_v55, %v3829_v55 }
  0xb6   :  { %3868 = vmatprep.mubr.msk.f32.mxu1 %vm8934_vm10, %v9174_v10  ;;  %542 = vmatprep.mubr.f32.mxu0 %v541_v8  ;;  %v3828_v36 = vsel %vm8949_vm14, 1.0, %v9178_v54  ;;  %v8939_v35 = vand.u32 4294901760, %v6309_v52  ;;  %v9210_v31 = vpack.c.bf16 %v5858_v29, %v5855_v5  ;;  %v9211_v59 = vand.u32 4294901760, %v6269_v19 }
  0xb7   :  { %5091 = vmatpush3.bf16.msra.mxu0 %v9208_v3  ;;  %9209 = vst [vmem:[#allocation49_spill] sm:$0xff] %v6352_v43  ;;  %5131 = vmatpush3.bf16.msra.mxu1 %v5915_v45  ;;  %v3833_v55 = vsel %vm8957_vm15, 1.0, %v9178_v54  ;;  %vm8956_vm10 = vcmp.eq.s32.totalorder %v6300_v25, %v5971_v47  ;;  %v6386_v18 = vsub.f32 %v3828_v36, %v3828_v36  ;;  %v9219_v53 = vand.u32 4294901760, %v6344_v34 }
  0xb8   :  { %5093 = vmatprep.subr.bf16.mxu0 %v9210_v31  ;;  %3869 = vmatmul.mubr.msk.f32.gmra.mrb[16].mxu1 %vm8935_vm9, %v9174_v10  ;;  %v570_v8 = vsub.f32 %v6269_v19, %v9211_v59  ;;  %vm144_vm9 = vcmp.eq.s32.totalorder %v6342_v9, %v5974_v46  ;;  %v6384_v31 = vpop.permute.xlu1 %87  ;;  %v562_v59 = vand.u32 4294901760, %v561_v61  ;;  %v9213_v3 = vpack.c.bf16 %v5870_v28, %v5862_v7 }
  0xb9   :  { %5165 = vmatprep.subr.bf16.mxu1 %v5604_v63  ;;  %548 = vmatmul.mubr.f32.gmra.mrb[12].mxu0 %v547_v56  ;;  %9212 = vst [vmem:[#allocation50_spill] sm:$0xff] %v6384_v31  ;;  %v576_v63 = vsub.f32 %v6309_v52, %v8939_v35  ;;  %v6394_v56 = vsub.f32 %v3833_v55, %v3833_v55  ;;  %v3832_v60 = vsel %vm8956_vm10, 1.0, %v9178_v54  ;;  %v9216_v55 = vand.u32 4294901760, %v6311_v40 }
  0xba   :  { %3870 = vmatprep.mubr.msk.f32.mxu1 %vm8941_vm11, %v9174_v10  ;;  %557 = vmatprep.mubr.f32.mxu0 %v556_v27  ;;  %v9215_v36 = vpack.c.bf16 %v5888_v41, %v5883_v57  ;;  %v571_v61 = vand.u32 4294901760, %v570_v8  ;;  %v3837_v35 = vsel %vm144_vm9, 1.0, %v9178_v54  ;;  %vm148_vm11 = vcmp.eq.s32.totalorder %v6384_v31, %v5974_v46  ;;  %v6424_v8 = vpop.permute.xlu0 %90 }
  0xbb   :  { %5095 = vmatpush3.bf16.msra.mxu0 %v9213_v3  ;;  %9214 = vst [vmem:[#allocation51_spill] sm:$0xff] %v6394_v56  ;;  %v585_v3 = vsub.f32 %v6311_v40, %v9216_v55  ;;  %9217 = vst [vmem:[#allocation52_spill] sm:$0xff] %v6424_v8  ;;  %v8955_v55 = vand.u32 4294901760, %v6386_v18  ;;  %v577_v27 = vand.u32 4294901760, %v576_v63  ;;  %v591_v40 = vsub.f32 %v6344_v34, %v9219_v53 }
  0xbc   :  { %5097 = vmatprep.subr.bf16.mxu0 %v9215_v36  ;;  %3871 = vmatmul.mubr.msk.f32.gmra.mrb[18].mxu1 %vm8940_vm12, %v9174_v10  ;;  %vm8962_vm12 = vcmp.eq.s32.totalorder %v6342_v9, %v5971_v47  ;;  %v6426_v36 = vsub.f32 %v3832_v60, %v3832_v60  ;;  %v6435_v52 = vsub.f32 %v3837_v35, %v3837_v35  ;;  %v6462_v35 = vpop.permute.xlu1 %93  ;;  %v9223_v50 = vand.u32 4294901760, %v6394_v56 }
  0xbd   :  { %563 = vmatmul.mubr.f32.gmra.mrb[14].mxu0 %v562_v59  ;;  %3872 = vmatprep.mubr.msk.f32.mxu1 %vm8950_vm13, %v9174_v10  ;;  %v9218_v59 = vpack.c.bf16 %v5898_v4, %v5896_v38  ;;  %v586_v60 = vand.u32 4294901760, %v585_v3  ;;  %v3836_v53 = vsel %vm8962_vm12, 1.0, %v9178_v54  ;;  %vm152_vm13 = vcmp.eq.s32.totalorder %v6424_v8, %v5974_v46  ;;  %9222 = vst [vmem:[#allocation54_spill] sm:$0xff] %v6462_v35 }
  0xbe   :  { %572 = vmatprep.mubr.f32.mxu0 %v571_v61  ;;  %9220 = vst [vmem:[#allocation53_spill] sm:$0xff] %v6435_v52  ;;  %v9221_v61 = vand.u32 4294901760, %v6352_v43  ;;  %v606_v3 = vsub.f32 %v6386_v18, %v8955_v55 }
  0xbf   :  { %5099 = vmatpush3.bf16.msra.mxu0 %v9218_v59  ;;  %v592_v59 = vand.u32 4294901760, %v591_v40  ;;  %v3845_v40 = vsel %vm152_vm13, 1.0, %v9178_v54 }
  0xc0   :  { %5133 = vmatprep.subr.bf16.mxu0 %v5963_v49  ;;  %3873 = vmatmul.mubr.msk.f32.gmra.mrb[20].mxu1 %vm8949_vm14, %v9174_v10  ;;  %v600_v63 = vsub.f32 %v6352_v43, %v9221_v61  ;;  %v3841_v49 = vsel %vm148_vm11, 1.0, %v9178_v54  ;;  %vm147_vm14 = vcmp.eq.s32.totalorder %v6384_v31, %v5971_v47  ;;  %v6468_v61 = vsub.f32 %v3836_v53, %v3836_v53 }
  0xc1   :  { %578 = vmatmul.mubr.f32.gmra.mrb[16].mxu0 %v577_v27  ;;  %3874 = vmatprep.mubr.msk.f32.mxu1 %vm8957_vm15, %v9174_v10  ;;  %v8963_v27 = vand.u32 4294901760, %v6426_v36  ;;  %v6470_v41 = vsub.f32 %v3841_v49, %v3841_v49  ;;  %v615_v43 = vsub.f32 %v6394_v56, %v9223_v50  ;;  %v3840_v55 = vsel %vm147_vm14, 1.0, %v9178_v54 }
  0xc2   :  { %587 = vmatprep.mubr.f32.mxu0 %v586_v60  ;;  %v601_v60 = vand.u32 4294901760, %v600_v63  ;;  %vm156_vm15 = vcmp.eq.s32.totalorder %v6462_v35, %v5974_v46  ;;  %v607_v50 = vand.u32 4294901760, %v606_v3  ;;  %v6499_v53 = vsub.f32 %v3840_v55, %v3840_v55  ;;  %v9233_v46 = vld [vmem:[#allocation9_spill] sm:$0xff] }
  0xc3   :  { %v621_v63 = vsub.f32 %v6426_v36, %v8963_v27  ;;  %v616_v49 = vand.u32 4294901760, %v615_v43  ;;  %v8968_v25 = vand.u32 4294901760, %v6468_v61  ;;  %v9224_v56 = vand.u32 4294901760, %v6435_v52 }
  0xc4   :  { %3875 = vmatmul.mubr.msk.f32.gmra.mrb[22].mxu1 %vm8956_vm10, %v9174_v10  ;;  %vm151_vm10 = vcmp.eq.s32.totalorder %v6424_v8, %v5971_v47  ;;  %v3849_v55 = vsel %vm156_vm15, 1.0, %v9178_v54  ;;  %v9228_v8 = vld [vmem:[#allocation28_spill] sm:$0xff] }
  0xc5   :  { %593 = vmatmul.mubr.f32.gmra.mrb[18].mxu0 %v592_v59  ;;  %3876 = vmatprep.mubr.msk.f32.mxu1 %vm144_vm9, %v9174_v10  ;;  %v6501_v59 = vsub.f32 %v3845_v40, %v3845_v40  ;;  %v630_v3 = vsub.f32 %v6435_v52, %v9224_v56  ;;  %v3844_v43 = vsel %vm151_vm10, 1.0, %v9178_v54  ;;  %v622_v56 = vand.u32 4294901760, %v621_v63 }
  0xc6   :  { %602 = vmatprep.mubr.f32.mxu0 %v601_v60  ;;  %v6526_v40 = vsub.f32 %v3844_v43, %v3844_v43  ;;  %v636_v27 = vsub.f32 %v6468_v61, %v8968_v25  ;;  %v6531_v9 = vsub.f32 %v3849_v55, %v3849_v55  ;;  %v9225_v52 = vand.u32 4294901760, %v6470_v41 }
  0xc7   :  { %v631_v60 = vand.u32 4294901760, %v630_v3  ;;  %v8970_v43 = vand.u32 4294901760, %v6501_v59  ;;  %v9229_v31 = vand.u32 4294901760, %v9228_v8 }
  0xc8   :  { %3877 = vmatmul.mubr.msk.f32.gmra.mrb[24].mxu1 %vm8962_vm12, %v9174_v10  ;;  %vm155_vm12 = vcmp.eq.s32.totalorder %v6462_v35, %v5971_v47  ;;  %v645_v63 = vsub.f32 %v6470_v41, %v9225_v52  ;;  %v637_v55 = vand.u32 4294901760, %v636_v27  ;;  %v8972_v25 = vand.u32 4294901760, %v6526_v40 }
  0xc9   :  { %608 = vmatmul.mubr.f32.gmra.mrb[20].mxu0 %v607_v50  ;;  %3878 = vmatprep.mubr.msk.f32.mxu1 %vm148_vm11, %v9174_v10  ;;  %v8971_v50 = vand.u32 4294901760, %v6499_v53  ;;  %v8981_v27 = vand.u32 4294901760, %v6531_v9 }
  0xca   :  { %617 = vmatprep.mubr.f32.mxu0 %v616_v49  ;;  %v3848_v49 = vsel %vm155_vm12, 1.0, %v9178_v54  ;;  %v660_v54 = vsub.f32 %v6501_v59, %v8970_v43 }
  0xcb   :  { %v6550_v3 = vsub.f32 %v3848_v49, %v3848_v49  ;;  %v651_v52 = vsub.f32 %v6499_v53, %v8971_v50  ;;  %v666_v49 = vsub.f32 %v6526_v40, %v8972_v25  ;;  %v9226_v50 = vld [vmem:[#allocation29_spill] sm:$0xff] }
  0xcc   :  { %3879 = vmatmul.mubr.msk.f32.gmra.mrb[26].mxu1 %vm147_vm14, %v9174_v10  ;;  %v661_v43 = vand.u32 4294901760, %v660_v54  ;;  %v9230_v54 = vld [vmem:[#allocation33_spill] sm:$0xff] }
  0xcd   :  { %623 = vmatmul.mubr.f32.gmra.mrb[22].mxu0 %v622_v56  ;;  %3880 = vmatprep.mubr.msk.f32.mxu1 %vm152_vm13, %v9174_v10  ;;  %v646_v56 = vand.u32 4294901760, %v645_v63  ;;  %v8984_v63 = vand.u32 4294901760, %v6550_v3  ;;  %v9231_v47 = vand.u32 4294901760, %v9230_v54 }
  0xce   :  { %632 = vmatprep.mubr.f32.mxu0 %v631_v60  ;;  %v652_v60 = vand.u32 4294901760, %v651_v52  ;;  %v667_v52 = vand.u32 4294901760, %v666_v49 }
  0xcf   :  { %v681_v25 = vsub.f32 %v6550_v3, %v8984_v63 }
  0xd0   :  { %3881 = vmatmul.mubr.msk.f32.gmra.mrb[28].mxu1 %vm151_vm10, %v9174_v10 }
  0xd1   :  { %638 = vmatmul.mubr.f32.gmra.mrb[24].mxu0 %v637_v55  ;;  %3882 = vmatprep.mubr.msk.f32.mxu1 %vm156_vm15, %v9174_v10  ;;  %v675_v55 = vsub.f32 %v6531_v9, %v8981_v27  ;;  %v9232_v27 = vld [vmem:[#allocation8_spill] sm:$0xff] }
  0xd2   :  { %647 = vmatprep.mubr.f32.mxu0 %v646_v56  ;;  %v9227_v56 = vand.u32 4294901760, %v9226_v50 }
  0xd3   :  { %v676_v35 = vand.u32 4294901760, %v675_v55  ;;  %v9242_v55 = vand.u32 4294901760, %v6041_v44 }
  0xd4   :  { %3883 = vmatmul.mubr.msk.f32.gmra.mrb[30].mxu1 %vm155_vm12, %v9174_v10  ;;  %v6594_v10 = vld [vmem:[#allocation2 + $0x180] sm:$0xff] }
  0xd5   :  { %653 = vmatmul.mubr.f32.gmra.mrb[26].mxu0 %v652_v60  ;;  %1397 = vmatprep.mubr.f32.mxu1 %v9227_v56  ;;  %v682_v60 = vand.u32 4294901760, %v681_v25  ;;  %v9236_v56 = vld [vmem:[#allocation32_spill] sm:$0xff]  ;;  %v9240_v25 = vand.u32 4294901760, %v5548_v32  ;;  %v9246_v32 = vand.u32 4294901760, %v5561_v37 }
  0xd6   :  { %662 = vmatprep.mubr.f32.mxu0 %v661_v43  ;;  %v9234_v43 = vld [vmem:[#allocation34_spill] sm:$0xff]  ;;  %v9237_v63 = vand.u32 4294901760, %v9236_v56 }
  0xd7   :  { %v9235_v49 = vand.u32 4294901760, %v9234_v43 }
  0xd8   :  { %1401 = vmatmul.mubr.f32.vlgmr.msra.gmra.mrb[32].mxu1 %v9229_v31  ;;  %v6596_v31 = vld [vmem:[#allocation2 + $0x188] sm:$0xff] }
  0xd9   :  { %668 = vmatmul.mubr.f32.gmra.mrb[28].mxu0 %v667_v52  ;;  %1408 = vmatprep.mubr.f32.mxu1 %v9231_v47  ;;  %v9238_v47 = vld [vmem:[#allocation10_spill] sm:$0xff]  ;;  %v2105_v52 = vand.u32 4294901760, %v6596_v31 }
  0xda   :  { %677 = vmatprep.mubr.f32.mxu0 %v676_v35  ;;  %5167 = vmatpush3.bf16.msra.mxu1 %v9232_v27  ;;  %v9239_v35 = vand.u32 4294901760, %v5534_v26  ;;  %v9241_v27 = vld [vmem:[#allocation13_spill] sm:$0xff]  ;;  %v9245_v26 = vand.u32 4294901760, %v5553_v33 }
  0xdb   :  { %5169 = vmatprep.subr.bf16.mxu1 %v9233_v46  ;;  %v6634_v37 = vsub.f32 %v6596_v31, %v2105_v52 }
  0xdc   :  { %1412 = vmatmul.mubr.f32.gmra.mrb[34].mxu1 %v9235_v49  ;;  %v5136_v46 = vpack.c.bf16 %v9240_v25, %v9239_v35  ;;  %v5138_v49 = vpack.c.bf16 %v9246_v32, %v9245_v26  ;;  %v9248_v35 = vand.u32 4294901760, %v5637_v11  ;;  %v9252_v11 = vand.u32 4294901760, %v5649_v14  ;;  %v9258_v32 = vld [vmem:[#allocation15_spill] sm:$0xff] }
  0xdd   :  { %683 = vmatmul.mubr.f32.gmra.mrb[30].mxu0 %v682_v60  ;;  %1419 = vmatprep.mubr.f32.mxu1 %v9237_v63  ;;  %v2102_v63 = vand.u32 4294901760, %v6594_v10  ;;  %v9244_v60 = vld [vmem:[#allocation23_spill] sm:$0xff]  ;;  %v8988_v14 = vand.u32 4294901760, %v6634_v37 }
  0xde   :  { %1155 = vmatprep.mubr.f32.mxu0 %v9226_v50  ;;  %5171 = vmatpush3.bf16.msra.mxu1 %v9238_v47  ;;  %v9243_v50 = vand.u32 4294901760, %v6076_v20  ;;  %v9247_v47 = vand.u32 4294901760, %v5632_v39  ;;  %v9251_v39 = vand.u32 4294901760, %v6114_v21 }
  0xdf   :  { %5173 = vmatprep.subr.bf16.mxu1 %v9241_v27  ;;  %v9250_v27 = vld [vmem:[#allocation14_spill] sm:$0xff]  ;;  %v6629_v33 = vsub.f32 %v6594_v10, %v2102_v63  ;;  %v9302_v10 = vld [vmem:[#allocation49_spill] sm:$0xff] }
  0xe0   :  { %1423 = vmatmul.mubr.f32.gmra.mrb[36].mxu1 %v9242_v55  ;;  %v5140_v25 = vpack.c.bf16 %v9248_v35, %v9247_v47  ;;  %v9261_v35 = vld [vmem:[#allocation16_spill] sm:$0xff]  ;;  %v9303_v31 = vand.u32 4294901760, %v9302_v10 }
  0xe1   :  { %1158 = vmatmul.mubr.f32.vlgmr.msra.gmra.mrb[32].mxu0 %v9228_v8  ;;  %1430 = vmatprep.mubr.f32.mxu1 %v9243_v50  ;;  %v9249_v8 = vand.u32 4294901760, %v6084_v30  ;;  %v9256_v50 = vld [vmem:[#allocation12_spill] sm:$0xff] }
  0xe2   :  { %5135 = vmatpush3.bf16.msra.mxu0 %v9244_v60  ;;  %1164 = vmatprep.mubr.f32.mxu0 %v9230_v54  ;;  %v9257_v60 = vand.u32 4294901760, %v9256_v50 }
  0xe3   :  { %5137 = vmatprep.subr.bf16.mxu0 %v5136_v46  ;;  %5175 = vmatpush3.bf16.msra.mxu1 %v5754_v2  ;;  %v9253_v2 = vand.u32 4294901760, %v5654_v15  ;;  %v9254_v46 = vld [vmem:[#allocation11_spill] sm:$0xff]  ;;  %v9262_v15 = vld [vmem:[#allocation40_spill] sm:$0xff] }
  0xe4   :  { %1434 = vmatmul.mubr.f32.gmra.mrb[38].mxu1 %v9249_v8  ;;  %5177 = vmatprep.subr.bf16.mxu1 %v9250_v27  ;;  %v9255_v55 = vand.u32 4294901760, %v9254_v46  ;;  %v9265_v8 = vand.u32 4294901760, %v5711_v0  ;;  %v9268_v46 = vld [vmem:[#allocation17_spill] sm:$0xff]  ;;  %v2513_v0 = vsub.f32 %v6634_v37, %v8988_v14 }
  0xe5   :  { %1167 = vmatmul.mubr.f32.gmra.mrb[34].mxu0 %v9234_v43  ;;  %1441 = vmatprep.mubr.f32.mxu1 %v9251_v39  ;;  %v5142_v54 = vpack.c.bf16 %v9253_v2, %v9252_v11  ;;  %v9259_v43 = vld [vmem:[#allocation38_spill] sm:$0xff]  ;;  %v9266_v39 = vand.u32 4294901760, %v5760_v6  ;;  %v9267_v11 = vand.u32 4294901760, %v5765_v58 }
  0xe6   :  { %1173 = vmatprep.mubr.f32.mxu0 %v9236_v56  ;;  %5139 = vmatpush3.bf16.msra.mxu0 %v5138_v49  ;;  %v5144_v26 = vpack.c.bf16 %v9257_v60, %v9255_v55  ;;  %v9260_v47 = vand.u32 4294901760, %v9259_v43  ;;  %v8991_v56 = vand.u32 4294901760, %v6629_v33  ;;  %v9263_v49 = vand.u32 4294901760, %v9262_v15  ;;  %v9270_v55 = vld [vmem:[#allocation18_spill] sm:$0xff] }
  0xe7   :  { %5141 = vmatprep.subr.bf16.mxu0 %v5140_v25  ;;  %5179 = vmatpush3.bf16.msra.mxu1 %v9258_v32  ;;  %v9264_v25 = vand.u32 4294901760, %v5698_v51  ;;  %v5148_v2 = vpack.c.bf16 %v9267_v11, %v9266_v39  ;;  %v9271_v6 = vld [vmem:[#allocation42_spill] sm:$0xff]  ;;  %v9275_v60 = vand.u32 4294901760, %v5792_v13  ;;  %v9282_v13 = vand.u32 4294901760, %v5827_v16  ;;  %v6707_v39 = vld [vmem:[#allocation2 + $0x108] sm:$0xff] }
  0xe8   :  { %1445 = vmatmul.mubr.f32.gmra.mrb[40].mxu1 %v9260_v47  ;;  %5181 = vmatprep.subr.bf16.mxu1 %v9261_v35  ;;  %v2506_v51 = vsub.f32 %v6629_v33, %v8991_v56  ;;  %v9272_v58 = vand.u32 4294901760, %v9271_v6  ;;  %v9277_v47 = vld [vmem:[#allocation19_spill] sm:$0xff]  ;;  %v9279_v35 = vld [vmem:[#allocation21_spill] sm:$0xff]  ;;  %v9286_v11 = vld [vmem:[#allocation22_spill] sm:$0xff]  ;;  %v9287_v16 = vand.u32 4294901760, %v6269_v19  ;;  %v9321_v56 = vand.u32 4294901760, %v6470_v41 }
  0xe9   :  { %1176 = vmatmul.mubr.f32.gmra.mrb[36].mxu0 %v6041_v44  ;;  %1452 = vmatprep.mubr.f32.mxu1 %v9263_v49  ;;  %v5146_v27 = vpack.c.bf16 %v9265_v8, %v9264_v25  ;;  %v9269_v44 = vand.u32 4294901760, %v6172_v24  ;;  %v2514_v49 = vand.u32 4294901760, %v2513_v0  ;;  %v9283_v25 = vand.u32 4294901760, %v5855_v5  ;;  %v6715_v5 = vld [vmem:[#allocation2 + $0x190] sm:$0xff] }
  0xea   :  { %1182 = vmatprep.mubr.f32.mxu0 %v6076_v20  ;;  %5143 = vmatpush3.bf16.msra.mxu0 %v5142_v54  ;;  %v9273_v20 = vand.u32 4294901760, %v5777_v22  ;;  %v9274_v54 = vand.u32 4294901760, %v5780_v48  ;;  %v9280_v22 = vand.u32 4294901760, %v6227_v62  ;;  %v9281_v48 = vand.u32 4294901760, %v5824_v42 }
  0xeb   :  { %5145 = vmatprep.subr.bf16.mxu0 %v5144_v26  ;;  %5183 = vmatpush3.bf16.msra.mxu1 %v9268_v46  ;;  %v9276_v26 = vand.u32 4294901760, %v5804_v23  ;;  %v9284_v8 = vand.u32 4294901760, %v5858_v29  ;;  %v9288_v29 = vand.u32 4294901760, %v5862_v7  ;;  %v2108_v7 = vand.u32 4294901760, %v6715_v5 }
  0xec   :  { %1456 = vmatmul.mubr.f32.gmra.mrb[42].mxu1 %v9269_v44  ;;  %5185 = vmatprep.subr.bf16.mxu1 %v9270_v55  ;;  %v5150_v50 = vpack.c.bf16 %v9274_v54, %v9273_v20  ;;  %v5154_v23 = vpack.c.bf16 %v9282_v13, %v9281_v48  ;;  %v2057_v44 = vand.u32 4294901760, %v6707_v39  ;;  %v6724_v55 = vld [vmem:[#allocation2 + $0x198] sm:$0xff]  ;;  %v6787_v48 = vld [vmem:[#allocation2 + $0x1a0] sm:$0xff] }
  0xed   :  { %1185 = vmatmul.mubr.f32.gmra.mrb[38].mxu0 %v6084_v30  ;;  %1463 = vmatprep.mubr.f32.mxu1 %v9272_v58  ;;  %v5152_v32 = vpack.c.bf16 %v9276_v26, %v9275_v60  ;;  %v9278_v30 = vand.u32 4294901760, %v6214_v17  ;;  %v9293_v58 = vld [vmem:[#allocation46_spill] sm:$0xff]  ;;  %v9298_v26 = vand.u32 4294901760, %v5898_v4  ;;  %v6792_v13 = vld [vmem:[#allocation2 + $0x120] sm:$0xff] }
  0xee   :  { %1191 = vmatprep.mubr.f32.mxu0 %v6114_v21  ;;  %5147 = vmatpush3.bf16.msra.mxu0 %v5146_v27  ;;  %v2507_v21 = vand.u32 4294901760, %v2506_v51  ;;  %v5156_v27 = vpack.c.bf16 %v9284_v8, %v9283_v25  ;;  %v9291_v51 = vld [vmem:[#allocation20_spill] sm:$0xff]  ;;  %v9294_v20 = vand.u32 4294901760, %v9293_v58  ;;  %v6738_v60 = vld [vmem:[#allocation2 + $0x110] sm:$0xff] }
  0xef   :  { %5149 = vmatprep.subr.bf16.mxu0 %v5148_v2  ;;  %5187 = vmatpush3.bf16.msra.mxu1 %v9277_v47  ;;  %v9292_v0 = vand.u32 4294901760, %v9291_v51  ;;  %v6755_v47 = vsub.f32 %v6707_v39, %v2057_v44  ;;  %v6821_v51 = vld [vmem:[#allocation2 + $0x130] sm:$0xff] }
  0xf0   :  { %1467 = vmatmul.mubr.f32.gmra.mrb[44].mxu1 %v9278_v30  ;;  %5189 = vmatprep.subr.bf16.mxu1 %v9279_v35  ;;  %v5228_v42 = vpack.c.bf16 %v2514_v49, %v2507_v21  ;;  %v6770_v30 = vsub.f32 %v6715_v5, %v2108_v7  ;;  %v2060_v35 = vand.u32 4294901760, %v6738_v60 }
  0xf1   :  { %1194 = vmatmul.mubr.f32.gmra.mrb[40].mxu0 %v9259_v43  ;;  %1474 = vmatprep.mubr.f32.mxu1 %v9280_v22  ;;  %v6705_v43 = vld [vmem:[#allocation2 + $0x100] sm:$0xff]  ;;  %9299 = vst [vmem:[#allocation29_spill] sm:$0xff] %v6755_v47  ;;  %v8986_v22 = vand.u32 4294901760, %v6755_v47 }
  0xf2   :  { %1200 = vmatprep.mubr.f32.mxu0 %v9262_v15  ;;  %5151 = vmatpush3.bf16.msra.mxu0 %v5150_v50  ;;  %v9285_v15 = vand.u32 4294901760, %v6260_v12  ;;  %v2054_v46 = vand.u32 4294901760, %v6705_v43  ;;  %v2111_v50 = vand.u32 4294901760, %v6724_v55  ;;  %9301 = vst [vmem:[#allocation28_spill] sm:$0xff] %v6770_v30  ;;  %v8989_v8 = vand.u32 4294901760, %v6770_v30 }
  0xf3   :  { %5153 = vmatprep.subr.bf16.mxu0 %v5152_v32  ;;  %5191 = vmatpush3.bf16.msra.mxu1 %v5910_v1  ;;  %v9289_v1 = vand.u32 4294901760, %v5870_v28  ;;  %v9295_v28 = vld [vmem:[#allocation47_spill] sm:$0xff] }
  0xf4   :  { %1478 = vmatmul.mubr.f32.gmra.mrb[46].mxu1 %v9285_v15  ;;  %5193 = vmatprep.subr.bf16.mxu1 %v9286_v11  ;;  %v9296_v54 = vand.u32 4294901760, %v9295_v28  ;;  %v6809_v15 = vld [vmem:[#allocation2 + $0x1b0] sm:$0xff]  ;;  %v6811_v11 = vld [vmem:[#allocation2 + $0x1b8] sm:$0xff] }
  0xf5   :  { %1203 = vmatmul.mubr.f32.gmra.mrb[42].mxu0 %v6172_v24  ;;  %1485 = vmatprep.mubr.f32.mxu1 %v9287_v16  ;;  %v5158_v2 = vpack.c.bf16 %v9289_v1, %v9288_v29  ;;  %v9290_v24 = vand.u32 4294901760, %v5883_v57  ;;  %v9297_v57 = vand.u32 4294901760, %v5896_v38  ;;  %v9300_v38 = vand.u32 4294901760, %v6344_v34  ;;  %v9308_v16 = vld [vmem:[#allocation51_spill] sm:$0xff] }
  0xf6   :  { %1209 = vmatprep.mubr.f32.mxu0 %v9271_v6  ;;  %5155 = vmatpush3.bf16.msra.mxu0 %v5154_v23  ;;  %v9305_v23 = vand.u32 4294901760, %v6386_v18  ;;  %v9309_v29 = vand.u32 4294901760, %v9308_v16 }
  0xf7   :  { %5157 = vmatprep.subr.bf16.mxu0 %v5156_v27  ;;  %5195 = vmatpush3.bf16.msra.mxu1 %v5915_v45  ;;  %v5160_v6 = vpack.c.bf16 %v9292_v0, %v9290_v24  ;;  %v6740_v45 = vld [vmem:[#allocation2 + $0x118] sm:$0xff]  ;;  %v5162_v32 = vpack.c.bf16 %v9298_v26, %v9297_v57  ;;  %v6807_v27 = vld [vmem:[#allocation2 + $0x128] sm:$0xff]  ;;  %v9003_v26 = vand.u32 4294901760, %v6809_v15 }
  0xf8   :  { %1489 = vmatmul.mubr.f32.gmra.mrb[48].mxu1 %v9294_v20  ;;  %5229 = vmatprep.subr.bf16.mxu1 %v5228_v42  ;;  %v2063_v21 = vand.u32 4294901760, %v6740_v45  ;;  %v6831_v20 = vld [vmem:[#allocation2 + $0x138] sm:$0xff]  ;;  %v9006_v57 = vand.u32 4294901760, %v6807_v27  ;;  %v6944_v42 = vld [vmem:[#allocation2 + $0x140] sm:$0xff] }
  0xf9   :  { %1212 = vmatmul.mubr.f32.gmra.mrb[44].mxu0 %v6214_v17  ;;  %1496 = vmatprep.mubr.f32.mxu1 %v9296_v54  ;;  %v6750_v17 = vsub.f32 %v6705_v43, %v2054_v46  ;;  %v8994_v14 = vand.u32 4294901760, %v6831_v20  ;;  %v6877_v43 = vsub.f32 %v6809_v15, %v9003_v26 }
  0xfa   :  { %1218 = vmatprep.mubr.f32.mxu0 %v6227_v62  ;;  %5159 = vmatpush3.bf16.msra.mxu0 %v5158_v2  ;;  %v6761_v62 = vpack.c.bf16 %v2105_v52, %v2102_v63  ;;  %v6780_v63 = vsub.f32 %v6724_v55, %v2111_v50  ;;  %v6804_v25 = vsub.f32 %v6740_v45, %v2063_v21  ;;  %v2114_v2 = vand.u32 4294901760, %v6787_v48 }
  0xfb   :  { %5161 = vmatprep.subr.bf16.mxu0 %v5160_v6  ;;  %v8987_v49 = vand.u32 4294901760, %v6750_v17  ;;  %v2401_v6 = vsub.f32 %v6755_v47, %v8986_v22  ;;  %9317 = vst [vmem:[#allocation23_spill] sm:$0xff] %v6877_v43  ;;  %v6907_v55 = vsub.f32 %v6831_v20, %v8994_v14  ;;  %v9324_v45 = vand.u32 4294901760, %v6499_v53  ;;  %v6955_v14 = vld [vmem:[#allocation2 + $0x148] sm:$0xff] }
  0xfc   :  { %1500 = vmatmul.mubr.f32.gmra.mrb[50].mxu1 %v9300_v38  ;;  %9304 = vst [vmem:[#allocation33_spill] sm:$0xff] %v6780_v63  ;;  %9307 = vst [vmem:[#allocation9_spill] sm:$0xff] %v6804_v25  ;;  %v8990_v1 = vand.u32 4294901760, %v6780_v63  ;;  %v2520_v38 = vsub.f32 %v6770_v30, %v8989_v8 }
  0xfd   :  { %1221 = vmatmul.mubr.f32.gmra.mrb[46].mxu0 %v6260_v12  ;;  %1507 = vmatprep.mubr.f32.mxu1 %v9303_v31  ;;  %v6789_v12 = vld [vmem:[#allocation2 + $0x1a8] sm:$0xff]  ;;  %v2394_v0 = vsub.f32 %v6750_v17, %v8987_v49  ;;  %v8995_v31 = vand.u32 4294901760, %v6821_v51  ;;  %v6851_v49 = vsub.f32 %v6787_v48, %v2114_v2  ;;  %v2402_v8 = vand.u32 4294901760, %v2401_v6  ;;  %9322 = vst [vmem:[#allocation12_spill] sm:$0xff] %v6907_v55 }
  0xfe   :  { %1227 = vmatprep.mubr.f32.mxu0 %v6269_v19  ;;  %5163 = vmatpush3.bf16.msra.mxu0 %v5162_v32  ;;  %v6799_v19 = vsub.f32 %v6738_v60, %v2060_v35  ;;  %v2117_v24 = vand.u32 4294901760, %v6789_v12  ;;  %v9310_v32 = vand.u32 4294901760, %v6426_v36  ;;  %v2527_v22 = vsub.f32 %v6780_v63, %v8990_v1 }
  0xff   :  { %5197 = vmatprep.subr.bf16.mxu0 %v6761_v62  ;;  %9313 = vst [vmem:[#allocation34_spill] sm:$0xff] %v6851_v49  ;;  %v8993_v6 = vand.u32 4294901760, %v6804_v25  ;;  %v6899_v1 = vsub.f32 %v6821_v51, %v8995_v31  ;;  %v9008_v4 = vand.u32 4294901760, %v6907_v55 }
 0x100   :  { %1511 = vmatmul.mubr.f32.gmra.mrb[52].mxu1 %v9305_v23  ;;  %9306 = vst [vmem:[#allocation8_spill] sm:$0xff] %v6799_v19  ;;  %v9311_v23 = vld [vmem:[#allocation53_spill] sm:$0xff]  ;;  %v2528_v5 = vand.u32 4294901760, %v2527_v22 }
 0x101   :  { %1230 = vmatmul.mubr.f32.gmra.mrb[48].mxu0 %v9293_v58  ;;  %1518 = vmatprep.mubr.f32.mxu1 %v9309_v29  ;;  %v9007_v58 = vand.u32 4294901760, %v6792_v13  ;;  %v9312_v29 = vand.u32 4294901760, %v9311_v23  ;;  %9320 = vst [vmem:[#allocation11_spill] sm:$0xff] %v6899_v1 }
 0x102   :  { %1236 = vmatprep.mubr.f32.mxu0 %v9295_v28  ;;  %v9002_v28 = vand.u32 4294901760, %v6811_v11 }
 0x103   :  { %v6867_v48 = vsub.f32 %v6792_v13, %v9007_v58 }
 0x104   :  { %1522 = vmatmul.mubr.f32.gmra.mrb[54].mxu1 %v9310_v32  ;;  %v6854_v32 = vsub.f32 %v6789_v12, %v2117_v24  ;;  %v6872_v12 = vsub.f32 %v6807_v27, %v9006_v57  ;;  %v6882_v39 = vsub.f32 %v6811_v11, %v9002_v28  ;;  %v9329_v28 = vand.u32 4294901760, %v6531_v9 }
 0x105   :  { %1239 = vmatmul.mubr.f32.gmra.mrb[50].mxu0 %v6344_v34  ;;  %1529 = vmatprep.mubr.f32.mxu1 %v9312_v29  ;;  %v6862_v34 = vpack.c.bf16 %v2057_v44, %v2054_v46  ;;  %v2395_v29 = vand.u32 4294901760, %v2394_v0  ;;  %9315 = vst [vmem:[#allocation10_spill] sm:$0xff] %v6867_v48  ;;  %v9319_v44 = vand.u32 4294901760, %v6468_v61  ;;  %v8992_v0 = vand.u32 4294901760, %v6799_v19  ;;  %v6923_v46 = vld [vmem:[#allocation2 + $0x1c8] sm:$0xff] }
 0x106   :  { %9314 = vst [vmem:[#allocation32_spill] sm:$0xff] %v6854_v32  ;;  %1245 = vmatprep.mubr.f32.mxu0 %v9302_v10  ;;  %9316 = vst [vmem:[#allocation13_spill] sm:$0xff] %v6872_v12  ;;  %v6892_v10 = vpack.c.bf16 %v2111_v50, %v2108_v7  ;;  %v6909_v7 = vld [vmem:[#allocation2 + $0x1c0] sm:$0xff]  ;;  %v8996_v22 = vand.u32 4294901760, %v6854_v32  ;;  %v8999_v50 = vand.u32 4294901760, %v6872_v12  ;;  %v9001_v60 = vand.u32 4294901760, %v6882_v39 }
 0x107   :  { %9318 = vst [vmem:[#allocation14_spill] sm:$0xff] %v6882_v39  ;;  %v6925_v54 = vpack.c.bf16 %v2402_v8, %v2395_v29  ;;  %v9004_v8 = vand.u32 4294901760, %v6899_v1  ;;  %v9005_v29 = vand.u32 4294901760, %v6909_v7  ;;  %v9333_v57 = vand.u32 4294901760, %v6955_v14 }
 0x108   :  { %1533 = vmatmul.mubr.f32.gmra.mrb[56].mxu1 %v9319_v44  ;;  %v2521_v44 = vand.u32 4294901760, %v2520_v38  ;;  %v8997_v38 = vand.u32 4294901760, %v6867_v48 }
 0x109   :  { %1248 = vmatmul.mubr.f32.gmra.mrb[52].mxu0 %v6386_v18  ;;  %1540 = vmatprep.mubr.f32.mxu1 %v9321_v56  ;;  %v6918_v18 = vpack.c.bf16 %v2063_v21, %v2060_v35  ;;  %v8998_v56 = vand.u32 4294901760, %v6851_v49  ;;  %v6935_v35 = vsub.f32 %v6799_v19, %v8992_v0  ;;  %v6940_v21 = vsub.f32 %v6804_v25, %v8993_v6 }
 0x10a   :  { %1254 = vmatprep.mubr.f32.mxu0 %v9308_v16  ;;  %v9000_v16 = vand.u32 4294901760, %v6877_v43  ;;  %v6949_v52 = vpack.c.bf16 %v2528_v5, %v2521_v44  ;;  %v6951_v0 = vpack.c.bf16 %v2117_v24, %v2114_v2  ;;  %v9009_v6 = vand.u32 4294901760, %v6923_v46 }
 0x10b   :  { %9323 = vst [vmem:[#allocation15_spill] sm:$0xff] %v6918_v18  ;;  %v2534_v31 = vsub.f32 %v6851_v49, %v8998_v56  ;;  %v2422_v2 = vsub.f32 %v6867_v48, %v8997_v38  ;;  %v2429_v44 = vsub.f32 %v6872_v12, %v8999_v50  ;;  %v2555_v5 = vsub.f32 %v6882_v39, %v9001_v60  ;;  %v6981_v38 = vld [vmem:[#allocation2 + $0x1d8] sm:$0xff]  ;;  %v7058_v12 = vld [vmem:[#allocation2 + $0x160] sm:$0xff] }
 0x10c   :  { %1544 = vmatmul.mubr.f32.gmra.mrb[58].mxu1 %v9324_v45  ;;  %v9325_v45 = vand.u32 4294901760, %v6501_v59  ;;  %9326 = vst [vmem:[#allocation38_spill] sm:$0xff] %v6951_v0  ;;  %v9327_v56 = vand.u32 4294901760, %v6526_v40  ;;  %v2436_v50 = vsub.f32 %v6899_v1, %v9004_v8  ;;  %v2416_v26 = vand.u32 4294901760, %v6940_v21  ;;  %v9337_v1 = vld [vmem:[#allocation25_spill] sm:$0xff] }
 0x10d   :  { %1257 = vmatmul.mubr.f32.gmra.mrb[54].mxu0 %v6426_v36  ;;  %v2541_v36 = vsub.f32 %v6854_v32, %v8996_v22  ;;  %v6979_v22 = vld [vmem:[#allocation2 + $0x1d0] sm:$0xff]  ;;  %v2443_v8 = vsub.f32 %v6907_v55, %v9008_v4  ;;  %v2535_v24 = vand.u32 4294901760, %v2534_v31  ;;  %v2423_v21 = vand.u32 4294901760, %v2422_v2 }
 0x10e   :  { %1551 = vmatprep.mubr.f32.mxu1 %v9325_v45  ;;  %1263 = vmatprep.mubr.f32.mxu0 %v9311_v23  ;;  %v2548_v23 = vsub.f32 %v6877_v43, %v9000_v16  ;;  %v9010_v45 = vand.u32 4294901760, %v6944_v42  ;;  %v6991_v16 = vsub.f32 %v6909_v7, %v9005_v29  ;;  %v7007_v29 = vsub.f32 %v6923_v46, %v9009_v6  ;;  %v7019_v6 = vld [vmem:[#allocation2 + $0x158] sm:$0xff] }
 0x10f   :  { %v2430_v58 = vand.u32 4294901760, %v2429_v44  ;;  %v2556_v31 = vand.u32 4294901760, %v2555_v5  ;;  %v7029_v44 = vld [vmem:[#allocation2 + $0x1e0] sm:$0xff]  ;;  %v2444_v55 = vand.u32 4294901760, %v2443_v8  ;;  %v9338_v2 = vand.u32 4294901760, %v6979_v22 }
 0x110   :  { %1555 = vmatmul.mubr.f32.gmra.mrb[60].mxu1 %v9327_v56  ;;  %9328 = vst [vmem:[#allocation16_spill] sm:$0xff] %v6991_v16  ;;  %v2409_v56 = vand.u32 4294901760, %v6935_v35  ;;  %9330 = vst [vmem:[#allocation40_spill] sm:$0xff] %v7007_v29  ;;  %v7012_v35 = vld [vmem:[#allocation2 + $0x150] sm:$0xff]  ;;  %v2549_v60 = vand.u32 4294901760, %v2548_v23  ;;  %v7017_v4 = vsub.f32 %v6944_v42, %v9010_v45  ;;  %v9335_v23 = vmov 1.0  }
 0x111   :  { %1266 = vmatmul.mubr.f32.gmra.mrb[56].mxu0 %v6468_v61  ;;  %1562 = vmatprep.mubr.f32.mxu1 %v9329_v28  ;;  %v2542_v61 = vand.u32 4294901760, %v2541_v36  ;;  %v2437_v36 = vand.u32 4294901760, %v2436_v50  ;;  %v7026_v28 = vsub.f32 %v6955_v14, %v9333_v57  ;;  %v9336_v45 = vld [vmem:[#allocation27_spill] sm:$0xff]  ;;  %v9340_v43 = vand.u32 4294901760, %v6981_v38 }
 0x112   :  { %1272 = vmatprep.mubr.f32.mxu0 %v6470_v41  ;;  %9331 = vst [vmem:[#allocation17_spill] sm:$0xff] %v7017_v4  ;;  %v9332_v41 = vand.u32 4294901760, %v6550_v3  ;;  %v5234_v39 = vpack.c.bf16 %v2416_v26, %v2409_v56  ;;  %v9025_v57 = vand.u32 4294901760, %v7017_v4  ;;  %v7066_v49 = vpack.c.bf16 %v2556_v31, %v2549_v60  ;;  %v7072_v56 = vld [vmem:[#allocation2 + $0x168] sm:$0xff] }
 0x113   :  { %9334 = vst [vmem:[#allocation18_spill] sm:$0xff] %v7026_v28  ;;  %v7051_v8 = vsub.f32 %v6981_v38, %v9340_v43  ;;  %v5236_v48 = vpack.c.bf16 %v2542_v61, %v2535_v24  ;;  %v7064_v43 = vpack.c.bf16 %v2430_v58, %v2423_v21  ;;  %v9343_v5 = vand.u32 4294901760, %v6991_v16  ;;  %v9344_v61 = vld [vmem:[#allocation31_spill] sm:$0xff]  ;;  %v7090_v24 = vld [vmem:[#allocation2 + $0x1f0] sm:$0xff] }
 0x114   :  { %1566 = vmatmul.mubr.f32.gmra.mrb[62].mxu1 %v9332_v41  ;;  %v7038_v41 = vld [vmem:[#allocation2 + $0x1e8] sm:$0xff]  ;;  %v7079_v50 = vpack.c.bf16 %v2444_v55, %v2437_v36  ;;  %v9345_v58 = vand.u32 4294901760, %v7007_v29  ;;  %v9346_v31 = vand.u32 4294901760, %v7012_v35  ;;  %v9348_v55 = vand.u32 4294901760, %v7019_v6  ;;  %v7127_v21 = vld [vmem:[#allocation2 + $0x170] sm:$0xff] }
 0x115   :  { %1275 = vmatmul.mubr.f32.gmra.mrb[58].mxu0 %v6499_v53  ;;  %3916 = vmatprep.mubr.msk.f32.mxu1 %vm96_vm0, %v9335_v23  ;;  %v7046_v53 = vsub.f32 %v6979_v22, %v9338_v2  ;;  %9341 = vst [vmem:[#allocation19_spill] sm:$0xff] %v7051_v8  ;;  %v9342_v2 = vld [vmem:[#allocation24_spill] sm:$0xff]  ;;  %v2562_v26 = vsub.f32 %v6991_v16, %v9343_v5  ;;  %v9357_v32 = vand.u32 4294901760, %v7051_v8  ;;  %v9360_v19 = vand.u32 4294901760, %v7072_v56 }
 0x116   :  { %1281 = vmatprep.mubr.f32.mxu0 %v6501_v59  ;;  %v2569_v60 = vsub.f32 %v7007_v29, %v9345_v58  ;;  %v7088_v5 = vsub.f32 %v7012_v35, %v9346_v31  ;;  %v7099_v36 = vsub.f32 %v7019_v6, %v9348_v55  ;;  %v2450_v59 = vsub.f32 %v7017_v4, %v9025_v57  ;;  %v7129_v55 = vld [vmem:[#allocation2 + $0x178] sm:$0xff]  ;;  %v9354_v4 = vld [vmem:[#allocation26_spill] sm:$0xff] }
 0x117   :  { %9339 = vst [vmem:[#allocation42_spill] sm:$0xff] %v7046_v53  ;;  %v9355_v57 = vand.u32 4294901760, %v7026_v28 }
 0x118   :  { %3917 = vmatmul.mubr.msk.f32.vlgmr.msra.gmra.mrb[64].mxu1 %vm95_vm1, %v9335_v23  ;;  %9347 = vst [vmem:[#allocation21_spill] sm:$0xff] %v7088_v5  ;;  %9349 = vst [vmem:[#allocation22_spill] sm:$0xff] %v7099_v36  ;;  %v2570_v16 = vand.u32 4294901760, %v2569_v60  ;;  %v9366_v30 = vand.u32 4294901760, %v7099_v36 }
 0x119   :  { %1284 = vmatmul.mubr.f32.gmra.mrb[60].mxu0 %v6526_v40  ;;  %3918 = vmatprep.mubr.msk.f32.mxu1 %vm100_vm4, %v9335_v23  ;;  %v7092_v40 = vld [vmem:[#allocation2 + $0x1f8] sm:$0xff] }
 0x11a   :  { %1290 = vmatprep.mubr.f32.mxu0 %v6531_v9  ;;  %5231 = vmatpush3.bf16.msra.mxu1 %v6925_v54  ;;  %v9350_v9 = vand.u32 4294901760, %v7029_v44 }
 0x11b   :  { %5233 = vmatprep.subr.bf16.mxu1 %v6949_v52  ;;  %v9352_v52 = vand.u32 4294901760, %v7038_v41 }
 0x11c   :  { %v7111_v54 = vsub.f32 %v7029_v44, %v9350_v9  ;;  %3919 = vmatmul.mubr.msk.f32.gmra.mrb[66].mxu1 %vm99_vm5, %v9335_v23  ;;  %v2457_v9 = vsub.f32 %v7026_v28, %v9355_v57  ;;  %v9358_v57 = vand.u32 4294901760, %v7058_v12  ;;  %v2451_v28 = vand.u32 4294901760, %v2450_v59 }
 0x11d   :  { %v7123_v31 = vsub.f32 %v7038_v41, %v9352_v52  ;;  %1293 = vmatmul.mubr.f32.gmra.mrb[62].mxu0 %v6550_v3  ;;  %3920 = vmatprep.mubr.msk.f32.mxu1 %vm104_vm2, %v9335_v23  ;;  %v2563_v52 = vand.u32 4294901760, %v2562_v26  ;;  %v9356_v3 = vand.u32 4294901760, %v7046_v53  ;;  %v2583_v26 = vsub.f32 %v7051_v8, %v9357_v32 }
 0x11e   :  { %9351 = vst [vmem:[#allocation20_spill] sm:$0xff] %v7111_v54  ;;  %3884 = vmatprep.mubr.msk.f32.mxu0 %vm96_vm0, %v9335_v23  ;;  %5235 = vmatpush3.bf16.msra.mxu1 %v5234_v39  ;;  %v7156_v29 = vsub.f32 %v7058_v12, %v9358_v57  ;;  %v7161_v39 = vsub.f32 %v7072_v56, %v9360_v19  ;;  %v9363_v19 = vand.u32 4294901760, %v7092_v40  ;;  %v2458_v32 = vand.u32 4294901760, %v2457_v9 }
 0x11f   :  { %9353 = vst [vmem:[#allocation46_spill] sm:$0xff] %v7123_v31  ;;  %v2576_v58 = vsub.f32 %v7046_v53, %v9356_v3  ;;  %5237 = vmatprep.subr.bf16.mxu1 %v5236_v48  ;;  %v9362_v48 = vand.u32 4294901760, %v7090_v24  ;;  %v9364_v53 = vld [vmem:[#allocation30_spill] sm:$0xff]  ;;  %v5244_v57 = vpack.c.bf16 %v2570_v16, %v2563_v52  ;;  %v2584_v25 = vand.u32 4294901760, %v2583_v26 }
 0x120   :  { %9359 = vst [vmem:[#allocation47_spill] sm:$0xff] %v7156_v29  ;;  %9361 = vst [vmem:[#allocation49_spill] sm:$0xff] %v7161_v39  ;;  %3921 = vmatmul.mubr.msk.f32.gmra.mrb[68].mxu1 %vm103_vm3, %v9335_v23  ;;  %v7179_v3 = vsub.f32 %v7092_v40, %v9363_v19  ;;  %v2471_v16 = vsub.f32 %v7099_v36, %v9366_v30  ;;  %v9370_v52 = vand.u32 4294901760, %v7123_v31  ;;  %v9371_v30 = vld [vmem:[#allocation35_spill] sm:$0xff] }
 0x121   :  { %v7174_v59 = vsub.f32 %v7090_v24, %v9362_v48  ;;  %3885 = vmatmul.mubr.msk.f32.vlgmr.msra.gmra.mrb[64].mxu0 %vm95_vm1, %v9335_v23  ;;  %3922 = vmatprep.mubr.msk.f32.mxu1 %vm108_vm6, %v9335_v23  ;;  %v9365_v48 = vand.u32 4294901760, %v7088_v5  ;;  %v2577_v8 = vand.u32 4294901760, %v2576_v58  ;;  %v9368_v58 = vand.u32 4294901760, %v7129_v55 }
 0x122   :  { %5199 = vmatpush3.bf16.msra.mxu0 %v6862_v34  ;;  %3886 = vmatprep.mubr.msk.f32.mxu0 %vm100_vm4, %v9335_v23  ;;  %v2597_v9 = vsub.f32 %v7123_v31, %v9370_v52  ;;  %v9375_v52 = vand.u32 4294901760, %v6809_v15  ;;  %v5246_v31 = vpack.c.bf16 %v2458_v32, %v2451_v28  ;;  %v2472_v63 = vand.u32 4294901760, %v2471_v16 }
 0x123   :  { %v2464_v60 = vsub.f32 %v7088_v5, %v9365_v48  ;;  %5201 = vmatprep.subr.bf16.mxu0 %v6892_v10  ;;  %5239 = vmatpush3.bf16.msra.mxu1 %v7064_v43  ;;  %v9367_v48 = vand.u32 4294901760, %v7127_v21  ;;  %v7214_v26 = vsub.f32 %v7129_v55, %v9368_v58  ;;  %v9369_v43 = vand.u32 4294901760, %v7111_v54 }
 0x124   :  { %3923 = vmatmul.mubr.msk.f32.gmra.mrb[70].mxu1 %vm107_vm7, %v9335_v23  ;;  %5241 = vmatprep.subr.bf16.mxu1 %v7066_v49  ;;  %v9372_v49 = vand.u32 4294901760, %v6792_v13  ;;  %v9376_v5 = vand.u32 4294901760, %v6811_v11  ;;  %v5248_v13 = vpack.c.bf16 %v2584_v25, %v2577_v8  ;;  %v9379_v11 = vand.u32 4294901760, %v7161_v39 }
 0x125   :  { %v7209_v19 = vsub.f32 %v7127_v21, %v9367_v48  ;;  %v2590_v48 = vsub.f32 %v7111_v54, %v9369_v43  ;;  %3887 = vmatmul.mubr.msk.f32.gmra.mrb[66].mxu0 %vm99_vm5, %v9335_v23  ;;  %3924 = vmatprep.mubr.msk.f32.mxu1 %vm112_vm8, %v9335_v23  ;;  %v9373_v43 = vand.u32 4294901760, %v6807_v27  ;;  %v2465_v36 = vand.u32 4294901760, %v2464_v60 }
 0x126   :  { %v7249_v58 = vpack.c.bf16 %v9376_v5, %v9375_v52  ;;  %3888 = vmatprep.mubr.msk.f32.mxu0 %vm104_vm2, %v9335_v23  ;;  %5203 = vmatpush3.bf16.msra.mxu0 %v6918_v18  ;;  %v9378_v27 = vand.u32 4294901760, %v7156_v29  ;;  %v2485_v28 = vsub.f32 %v7161_v39, %v9379_v11  ;;  %vm9380_vm0 = vcmp.eq.s32.totalorder %v9371_v30, %v9342_v2 }
 0x127   :  { %v7243_v54 = vpack.c.bf16 %v9373_v43, %v9372_v49  ;;  %5205 = vmatprep.subr.bf16.mxu0 %v6951_v0  ;;  %5243 = vmatpush3.bf16.msra.mxu1 %v7079_v50  ;;  %v9056_v5 = vand.u32 4294901760, %v7209_v19  ;;  %v2591_v60 = vand.u32 4294901760, %v2590_v48  ;;  %v2598_v32 = vand.u32 4294901760, %v2597_v9  ;;  %vm9402_vm5 = vmmov %vm9380_vm0 }
 0x128   :  { %9377 = vst [vmem:[#allocation53_spill] sm:$0xff] %v7249_v58  ;;  %v2478_v49 = vsub.f32 %v7156_v29, %v9378_v27  ;;  %3925 = vmatmul.mubr.msk.f32.gmra.mrb[72].mxu1 %vm9380_vm0, %v9335_v23  ;;  %5245 = vmatprep.subr.bf16.mxu1 %v5244_v57  ;;  %v9381_v50 = vand.u32 4294901760, %v7174_v59  ;;  %v9382_v43 = vand.u32 4294901760, %v7179_v3  ;;  %v9383_v27 = vld [vmem:[#allocation36_spill] sm:$0xff]  ;;  %v9385_v57 = vand.u32 4294901760, %v6821_v51 }
 0x129   :  { %9374 = vst [vmem:[#allocation51_spill] sm:$0xff] %v7243_v54  ;;  %3889 = vmatmul.mubr.msk.f32.gmra.mrb[68].mxu0 %vm103_vm3, %v9335_v23  ;;  %vm9384_vm1 = vcmp.eq.s32.totalorder %v9383_v27, %v9337_v1  ;;  %v9386_v9 = vand.u32 4294901760, %v6831_v20  ;;  %v9388_v11 = vand.u32 4294901760, %v6909_v7  ;;  %v5250_v8 = vpack.c.bf16 %v2472_v63, %v2465_v36  ;;  %v9393_v36 = vld [vmem:[#allocation37_spill] sm:$0xff] }
 0x12a   :  { %v2604_v16 = vsub.f32 %v7174_v59, %v9381_v50  ;;  %v2611_v52 = vsub.f32 %v7179_v3, %v9382_v43  ;;  %3926 = vmatprep.mubr.msk.f32.mxu1 %vm9384_vm1, %v9335_v23  ;;  %3890 = vmatprep.mubr.msk.f32.mxu0 %vm108_vm6, %v9335_v23  ;;  %v9389_v50 = vand.u32 4294901760, %v6923_v46  ;;  %v2479_v15 = vand.u32 4294901760, %v2478_v49 }
 0x12b   :  { %5207 = vmatpush3.bf16.msra.mxu0 %v7243_v54  ;;  %v7297_v48 = vpack.c.bf16 %v9386_v9, %v9385_v57  ;;  %5247 = vmatpush3.bf16.msra.mxu1 %v5246_v31  ;;  %v2486_v25 = vand.u32 4294901760, %v2485_v28  ;;  %v2492_v51 = vsub.f32 %v7209_v19, %v9056_v5  ;;  %v9391_v20 = vand.u32 4294901760, %v7214_v26 }
 0x12c   :  { %v7303_v43 = vpack.c.bf16 %v9389_v50, %v9388_v11  ;;  %5209 = vmatprep.subr.bf16.mxu0 %v7249_v58  ;;  %vm9392_vm2 = vcmp.eq.s32.totalorder %v9383_v27, %v9342_v2  ;;  %5249 = vmatprep.subr.bf16.mxu1 %v5248_v13  ;;  %v5252_v63 = vpack.c.bf16 %v2598_v32, %v2591_v60  ;;  %v2605_v46 = vand.u32 4294901760, %v2604_v16 }
 0x12d   :  { %9387 = vst [vmem:[#allocation25_spill] sm:$0xff] %v7297_v48  ;;  %v2499_v57 = vsub.f32 %v7214_v26, %v9391_v20  ;;  %3927 = vmatmul.mubr.msk.f32.gmra.mrb[74].mxu1 %vm9392_vm2, %v9335_v23  ;;  %v2612_v7 = vand.u32 4294901760, %v2611_v52  ;;  %3891 = vmatmul.mubr.msk.f32.gmra.mrb[70].mxu0 %vm107_vm7, %v9335_v23  ;;  %vm9394_vm3 = vcmp.eq.s32.totalorder %v9393_v36, %v9337_v1  ;;  %v9395_v31 = vand.u32 4294901760, %v6944_v42  ;;  %v9403_v42 = vld [vmem:[#allocation39_spill] sm:$0xff]  ;;  %vm9405_vm7 = vmmov %vm9384_vm1 }
 0x12e   :  { %9390 = vst [vmem:[#allocation24_spill] sm:$0xff] %v7303_v43  ;;  %3928 = vmatprep.mubr.msk.f32.mxu1 %vm9394_vm3, %v9335_v23  ;;  %3892 = vmatprep.mubr.msk.f32.mxu0 %vm112_vm8, %v9335_v23  ;;  %v9396_v13 = vand.u32 4294901760, %v6955_v14  ;;  %v9398_v28 = vand.u32 4294901760, %v6979_v22  ;;  %v9399_v60 = vand.u32 4294901760, %v6981_v38  ;;  %v5254_v16 = vpack.c.bf16 %v2486_v25, %v2479_v15  ;;  %vm9413_vm0 = vmmov %vm9392_vm2 }
 0x12f   :  { %5211 = vmatpush3.bf16.msra.mxu0 %v7297_v48  ;;  %5251 = vmatpush3.bf16.msra.mxu1 %v5250_v8  ;;  %v2493_v52 = vand.u32 4294901760, %v2492_v51  ;;  %v2500_v9 = vand.u32 4294901760, %v2499_v57  ;;  %vm9401_vm4 = vcmp.eq.s32.totalorder %v9393_v36, %v9342_v2  ;;  %v5256_v14 = vpack.c.bf16 %v2612_v7, %v2605_v46  ;;  %vm9416_vm2 = vmmov %vm9394_vm3  ;;  %v9438_v7 = vld [vmem:[#allocation48_spill] sm:$0xff] }
 0x130   :  { %v7333_v49 = vpack.c.bf16 %v9396_v13, %v9395_v31  ;;  %5213 = vmatprep.subr.bf16.mxu0 %v7303_v43  ;;  %v7340_v32 = vpack.c.bf16 %v9399_v60, %v9398_v28  ;;  %5253 = vmatprep.subr.bf16.mxu1 %v5252_v63  ;;  %vm9404_vm6 = vcmp.eq.s32.totalorder %v9403_v42, %v9337_v1  ;;  %v9406_v22 = vand.u32 4294901760, %v7012_v35  ;;  %v9430_v63 = vld [vmem:[#allocation44_spill] sm:$0xff]  ;;  %v9442_v13 = vld [vmem:[#allocation50_spill] sm:$0xff] }
 0x131   :  { %3929 = vmatmul.mubr.msk.f32.gmra.mrb[76].mxu1 %vm9401_vm4, %v9335_v23  ;;  %3893 = vmatmul.mubr.msk.f32.gmra.mrb[72].mxu0 %vm9402_vm5, %v9335_v23  ;;  %v9407_v38 = vand.u32 4294901760, %v7019_v6  ;;  %v9409_v25 = vand.u32 4294901760, %v7029_v44  ;;  %v9410_v8 = vand.u32 4294901760, %v7038_v41  ;;  %v5258_v50 = vpack.c.bf16 %v2500_v9, %v2493_v52  ;;  %v9414_v6 = vld [vmem:[#allocation41_spill] sm:$0xff] }
 0x132   :  { %9397 = vst [vmem:[#allocation55_spill] sm:$0xff] %v7333_v49  ;;  %9400 = vst [vmem:[#allocation56_spill] sm:$0xff] %v7340_v32  ;;  %3930 = vmatprep.mubr.msk.f32.mxu1 %vm9404_vm6, %v9335_v23  ;;  %3894 = vmatprep.mubr.msk.f32.mxu0 %vm9405_vm7, %v9335_v23  ;;  %vm9412_vm8 = vcmp.eq.s32.totalorder %v9403_v42, %v9342_v2  ;;  %vm9415_vm1 = vcmp.eq.s32.totalorder %v9414_v6, %v9337_v1  ;;  %v9417_v35 = vand.u32 4294901760, %v7058_v12  ;;  %v9424_v12 = vld [vmem:[#allocation43_spill] sm:$0xff]  ;;  %v9444_v28 = vmov 0.0  }
 0x133   :  { %5215 = vmatpush3.bf16.msra.mxu0 %v7333_v49  ;;  %v7363_v15 = vpack.c.bf16 %v9407_v38, %v9406_v22  ;;  %v7370_v11 = vpack.c.bf16 %v9410_v8, %v9409_v25  ;;  %5255 = vmatpush3.bf16.msra.mxu1 %v5254_v16  ;;  %v9418_v44 = vand.u32 4294901760, %v7072_v56  ;;  %v9420_v51 = vand.u32 4294901760, %v7090_v24  ;;  %v9446_v16 = vld [vmem:[#allocation52_spill] sm:$0xff] }
 0x134   :  { %5217 = vmatprep.subr.bf16.mxu0 %v7340_v32  ;;  %5257 = vmatprep.subr.bf16.mxu1 %v5256_v14  ;;  %v9421_v20 = vand.u32 4294901760, %v7092_v40  ;;  %vm9423_vm3 = vcmp.eq.s32.totalorder %v9414_v6, %v9342_v2  ;;  %vm9425_vm5 = vcmp.eq.s32.totalorder %v9424_v12, %v9337_v1  ;;  %v9426_v24 = vand.u32 4294901760, %v7127_v21  ;;  %v9448_v14 = vld [vmem:[#allocation54_spill] sm:$0xff] }
 0x135   :  { %9408 = vst [vmem:[#allocation57_spill] sm:$0xff] %v7363_v15  ;;  %9411 = vst [vmem:[#allocation58_spill] sm:$0xff] %v7370_v11  ;;  %3931 = vmatmul.mubr.msk.f32.gmra.mrb[78].mxu1 %vm9412_vm8, %v9335_v23  ;;  %3895 = vmatmul.mubr.msk.f32.gmra.mrb[74].mxu0 %vm9413_vm0, %v9335_v23  ;;  %v7393_v41 = vpack.c.bf16 %v9418_v44, %v9417_v35  ;;  %v9427_v56 = vand.u32 4294901760, %v7129_v55  ;;  %vm9429_vm7 = vcmp.eq.s32.totalorder %v9424_v12, %v9342_v2  ;;  %v9434_v55 = vld [vmem:[#allocation45_spill] sm:$0xff] }
 0x136   :  { %3932 = vmatprep.mubr.msk.f32.mxu1 %vm9415_vm1, %v9335_v23  ;;  %3896 = vmatprep.mubr.msk.f32.mxu0 %vm9416_vm2, %v9335_v23  ;;  %v7400_v57 = vpack.c.bf16 %v9421_v20, %v9420_v51  ;;  %vm9431_vm0 = vcmp.eq.s32.totalorder %v9430_v63, %v9337_v1  ;;  %v9432_v21 = vpack.c.bf16 %v6634_v37, %v6629_v33  ;;  %v7468_v46 = vadd.s32 384, %v9342_v2 }
 0x137   :  { %5219 = vmatpush3.bf16.msra.mxu0 %v7363_v15  ;;  %9419 = vst [vmem:[#allocation59_spill] sm:$0xff] %v7393_v41  ;;  %5259 = vmatpush3.bf16.msra.mxu1 %v5258_v50  ;;  %v7424_v40 = vpack.c.bf16 %v9427_v56, %v9426_v24  ;;  %vm9433_vm2 = vcmp.eq.s32.totalorder %v9430_v63, %v9342_v2  ;;  %v7489_v31 = vadd.s32 256, %v9342_v2 }
 0x138   :  { %5221 = vmatprep.subr.bf16.mxu0 %v7370_v11  ;;  %9422 = vst [vmem:[#allocation60_spill] sm:$0xff] %v7400_v57  ;;  %5293 = vmatprep.subr.bf16.mxu1 %v6761_v62  ;;  %9437 = vst [vmem:[#allocation62_spill] sm:$0xff] %v7468_v46 }
 0x139   :  { %3933 = vmatmul.mubr.msk.f32.gmra.mrb[80].mxu1 %vm9423_vm3, %v9335_v23  ;;  %3897 = vmatmul.mubr.msk.f32.gmra.mrb[76].mxu0 %vm9401_vm4, %v9335_v23  ;;  %9428 = vst [vmem:[#allocation61_spill] sm:$0xff] %v7424_v40  ;;  %vm9435_vm4 = vcmp.eq.s32.totalorder %v9434_v55, %v9337_v1  ;;  %9441 = vst [vmem:[#allocation63_spill] sm:$0xff] %v7489_v31 }
 0x13a   :  { %3934 = vmatprep.mubr.msk.f32.mxu1 %vm9425_vm5, %v9335_v23  ;;  %3898 = vmatprep.mubr.msk.f32.mxu0 %vm9404_vm6, %v9335_v23  ;;  %vm9436_vm6 = vcmp.eq.s32.totalorder %v9434_v55, %v9342_v2 }
 0x13b   :  { %5223 = vmatpush3.bf16.msra.mxu0 %v7393_v41 }
 0x13c   :  { %5225 = vmatprep.subr.bf16.mxu0 %v7400_v57 }
 0x13d   :  { %3935 = vmatmul.mubr.msk.f32.gmra.mrb[82].mxu1 %vm9429_vm7, %v9335_v23  ;;  %3899 = vmatmul.mubr.msk.f32.gmra.mrb[78].mxu0 %vm9412_vm8, %v9335_v23  ;;  %vm9439_vm8 = vmmov %vm9431_vm0 }
 0x13e   :  { %3936 = vmatprep.mubr.msk.f32.mxu1 %vm9431_vm0, %v9335_v23  ;;  %3900 = vmatprep.mubr.msk.f32.mxu0 %vm9415_vm1, %v9335_v23  ;;  %vm9440_vm0 = vcmp.eq.s32.totalorder %v9438_v7, %v9342_v2  ;;  %vm98_vm1 = vcmp.eq.s32.totalorder %v9336_v45, %v7468_v46 }
 0x13f   :  { %5227 = vmatpush3.bf16.msra.mxu0 %v7424_v40  ;;  %v3791_v60 = vsel %vm98_vm1, 1.0, %v9444_v28 }
 0x140   :  { %5261 = vmatprep.subr.bf16.mxu0 %v9432_v21  ;;  %v7525_v52 = vsub.f32 %v3791_v60, %v3791_v60 }
 0x141   :  { %3937 = vmatmul.mubr.msk.f32.gmra.mrb[84].mxu1 %vm9433_vm2, %v9335_v23  ;;  %3901 = vmatmul.mubr.msk.f32.gmra.mrb[80].mxu0 %vm9423_vm3, %v9335_v23  ;;  %vm9443_vm3 = vmmov %vm9435_vm4 }
 0x142   :  { %3938 = vmatprep.mubr.msk.f32.mxu1 %vm9435_vm4, %v9335_v23  ;;  %3902 = vmatprep.mubr.msk.f32.mxu0 %vm9425_vm5, %v9335_v23  ;;  %vm97_vm4 = vcmp.eq.s32.totalorder %v9336_v45, %v7489_v31  ;;  %vm9445_vm5 = vmmov %vm9436_vm6  ;;  %v9057_v38 = vand.u32 4294901760, %v7525_v52 }
 0x143   :  { %v3790_v9 = vsel %vm97_vm4, 1.0, %v9444_v28 }
 0x144   :  { %v7558_v25 = vsub.f32 %v3790_v9, %v3790_v9  ;;  %v2152_v51 = vsub.f32 %v7525_v52, %v9057_v38 }
 0x145   :  { %3939 = vmatmul.mubr.msk.f32.gmra.mrb[86].mxu1 %vm9436_vm6, %v9335_v23  ;;  %3903 = vmatmul.mubr.msk.f32.gmra.mrb[82].mxu0 %vm9429_vm7, %v9335_v23  ;;  %vm102_vm6 = vcmp.eq.s32.totalorder %v9344_v61, %v7468_v46  ;;  %vm101_vm7 = vcmp.eq.s32.totalorder %v9344_v61, %v7489_v31  ;;  %v9456_v61 = vld [vmem:[#allocation28_spill] sm:$0xff] }
 0x146   :  { %3940 = vmatprep.mubr.msk.f32.mxu1 %vm144_vm9, %v9335_v23  ;;  %3904 = vmatprep.mubr.msk.f32.mxu0 %vm9439_vm8, %v9335_v23  ;;  %v3795_v22 = vsel %vm102_vm6, 1.0, %v9444_v28  ;;  %vm106_vm8 = vcmp.eq.s32.totalorder %v9354_v4, %v7468_v46  ;;  %v3794_v8 = vsel %vm101_vm7, 1.0, %v9444_v28  ;;  %v9059_v24 = vand.u32 4294901760, %v7558_v25 }
 0x147   :  { %v7568_v50 = vsub.f32 %v3795_v22, %v3795_v22  ;;  %v3799_v35 = vsel %vm106_vm8, 1.0, %v9444_v28  ;;  %v7590_v44 = vsub.f32 %v3794_v8, %v3794_v8  ;;  %v2153_v9 = vand.u32 4294901760, %v2152_v51 }
 0x148   :  { %v7595_v20 = vsub.f32 %v3799_v35, %v3799_v35  ;;  %v2158_v35 = vsub.f32 %v7558_v25, %v9059_v24 }
 0x149   :  { %3941 = vmatmul.mubr.msk.f32.gmra.mrb[88].mxu1 %vm9440_vm0, %v9335_v23  ;;  %3905 = vmatmul.mubr.msk.f32.gmra.mrb[84].mxu0 %vm9433_vm2, %v9335_v23  ;;  %v9058_v60 = vand.u32 4294901760, %v7568_v50  ;;  %v9060_v22 = vand.u32 4294901760, %v7590_v44  ;;  %vm9090_vm2 = vcmp.eq.s32.totalorder %v9393_v36, %v7468_v46 }
 0x14a   :  { %3942 = vmatprep.mubr.msk.f32.mxu1 %vm148_vm11, %v9335_v23  ;;  %3906 = vmatprep.mubr.msk.f32.mxu0 %vm9443_vm3, %v9335_v23  ;;  %v2159_v24 = vand.u32 4294901760, %v2158_v35  ;;  %vm9095_vm3 = vcmp.eq.s32.totalorder %v9393_v36, %v7489_v31 }
 0x14b   :  { %v2167_v1 = vsub.f32 %v7568_v50, %v9058_v60  ;;  %v2173_v60 = vsub.f32 %v7590_v44, %v9060_v22  ;;  %v9452_v22 = vand.u32 4294901760, %v7595_v20 }
 0x14d   :  { %3943 = vmatmul.mubr.msk.f32.gmra.mrb[90].mxu1 %vm147_vm14, %v9335_v23  ;;  %3907 = vmatmul.mubr.msk.f32.gmra.mrb[86].mxu0 %vm9445_vm5, %v9335_v23  ;;  %v2182_v35 = vsub.f32 %v7595_v20, %v9452_v22  ;;  %v9453_v22 = vpack.c.bf16 %v6755_v47, %v6750_v17  ;;  %vm9099_vm5 = vcmp.eq.s32.totalorder %v9403_v42, %v7468_v46 }
 0x14e   :  { %3944 = vmatprep.mubr.msk.f32.mxu1 %vm152_vm13, %v9335_v23  ;;  %3908 = vmatprep.mubr.msk.f32.mxu0 %vm144_vm9, %v9335_v23  ;;  %vm9447_vm9 = vmmov %vm9440_vm0  ;;  %vm110_vm0 = vcmp.eq.s32.totalorder %v9364_v53, %v7468_v46 }
 0x14f   :  { %v3803_v21 = vsel %vm110_vm0, 1.0, %v9444_v28 }
 0x150   :  { %v7634_v5 = vsub.f32 %v3803_v21, %v3803_v21 }
 0x151   :  { %3945 = vmatmul.mubr.msk.f32.gmra.mrb[92].mxu1 %vm151_vm10, %v9335_v23  ;;  %3909 = vmatmul.mubr.msk.f32.gmra.mrb[88].mxu0 %vm9447_vm9, %v9335_v23  ;;  %vm9105_vm9 = vcmp.eq.s32.totalorder %v9403_v42, %v7489_v31 }
 0x152   :  { %3946 = vmatprep.mubr.msk.f32.mxu1 %vm156_vm15, %v9335_v23  ;;  %3910 = vmatprep.mubr.msk.f32.mxu0 %vm148_vm11, %v9335_v23  ;;  %vm105_vm11 = vcmp.eq.s32.totalorder %v9354_v4, %v7489_v31  ;;  %9449 = vst [vmem:[#allocation64_spill] sm:$0xff] %v7634_v5  ;;  %v9455_v4 = vld [vmem:[#allocation33_spill] sm:$0xff] }
 0x153   :  { %v3798_v56 = vsel %vm105_vm11, 1.0, %v9444_v28  ;;  %v9457_v45 = vpack.c.bf16 %v9455_v4, %v9456_v61 }
 0x154   :  { %v7629_v8 = vsub.f32 %v3798_v56, %v3798_v56 }
 0x155   :  { %3947 = vmatmul.mubr.msk.f32.gmra.mrb[94].mxu1 %vm155_vm12, %v9335_v23  ;;  %3911 = vmatmul.mubr.msk.f32.gmra.mrb[90].mxu0 %vm147_vm14, %v9335_v23  ;;  %vm114_vm14 = vcmp.eq.s32.totalorder %v9371_v30, %v7468_v46 }
 0x156   :  { %3948 = vmatprep.mubr.msk.f32.mxu1 %vm98_vm1, %v9335_v23  ;;  %3912 = vmatprep.mubr.msk.f32.mxu0 %vm152_vm13, %v9335_v23  ;;  %vm109_vm13 = vcmp.eq.s32.totalorder %v9364_v53, %v7489_v31  ;;  %v3807_v51 = vsel %vm114_vm14, 1.0, %v9444_v28 }
 0x157   :  { %v3802_v38 = vsel %vm109_vm13, 1.0, %v9444_v28  ;;  %v7671_v2 = vsub.f32 %v3807_v51, %v3807_v51  ;;  %v2174_v51 = vand.u32 4294901760, %v2173_v60 }
 0x158   :  { %v7663_v21 = vsub.f32 %v3802_v38, %v3802_v38 }
 0x159   :  { %3949 = vmatmul.mubr.msk.f32.vlgmr.msra.gmra.mrb[96].mxu1 %vm97_vm4, %v9335_v23  ;;  %3913 = vmatmul.mubr.msk.f32.gmra.mrb[92].mxu0 %vm151_vm10, %v9335_v23  ;;  %vm9072_vm10 = vcmp.eq.s32.totalorder %v9371_v30, %v7489_v31  ;;  %9451 = vst [vmem:[#allocation66_spill] sm:$0xff] %v7671_v2 }
 0x15a   :  { %3950 = vmatprep.mubr.msk.f32.mxu1 %vm102_vm6, %v9335_v23  ;;  %3914 = vmatprep.mubr.msk.f32.mxu0 %vm156_vm15, %v9335_v23  ;;  %9450 = vst [vmem:[#allocation65_spill] sm:$0xff] %v7663_v21  ;;  %vm9081_vm15 = vcmp.eq.s32.totalorder %v9383_v27, %v7468_v46  ;;  %v3806_v56 = vsel %vm9072_vm10, 1.0, %v9444_v28  ;;  %v9073_v38 = vand.u32 4294901760, %v7663_v21 }
 0x15b   :  { %5295 = vmatpush3.bf16.msra.mxu1 %v6862_v34 }
 0x15c   :  { %5297 = vmatprep.subr.bf16.mxu1 %v6892_v10  ;;  %v2203_v53 = vsub.f32 %v7663_v21, %v9073_v38  ;;  %v9471_v38 = vld [vmem:[#allocation13_spill] sm:$0xff] }
 0x15d   :  { %3951 = vmatmul.mubr.msk.f32.gmra.mrb[98].mxu1 %vm101_vm7, %v9335_v23  ;;  %3915 = vmatmul.mubr.msk.f32.gmra.mrb[94].mxu0 %vm155_vm12, %v9335_v23  ;;  %vm9082_vm12 = vcmp.eq.s32.totalorder %v9383_v27, %v7489_v31 }
 0x15e   :  { %3952 = vmatprep.mubr.msk.f32.mxu1 %vm106_vm8, %v9335_v23  ;;  %2154 = vmatprep.mubr.f32.mxu0 %v2153_v9  ;;  %v2168_v9 = vand.u32 4294901760, %v2167_v1  ;;  %v3811_v1 = vsel %vm9081_vm15, 1.0, %v9444_v28  ;;  %v3810_v47 = vsel %vm9082_vm12, 1.0, %v9444_v28 }
 0x15f   :  { %5299 = vmatpush3.bf16.msra.mxu1 %v6918_v18  ;;  %v7723_v60 = vsub.f32 %v3811_v1, %v3811_v1  ;;  %v9462_v1 = vld [vmem:[#allocation8_spill] sm:$0xff] }
 0x160   :  { %5301 = vmatprep.subr.bf16.mxu1 %v6951_v0  ;;  %v9458_v0 = vand.u32 4294901760, %v7629_v8 }
 0x161   :  { %3953 = vmatmul.mubr.msk.f32.gmra.mrb[100].mxu1 %vm105_vm11, %v9335_v23  ;;  %2160 = vmatmul.mubr.f32.vlgmr.msra.gmra.mrb[96].mxu0 %v2159_v24  ;;  %v7702_v24 = vsub.f32 %v3806_v56, %v3806_v56  ;;  %9459 = vst [vmem:[#allocation33_spill] sm:$0xff] %v7723_v60 }
 0x162   :  { %3954 = vmatprep.mubr.msk.f32.mxu1 %vm110_vm0, %v9335_v23  ;;  %5263 = vmatpush3.bf16.msra.mxu0 %v9453_v22  ;;  %v2188_v18 = vsub.f32 %v7629_v8, %v9458_v0  ;;  %v9460_v0 = vand.u32 4294901760, %v7634_v5  ;;  %v3815_v22 = vsel %vm9090_vm2, 1.0, %v9444_v28 }
 0x163   :  { %2169 = vmatprep.mubr.f32.mxu0 %v2168_v9  ;;  %9454 = vst [vmem:[#allocation67_spill] sm:$0xff] %v7702_v24  ;;  %5265 = vmatprep.subr.bf16.mxu0 %v9457_v45  ;;  %v2183_v45 = vand.u32 4294901760, %v2182_v35  ;;  %v9461_v35 = vld [vmem:[#allocation9_spill] sm:$0xff]  ;;  %v7742_v9 = vsub.f32 %v3810_v47, %v3810_v47 }
 0x164   :  { %5303 = vmatpush3.bf16.msra.mxu1 %v7243_v54  ;;  %v2197_v56 = vsub.f32 %v7634_v5, %v9460_v0  ;;  %v9463_v0 = vpack.c.bf16 %v9461_v35, %v9462_v1  ;;  %v7751_v54 = vsub.f32 %v3815_v22, %v3815_v22  ;;  %v9467_v35 = vld [vmem:[#allocation32_spill] sm:$0xff]  ;;  %v3819_v22 = vsel %vm9099_vm5, 1.0, %v9444_v28 }
 0x165   :  { %3955 = vmatmul.mubr.msk.f32.gmra.mrb[102].mxu1 %vm109_vm13, %v9335_v23  ;;  %5305 = vmatprep.subr.bf16.mxu1 %v7249_v58  ;;  %9464 = vst [vmem:[#allocation28_spill] sm:$0xff] %v7742_v9  ;;  %v2189_v58 = vand.u32 4294901760, %v2188_v18  ;;  %v7788_v21 = vsub.f32 %v3819_v22, %v3819_v22  ;;  %v9481_v27 = vand.u32 4294901760, %v7742_v9 }
 0x166   :  { %2175 = vmatmul.mubr.f32.gmra.mrb[98].mxu0 %v2174_v51  ;;  %3956 = vmatprep.mubr.msk.f32.mxu1 %vm114_vm14, %v9335_v23  ;;  %v3814_v51 = vsel %vm9095_vm3, 1.0, %v9444_v28  ;;  %9465 = vst [vmem:[#allocation68_spill] sm:$0xff] %v7751_v54  ;;  %v2198_v18 = vand.u32 4294901760, %v2197_v56  ;;  %v2204_v56 = vand.u32 4294901760, %v2203_v53  ;;  %v9476_v53 = vld [vmem:[#allocation14_spill] sm:$0xff] }
 0x167   :  { %2184 = vmatprep.mubr.f32.mxu0 %v2183_v45  ;;  %5267 = vmatpush3.bf16.msra.mxu0 %v9463_v0  ;;  %v9466_v45 = vand.u32 4294901760, %v7671_v2  ;;  %v9468_v0 = vld [vmem:[#allocation34_spill] sm:$0xff]  ;;  %9475 = vst [vmem:[#allocation13_spill] sm:$0xff] %v7788_v21 }
 0x168   :  { %v9469_v47 = vpack.c.bf16 %v9467_v35, %v9468_v0  ;;  %5307 = vmatpush3.bf16.msra.mxu1 %v7297_v48  ;;  %v9474_v48 = vand.u32 4294901760, %v7702_v24 }
 0x169   :  { %v2212_v5 = vsub.f32 %v7671_v2, %v9466_v45  ;;  %3957 = vmatmul.mubr.msk.f32.gmra.mrb[104].mxu1 %vm9072_vm10, %v9335_v23  ;;  %5309 = vmatprep.subr.bf16.mxu1 %v7303_v43  ;;  %vm9108_vm10 = vcmp.eq.s32.totalorder %v9414_v6, %v7468_v46  ;;  %v9472_v45 = vld [vmem:[#allocation10_spill] sm:$0xff] }
 0x16a   :  { %5269 = vmatprep.subr.bf16.mxu0 %v9469_v47  ;;  %2190 = vmatmul.mubr.f32.gmra.mrb[100].mxu0 %v2189_v58  ;;  %v7777_v47 = vsub.f32 %v3814_v51, %v3814_v51  ;;  %v9473_v1 = vpack.c.bf16 %v9471_v38, %v9472_v45  ;;  %v4156_v43 = vpop.f32.mrb[0].mxu1  ;;  %v2218_v2 = vsub.f32 %v7702_v24, %v9474_v48  ;;  %v3818_v51 = vsel %vm9105_vm9, 1.0, %v9444_v28 }
 0x16b   :  { %3958 = vmatprep.mubr.msk.f32.mxu1 %vm9081_vm15, %v9335_v23  ;;  %2199 = vmatprep.mubr.f32.mxu0 %v2198_v18  ;;  %v2213_v58 = vand.u32 4294901760, %v2212_v5  ;;  %v9477_v18 = vld [vmem:[#allocation23_spill] sm:$0xff]  ;;  %v9479_v5 = vand.u32 4294901760, %v7723_v60  ;;  %v3823_v22 = vsel %vm9108_vm10, 1.0, %v9444_v28  ;;  %vm9111_vm15 = vcmp.eq.s32.totalorder %v9414_v6, %v7489_v31 }
 0x16c   :  { %9470 = vst [vmem:[#allocation34_spill] sm:$0xff] %v7777_v47  ;;  %5271 = vmatpush3.bf16.msra.mxu0 %v9473_v1  ;;  %v9478_v35 = vpack.c.bf16 %v9476_v53, %v9477_v18  ;;  %5311 = vmatpush3.bf16.msra.mxu1 %v7333_v49  ;;  %v4157_v1 = vpop.f32.mrb[1].mxu1  ;;  %v7822_v30 = vsub.f32 %v3818_v51, %v3818_v51  ;;  %v9485_v51 = vld [vmem:[#allocation40_spill] sm:$0xff] }
 0x16d   :  { %3959 = vmatmul.mubr.msk.f32.gmra.mrb[106].mxu1 %vm9082_vm12, %v9335_v23  ;;  %v2227_v48 = vsub.f32 %v7723_v60, %v9479_v5  ;;  %5313 = vmatprep.subr.bf16.mxu1 %v7340_v32  ;;  %vm9117_vm12 = vcmp.eq.s32.totalorder %v9424_v12, %v7468_v46  ;;  %v2233_v32 = vsub.f32 %v7742_v9, %v9481_v27  ;;  %v2219_v60 = vand.u32 4294901760, %v2218_v2  ;;  %v9486_v53 = vld [vmem:[#allocation16_spill] sm:$0xff] }
 0x16e   :  { %5273 = vmatprep.subr.bf16.mxu0 %v9478_v35  ;;  %v7813_v35 = vadd.f32 %v4157_v1, %v4156_v43  ;;  %2205 = vmatmul.mubr.f32.gmra.mrb[102].mxu0 %v2204_v56  ;;  %9480 = vst [vmem:[#allocation10_spill] sm:$0xff] %v7822_v30  ;;  %v9482_v43 = vld [vmem:[#allocation12_spill] sm:$0xff]  ;;  %v9483_v1 = vld [vmem:[#allocation11_spill] sm:$0xff]  ;;  %v4159_v49 = vpop.f32.mrb[2].mxu1  ;;  %v7830_v24 = vsub.f32 %v3823_v22, %v3823_v22  ;;  %v3822_v5 = vsel %vm9111_vm15, 1.0, %v9444_v28  ;;  %v9488_v22 = vand.u32 4294901760, %v7751_v54 }
 0x16f   :  { %3960 = vmatprep.mubr.msk.f32.mxu1 %vm9090_vm2, %v9335_v23  ;;  %2214 = vmatprep.mubr.f32.mxu0 %v2213_v58  ;;  %v9484_v56 = vpack.c.bf16 %v9482_v43, %v9483_v1  ;;  %v9487_v18 = vpack.c.bf16 %v9485_v51, %v9486_v53  ;;  %v4160_v27 = vpop.f32.mrb[3].mxu1  ;;  %v2228_v2 = vand.u32 4294901760, %v2227_v48  ;;  %v3827_v58 = vsel %vm9117_vm12, 1.0, %v9444_v28 }
 0x170   :  { %5315 = vmatpush3.bf16.msra.mxu1 %v7363_v15  ;;  %vm9116_vm2 = vcmp.eq.s32.totalorder %v9424_v12, %v7489_v31  ;;  %v9489_v48 = vand.u32 4294901760, %v7777_v47  ;;  %v2234_v36 = vand.u32 4294901760, %v2233_v32  ;;  %v7864_v15 = vsub.f32 %v3822_v5, %v3822_v5  ;;  %v9494_v5 = vld [vmem:[#allocation19_spill] sm:$0xff] }
 0x171   :  { %5275 = vmatpush3.bf16.msra.mxu0 %v9484_v56  ;;  %3961 = vmatmul.mubr.msk.f32.gmra.mrb[108].mxu1 %vm9095_vm3, %v9335_v23  ;;  %v2242_v56 = vsub.f32 %v7751_v54, %v9488_v22  ;;  %vm9118_vm3 = vcmp.eq.s32.totalorder %v9430_v63, %v7468_v46  ;;  %v7872_v9 = vsub.f32 %v3827_v58, %v3827_v58  ;;  %v9493_v51 = vand.u32 4294901760, %v7788_v21 }
 0x172   :  { %5277 = vmatprep.subr.bf16.mxu0 %v9487_v18  ;;  %5317 = vmatprep.subr.bf16.mxu1 %v7370_v11  ;;  %v7855_v18 = vadd.f32 %v4160_v27, %v4159_v49  ;;  %v2248_v22 = vsub.f32 %v7777_v47, %v9489_v48  ;;  %v9490_v49 = vld [vmem:[#allocation18_spill] sm:$0xff]  ;;  %v4162_v11 = vpop.f32.mrb[4].mxu1  ;;  %v3826_v32 = vsel %vm9116_vm2, 1.0, %v9444_v28  ;;  %v3831_v42 = vsel %vm9118_vm3, 1.0, %v9444_v28 }
 0x173   :  { %2220 = vmatmul.mubr.f32.gmra.mrb[104].mxu0 %v2219_v60  ;;  %3962 = vmatprep.mubr.msk.f32.mxu1 %vm9099_vm5, %v9335_v23  ;;  %v9491_v60 = vld [vmem:[#allocation17_spill] sm:$0xff]  ;;  %v2257_v48 = vsub.f32 %v7788_v21, %v9493_v51  ;;  %vm9119_vm5 = vcmp.eq.s32.totalorder %v9430_v63, %v7489_v31  ;;  %v4076_v58 = vpop.f32.mrb[0].mxu0  ;;  %v2243_v51 = vand.u32 4294901760, %v2242_v56  ;;  %v9498_v21 = vld [vmem:[#allocation22_spill] sm:$0xff] }
 0x174   :  { %2229 = vmatprep.mubr.f32.mxu0 %v2228_v2  ;;  %v9492_v27 = vpack.c.bf16 %v9490_v49, %v9491_v60  ;;  %v9495_v2 = vld [vmem:[#allocation42_spill] sm:$0xff]  ;;  %5319 = vmatpush3.bf16.msra.mxu1 %v7393_v41  ;;  %v4077_v49 = vpop.f32.mrb[1].mxu0 }
 0x175   :  { %v9496_v54 = vpack.c.bf16 %v9494_v5, %v9495_v2  ;;  %3963 = vmatmul.mubr.msk.f32.gmra.mrb[110].mxu1 %vm9105_vm9, %v9335_v23  ;;  %5321 = vmatprep.subr.bf16.mxu1 %v7400_v57  ;;  %vm9122_vm9 = vcmp.eq.s32.totalorder %v9434_v55, %v7468_v46  ;;  %v4078_v56 = vadd.f32 %v4077_v49, %v4076_v58  ;;  %v9499_v57 = vld [vmem:[#allocation21_spill] sm:$0xff]  ;;  %v2258_v2 = vand.u32 4294901760, %v2257_v48  ;;  %v9501_v58 = vld [vmem:[#allocation46_spill] sm:$0xff] }
 0x176   :  { %5279 = vmatpush3.bf16.msra.mxu0 %v9492_v27  ;;  %v4163_v27 = vpop.f32.mrb[5].mxu1  ;;  %3964 = vmatprep.mubr.msk.f32.mxu1 %vm9108_vm10, %v9335_v23  ;;  %v9500_v41 = vpack.c.bf16 %v9498_v21, %v9499_v57  ;;  %vm9125_vm10 = vcmp.eq.s32.totalorder %v9434_v55, %v7489_v31  ;;  %v7932_v48 = vsub.f32 %v3831_v42, %v3831_v42 }
 0x177   :  { %5281 = vmatprep.subr.bf16.mxu0 %v9496_v54  ;;  %v7893_v47 = vadd.f32 %v4163_v27, %v4162_v11  ;;  %2235 = vmatmul.mubr.f32.gmra.mrb[106].mxu0 %v2234_v36  ;;  %v2249_v54 = vand.u32 4294901760, %v2248_v22  ;;  %v7905_v11 = vsub.f32 %v3826_v32, %v3826_v32  ;;  %v9497_v36 = vand.u32 4294901760, %v7822_v30  ;;  %v4165_v5 = vpop.f32.mrb[6].mxu1 }
 0x178   :  { %2244 = vmatprep.mubr.f32.mxu0 %v2243_v51  ;;  %v3830_v22 = vsel %vm9119_vm5, 1.0, %v9444_v28  ;;  %v9502_v51 = vld [vmem:[#allocation20_spill] sm:$0xff]  ;;  %5323 = vmatpush3.bf16.msra.mxu1 %v7424_v40  ;;  %v4079_v21 = vpop.f32.mrb[2].mxu0  ;;  %v9505_v32 = vand.u32 4294901760, %v7830_v24 }
 0x179   :  { %v2263_v27 = vsub.f32 %v7822_v30, %v9497_v36  ;;  %v9503_v36 = vpack.c.bf16 %v9501_v58, %v9502_v51  ;;  %v7926_v30 = vadd.f32 %v7813_v35, %v4078_v56  ;;  %3965 = vmatmul.mubr.msk.f32.gmra.mrb[112].mxu1 %vm9111_vm15, %v9335_v23  ;;  %5357 = vmatprep.subr.bf16.mxu1 %v6761_v62  ;;  %v4080_v56 = vpop.f32.mrb[3].mxu0  ;;  %v3834_v62 = vsel %vm9125_vm10, 1.0, %v9444_v28 }
 0x17a   :  { %5283 = vmatpush3.bf16.msra.mxu0 %v9500_v41  ;;  %v4166_v41 = vpop.f32.mrb[7].mxu1  ;;  %v2272_v49 = vsub.f32 %v7830_v24, %v9505_v32  ;;  %3966 = vmatprep.mubr.msk.f32.mxu1 %vm9117_vm12, %v9335_v23  ;;  %v7948_v42 = vsub.f32 %v3830_v22, %v3830_v22  ;;  %vm9127_vm15 = vcmp.eq.s32.totalorder %v9438_v7, %v7468_v46  ;;  %v9507_v22 = vand.u32 4294901760, %v7864_v15 }
 0x17b   :  { %5285 = vmatprep.subr.bf16.mxu0 %v9503_v36  ;;  %9504 = vst [vmem:[#allocation12_spill] sm:$0xff] %v7926_v30  ;;  %v3835_v36 = vsel %vm9122_vm9, 1.0, %v9444_v28  ;;  %v7942_v35 = vadd.f32 %v4166_v41, %v4165_v5  ;;  %2250 = vmatmul.mubr.f32.gmra.mrb[108].mxu0 %v2249_v54  ;;  %v4081_v32 = vadd.f32 %v4080_v56, %v4079_v21  ;;  %v2264_v6 = vand.u32 4294901760, %v2263_v27  ;;  %v4168_v41 = vpop.f32.mrb[8].mxu1 }
 0x17c   :  { %2259 = vmatprep.mubr.f32.mxu0 %v2258_v2  ;;  %v9506_v54 = vpack.c.bf16 %v7161_v39, %v7156_v29  ;;  %v2278_v30 = vsub.f32 %v7864_v15, %v9507_v22  ;;  %v7963_v40 = vsub.f32 %v3835_v36, %v3835_v36  ;;  %v9509_v21 = vand.u32 4294901760, %v7872_v9  ;;  %v4082_v29 = vpop.f32.mrb[4].mxu0  ;;  %v4169_v22 = vpop.f32.mrb[9].mxu1 }
 0x17d   :  { %v9510_v27 = vpack.c.bf16 %v7179_v3, %v7174_v59  ;;  %v9511_v56 = vand.u32 4294901760, %v6629_v33  ;;  %v9512_v5 = vand.u32 4294901760, %v6634_v37  ;;  %v7976_v39 = vadd.f32 %v7855_v18, %v4081_v32  ;;  %3967 = vmatmul.mubr.msk.f32.gmra.mrb[114].mxu1 %vm9116_vm2, %v9335_v23 }
 0x17e   :  { %5287 = vmatpush3.bf16.msra.mxu0 %v9506_v54  ;;  %9508 = vst [vmem:[#allocation11_spill] sm:$0xff] %v7963_v40  ;;  %v2287_v2 = vsub.f32 %v7872_v9, %v9509_v21  ;;  %v2273_v36 = vand.u32 4294901760, %v2272_v49  ;;  %v3839_v21 = vsel %vm9127_vm15, 1.0, %v9444_v28  ;;  %v7987_v37 = vadd.f32 %v4169_v22, %v4168_v41  ;;  %3968 = vmatprep.mubr.msk.f32.mxu1 %vm9118_vm3, %v9335_v23 }
 0x17f   :  { %5289 = vmatprep.subr.bf16.mxu0 %v9510_v27  ;;  %v5324_v54 = vpack.c.bf16 %v9512_v5, %v9511_v56  ;;  %v4083_v5 = vpop.f32.mrb[5].mxu0  ;;  %2265 = vmatmul.mubr.f32.gmra.mrb[110].mxu0 %v2264_v6  ;;  %v7993_v18 = vsub.f32 %v3834_v62, %v3834_v62  ;;  %vm145_vm2 = vcmp.eq.s32.totalorder %v9438_v7, %v7489_v31  ;;  %v9514_v27 = vand.u32 4294901760, %v7905_v11  ;;  %v4171_v62 = vpop.f32.mrb[10].mxu1 }
 0x180   :  { %v4084_v32 = vadd.f32 %v4083_v5, %v4082_v29  ;;  %2274 = vmatprep.mubr.f32.mxu0 %v2273_v36  ;;  %vm150_vm12 = vcmp.eq.s32.totalorder %v9442_v13, %v7468_v46  ;;  %v9515_v6 = vpack.c.bf16 %v7214_v26, %v7209_v19  ;;  %v2279_v56 = vand.u32 4294901760, %v2278_v30  ;;  %v4085_v36 = vpop.f32.mrb[6].mxu0  ;;  %v4172_v5 = vpop.f32.mrb[11].mxu1 }
 0x181   :  { %9513 = vst [vmem:[#allocation16_spill] sm:$0xff] %v7993_v18  ;;  %v2293_v41 = vsub.f32 %v7905_v11, %v9514_v27  ;;  %v2288_v22 = vand.u32 4294901760, %v2287_v2  ;;  %v8006_v33 = vsub.f32 %v3839_v21, %v3839_v21  ;;  %3969 = vmatmul.mubr.msk.f32.gmra.mrb[116].mxu1 %vm9119_vm5, %v9335_v23  ;;  %v9517_v27 = vand.u32 4294901760, %v7932_v48 }
 0x182   :  { %5291 = vmatpush3.bf16.msra.mxu0 %v9515_v6  ;;  %v8010_v29 = vadd.f32 %v7893_v47, %v4084_v32  ;;  %v3838_v2 = vsel %vm145_vm2, 1.0, %v9444_v28  ;;  %vm149_vm3 = vcmp.eq.s32.totalorder %v9442_v13, %v7489_v31  ;;  %v4173_v47 = vadd.f32 %v4172_v5, %v4171_v62  ;;  %3970 = vmatprep.mubr.msk.f32.mxu1 %vm9122_vm9, %v9335_v23 }
 0x183   :  { %9516 = vst [vmem:[#allocation17_spill] sm:$0xff] %v8006_v33  ;;  %5325 = vmatprep.subr.bf16.mxu0 %v5324_v54  ;;  %v2302_v30 = vsub.f32 %v7932_v48, %v9517_v27  ;;  %v4086_v54 = vpop.f32.mrb[7].mxu0  ;;  %2280 = vmatmul.mubr.f32.gmra.mrb[112].mxu0 %v2279_v56  ;;  %v9518_v21 = vand.u32 4294901760, %v7948_v42  ;;  %v3843_v6 = vsel %vm150_vm12, 1.0, %v9444_v28  ;;  %v2294_v49 = vand.u32 4294901760, %v2293_v41  ;;  %v4174_v56 = vpop.f32.mrb[12].mxu1 }
 0x184   :  { %v4087_v27 = vadd.f32 %v4086_v54, %v4085_v36  ;;  %2289 = vmatprep.mubr.f32.mxu0 %v2288_v22  ;;  %vm154_vm5 = vcmp.eq.s32.totalorder %v9446_v16, %v7468_v46  ;;  %v8039_v5 = vsub.f32 %v3838_v2, %v3838_v2  ;;  %v9519_v63 = vand.u32 4294901760, %v7963_v40  ;;  %v4088_v36 = vpop.f32.mrb[8].mxu0  ;;  %v4175_v54 = vpop.f32.mrb[13].mxu1 }
 0x185   :  { %v2308_v32 = vsub.f32 %v7948_v42, %v9518_v21  ;;  %v3842_v12 = vsel %vm149_vm3, 1.0, %v9444_v28  ;;  %3971 = vmatmul.mubr.msk.f32.gmra.mrb[118].mxu1 %vm9125_vm10, %v9335_v23  ;;  %v2303_v2 = vand.u32 4294901760, %v2302_v30  ;;  %v8056_v62 = vsub.f32 %v3843_v6, %v3843_v6 }
 0x186   :  { %v2317_v21 = vsub.f32 %v7963_v40, %v9519_v63  ;;  %v8050_v41 = vadd.f32 %v7942_v35, %v4087_v27  ;;  %vm153_vm9 = vcmp.eq.s32.totalorder %v9446_v16, %v7489_v31  ;;  %v4176_v63 = vadd.f32 %v4175_v54, %v4174_v56  ;;  %v4089_v40 = vpop.f32.mrb[9].mxu0  ;;  %3972 = vmatprep.mubr.msk.f32.mxu1 %vm9127_vm15, %v9335_v23 }
 0x187   :  { %2295 = vmatmul.mubr.f32.gmra.mrb[114].mxu0 %v2294_v49  ;;  %v2309_v35 = vand.u32 4294901760, %v2308_v32  ;;  %v3847_v27 = vsel %vm154_vm5, 1.0, %v9444_v28  ;;  %v4090_v30 = vadd.f32 %v4089_v40, %v4088_v36  ;;  %v8068_v6 = vsub.f32 %v3842_v12, %v3842_v12  ;;  %v4177_v49 = vpop.f32.mrb[14].mxu1 }
 0x188   :  { %9520 = vst [vmem:[#allocation21_spill] sm:$0xff] %v8050_v41  ;;  %2304 = vmatprep.mubr.f32.mxu0 %v2303_v2  ;;  %v9521_v22 = vand.u32 4294901760, %v7993_v18  ;;  %vm158_vm10 = vcmp.eq.s32.totalorder %v9448_v14, %v7468_v46  ;;  %v2318_v54 = vand.u32 4294901760, %v2317_v21  ;;  %v9522_v32 = vand.u32 4294901760, %v8006_v33  ;;  %v4178_v2 = vpop.f32.mrb[15].mxu1 }
 0x189   :  { %v3846_v40 = vsel %vm153_vm9, 1.0, %v9444_v28  ;;  %v8084_v36 = vadd.f32 %v7987_v37, %v4090_v30  ;;  %3973 = vmatmul.mubr.msk.f32.gmra.mrb[120].mxu1 %vm145_vm2, %v9335_v23  ;;  %v8090_v21 = vsub.f32 %v3847_v27, %v3847_v27  ;;  %vm157_vm15 = vcmp.eq.s32.totalorder %v9448_v14, %v7489_v31 }
 0x18a   :  { %v2323_v56 = vsub.f32 %v7993_v18, %v9521_v22  ;;  %v2332_v55 = vsub.f32 %v8006_v33, %v9522_v32  ;;  %v4091_v22 = vpop.f32.mrb[10].mxu0  ;;  %v4179_v33 = vadd.f32 %v4178_v2, %v4177_v49  ;;  %3974 = vmatprep.mubr.msk.f32.mxu1 %vm150_vm12, %v9335_v23  ;;  %v3851_v37 = vsel %vm158_vm10, 1.0, %v9444_v28 }
 0x18b   :  { %9523 = vst [vmem:[#allocation46_spill] sm:$0xff] %v8084_v36  ;;  %v4092_v18 = vpop.f32.mrb[11].mxu0  ;;  %2310 = vmatmul.mubr.f32.gmra.mrb[116].mxu0 %v2309_v35  ;;  %v8103_v32 = vsub.f32 %v3846_v40, %v3846_v40  ;;  %v4180_v12 = vpop.f32.mrb[16].mxu1  ;;  %v9524_v49 = vand.u32 4294901760, %v8039_v5  ;;  %v3850_v2 = vsel %vm157_vm15, 1.0, %v9444_v28  ;;  %v9526_v13 = vand.u32 4294901760, %v8068_v6 }
 0x18c   :  { %v4093_v27 = vadd.f32 %v4092_v18, %v4091_v22  ;;  %2319 = vmatprep.mubr.f32.mxu0 %v2318_v54  ;;  %v2324_v30 = vand.u32 4294901760, %v2323_v56  ;;  %v2333_v7 = vand.u32 4294901760, %v2332_v55  ;;  %v4094_v18 = vpop.f32.mrb[12].mxu0  ;;  %v4181_v54 = vpop.f32.mrb[17].mxu1  ;;  %v8119_v55 = vsub.f32 %v3851_v37, %v3851_v37 }
 0x18d   :  { %v2338_v35 = vsub.f32 %v8039_v5, %v9524_v49  ;;  %3975 = vmatmul.mubr.msk.f32.gmra.mrb[122].mxu1 %vm149_vm3, %v9335_v23  ;;  %v9525_v56 = vand.u32 4294901760, %v8056_v62  ;;  %v4182_v28 = vadd.f32 %v4181_v54, %v4180_v12  ;;  %v4095_v49 = vpop.f32.mrb[13].mxu0  ;;  %v8129_v37 = vsub.f32 %v3850_v2, %v3850_v2 }
 0x18e   :  { %v8113_v41 = vadd.f32 %v4173_v47, %v4093_v27  ;;  %3976 = vmatprep.mubr.msk.f32.mxu1 %vm154_vm5, %v9335_v23  ;;  %v4096_v47 = vadd.f32 %v4095_v49, %v4094_v18  ;;  %v9140_v18 = vand.u32 4294901760, %v8119_v55 }
 0x18f   :  { %v2347_v40 = vsub.f32 %v8056_v62, %v9525_v56  ;;  %2325 = vmatmul.mubr.f32.gmra.mrb[118].mxu0 %v2324_v30  ;;  %v4183_v27 = vpop.f32.mrb[18].mxu1  ;;  %v2339_v36 = vand.u32 4294901760, %v2338_v35  ;;  %v2353_v56 = vsub.f32 %v8068_v6, %v9526_v13  ;;  %v9528_v35 = vand.u32 4294901760, %v8090_v21 }
 0x190   :  { %2334 = vmatprep.mubr.f32.mxu0 %v2333_v7  ;;  %v8135_v12 = vadd.f32 %v4176_v63, %v4096_v47  ;;  %v4097_v30 = vpop.f32.mrb[14].mxu0  ;;  %v4184_v54 = vpop.f32.mrb[19].mxu1 }
 0x191   :  { %3977 = vmatmul.mubr.msk.f32.gmra.mrb[124].mxu1 %vm153_vm9, %v9335_v23  ;;  %v2348_v7 = vand.u32 4294901760, %v2347_v40  ;;  %v2362_v2 = vsub.f32 %v8090_v21, %v9528_v35  ;;  %v4185_v49 = vadd.f32 %v4184_v54, %v4183_v27  ;;  %v4098_v13 = vpop.f32.mrb[15].mxu0  ;;  %v2354_v22 = vand.u32 4294901760, %v2353_v56 }
 0x192   :  { %9527 = vst [vmem:[#allocation20_spill] sm:$0xff] %v8135_v12  ;;  %3978 = vmatprep.mubr.msk.f32.mxu1 %vm158_vm10, %v9335_v23  ;;  %v4099_v63 = vadd.f32 %v4098_v13, %v4097_v30  ;;  %v9529_v40 = vand.u32 4294901760, %v8103_v32  ;;  %v2382_v35 = vand.u32 4294901760, %v8129_v37  ;;  %v2377_v56 = vsub.f32 %v8119_v55, %v9140_v18 }
 0x193   :  { %2340 = vmatmul.mubr.f32.gmra.mrb[120].mxu0 %v2339_v36  ;;  %v4186_v47 = vpop.f32.mrb[20].mxu1  ;;  %v2363_v36 = vand.u32 4294901760, %v2362_v2  ;;  %v9530_v13 = vand.u32 4294901760, %v7525_v52  ;;  %v9531_v18 = vand.u32 4294901760, %v7558_v25 }
 0x194   :  { %2349 = vmatprep.mubr.f32.mxu0 %v2348_v7  ;;  %v2368_v16 = vsub.f32 %v8103_v32, %v9529_v40  ;;  %v8153_v12 = vadd.f32 %v4179_v33, %v4099_v63  ;;  %v4100_v27 = vpop.f32.mrb[16].mxu0  ;;  %v4187_v54 = vpop.f32.mrb[21].mxu1  ;;  %v2383_v14 = vsub.f32 %v8129_v37, %v2382_v35 }
 0x195   :  { %3979 = vmatmul.mubr.msk.f32.gmra.mrb[126].mxu1 %vm157_vm15, %v9335_v23  ;;  %v4188_v30 = vadd.f32 %v4187_v54, %v4186_v47  ;;  %v4101_v7 = vpop.f32.mrb[17].mxu0  ;;  %v2378_v47 = vand.u32 4294901760, %v2377_v56 }
 0x196   :  { %3099 = vmatprep.mubr.f32.mxu1 %v9530_v13  ;;  %v4102_v33 = vadd.f32 %v4101_v7, %v4100_v27  ;;  %v2369_v40 = vand.u32 4294901760, %v2368_v16  ;;  %v9532_v27 = vand.u32 4294901760, %v7568_v50  ;;  %v2384_v7 = vand.u32 4294901760, %v2383_v14  ;;  %v9536_v14 = vld [vmem:[#allocation29_spill] sm:$0xff] }
 0x197   :  { %2355 = vmatmul.mubr.f32.gmra.mrb[122].mxu0 %v2354_v22  ;;  %v4189_v63 = vpop.f32.mrb[22].mxu1 }
 0x198   :  { %2364 = vmatprep.mubr.f32.mxu0 %v2363_v36  ;;  %v8167_v31 = vadd.f32 %v4182_v28, %v4102_v33  ;;  %v4103_v2 = vpop.f32.mrb[18].mxu0  ;;  %v4190_v46 = vpop.f32.mrb[23].mxu1 }
 0x199   :  { %3103 = vmatmul.mubr.f32.vlgmr.msra.gmra.mrb[128].mxu1 %v9531_v18  ;;  %v4191_v22 = vadd.f32 %v4190_v46, %v4189_v63  ;;  %v4104_v54 = vpop.f32.mrb[19].mxu0  ;;  %v9533_v18 = vand.u32 4294901760, %v7590_v44  ;;  %v9534_v63 = vand.u32 4294901760, %v7595_v20 }
 0x19a   :  { %3110 = vmatprep.mubr.f32.mxu1 %v9532_v27  ;;  %v4105_v36 = vadd.f32 %v4104_v54, %v4103_v2  ;;  %5359 = vmatpush3.bf16.msra.mxu1 %v6862_v34  ;;  %v9535_v34 = vand.u32 4294901760, %v6750_v17  ;;  %v9538_v2 = vld [vmem:[#allocation15_spill] sm:$0xff]  ;;  %v9539_v54 = vand.u32 4294901760, %v9456_v61  ;;  %v9540_v27 = vand.u32 4294901760, %v9455_v4  ;;  %v9545_v4 = vld [vmem:[#allocation8_spill] sm:$0xff] }
 0x19b   :  { %2370 = vmatmul.mubr.f32.gmra.mrb[124].mxu0 %v2369_v40  ;;  %v4192_v16 = vpop.f32.mrb[24].mxu1  ;;  %5361 = vmatprep.subr.bf16.mxu1 %v6892_v10  ;;  %v9537_v10 = vand.u32 4294901760, %v9536_v14 }
 0x19c   :  { %2379 = vmatprep.mubr.f32.mxu0 %v2378_v47  ;;  %v8175_v28 = vadd.f32 %v4185_v49, %v4105_v36  ;;  %v4106_v13 = vpop.f32.mrb[20].mxu0  ;;  %v4193_v33 = vpop.f32.mrb[25].mxu1  ;;  %v5328_v36 = vpack.c.bf16 %v9540_v27, %v9539_v54 }
 0x19d   :  { %3114 = vmatmul.mubr.f32.gmra.mrb[130].mxu1 %v9533_v18  ;;  %v4194_v46 = vadd.f32 %v4193_v33, %v4192_v16  ;;  %v4107_v56 = vpop.f32.mrb[21].mxu0  ;;  %v5326_v49 = vpack.c.bf16 %v9537_v10, %v9535_v34  ;;  %v9541_v16 = vld [vmem:[#allocation38_spill] sm:$0xff]  ;;  %v9546_v34 = vand.u32 4294901760, %v9545_v4 }
 0x19e   :  { %3121 = vmatprep.mubr.f32.mxu1 %v9534_v63  ;;  %v4108_v40 = vadd.f32 %v4107_v56, %v4106_v13  ;;  %5363 = vmatpush3.bf16.msra.mxu1 %v9538_v2  ;;  %v9543_v56 = vld [vmem:[#allocation64_spill] sm:$0xff]  ;;  %v9549_v2 = vand.u32 4294901760, %v9468_v0 }
 0x19f   :  { %2385 = vmatmul.mubr.f32.gmra.mrb[126].mxu0 %v2384_v7  ;;  %v4195_v47 = vpop.f32.mrb[26].mxu1  ;;  %5365 = vmatprep.subr.bf16.mxu1 %v9541_v16  ;;  %v9544_v63 = vand.u32 4294901760, %v9543_v56 }
 0x1a0   :  { %2857 = vmatprep.mubr.f32.mxu0 %v7525_v52  ;;  %v8192_v7 = vadd.f32 %v4188_v30, %v4108_v40  ;;  %v4109_v13 = vpop.f32.mrb[22].mxu0  ;;  %v4196_v33 = vpop.f32.mrb[27].mxu1  ;;  %v9542_v52 = vand.u32 4294901760, %v7629_v8  ;;  %v9547_v30 = vld [vmem:[#allocation9_spill] sm:$0xff] }
 0x1a1   :  { %v4197_v17 = vadd.f32 %v4196_v33, %v4195_v47  ;;  %v4110_v18 = vpop.f32.mrb[23].mxu0  ;;  %v9548_v40 = vand.u32 4294901760, %v9547_v30  ;;  %v9550_v47 = vld [vmem:[#allocation32_spill] sm:$0xff]  ;;  %v9553_v33 = vld [vmem:[#allocation65_spill] sm:$0xff] }
 0x1a2   :  { %3125 = vmatmul.mubr.f32.gmra.mrb[132].mxu1 %v9542_v52  ;;  %v4111_v61 = vadd.f32 %v4110_v18, %v4109_v13  ;;  %v9551_v54 = vand.u32 4294901760, %v9550_v47  ;;  %v9555_v52 = vld [vmem:[#allocation53_spill] sm:$0xff] }
 0x1a3   :  { %2860 = vmatmul.mubr.f32.vlgmr.msra.gmra.mrb[128].mxu0 %v7558_v25  ;;  %3132 = vmatprep.mubr.f32.mxu1 %v9544_v63  ;;  %v5330_v14 = vpack.c.bf16 %v9548_v40, %v9546_v34  ;;  %v4198_v10 = vpop.f32.mrb[28].mxu1  ;;  %v9552_v25 = vld [vmem:[#allocation51_spill] sm:$0xff] }
 0x1a4   :  { %5327 = vmatpush3.bf16.msra.mxu0 %v5326_v49  ;;  %2866 = vmatprep.mubr.f32.mxu0 %v7568_v50  ;;  %v5332_v27 = vpack.c.bf16 %v9551_v54, %v9549_v2  ;;  %v8209_v16 = vadd.f32 %v4191_v22, %v4111_v61  ;;  %v4112_v13 = vpop.f32.mrb[24].mxu0  ;;  %v4199_v49 = vpop.f32.mrb[29].mxu1  ;;  %v9554_v50 = vand.u32 4294901760, %v9553_v33  ;;  %v9558_v22 = vand.u32 4294901760, %v9472_v45  ;;  %v9560_v40 = vld [vmem:[#allocation23_spill] sm:$0xff]  ;;  %v9567_v45 = vld [vmem:[#allocation24_spill] sm:$0xff] }
 0x1a5   :  { %5329 = vmatprep.subr.bf16.mxu0 %v5328_v36  ;;  %5367 = vmatpush3.bf16.msra.mxu1 %v9552_v25  ;;  %v4200_v18 = vadd.f32 %v4199_v49, %v4198_v10  ;;  %v4113_v63 = vpop.f32.mrb[25].mxu0  ;;  %v9556_v36 = vld [vmem:[#allocation66_spill] sm:$0xff]  ;;  %v9559_v61 = vand.u32 4294901760, %v9471_v38  ;;  %v9561_v2 = vand.u32 4294901760, %v9560_v40 }
 0x1a6   :  { %3136 = vmatmul.mubr.f32.gmra.mrb[134].mxu1 %v9554_v50  ;;  %5369 = vmatprep.subr.bf16.mxu1 %v9555_v52  ;;  %v9557_v0 = vand.u32 4294901760, %v9556_v36  ;;  %v4114_v4 = vadd.f32 %v4113_v63, %v4112_v13  ;;  %v9562_v10 = vld [vmem:[#allocation14_spill] sm:$0xff] }
 0x1a7   :  { %2869 = vmatmul.mubr.f32.gmra.mrb[130].mxu0 %v7590_v44  ;;  %v5334_v34 = vpack.c.bf16 %v9559_v61, %v9558_v22  ;;  %v4201_v30 = vpop.f32.mrb[30].mxu1  ;;  %v9563_v47 = vand.u32 4294901760, %v9562_v10  ;;  %v9564_v44 = vld [vmem:[#allocation25_spill] sm:$0xff]  ;;  %v9572_v61 = vand.u32 4294901760, %v9486_v53 }
 0x1a8   :  { %3143 = vmatprep.mubr.f32.mxu1 %v9557_v0  ;;  %2875 = vmatprep.mubr.f32.mxu0 %v7595_v20  ;;  %v8227_v25 = vadd.f32 %v4194_v46, %v4114_v4  ;;  %v4115_v13 = vpop.f32.mrb[26].mxu0  ;;  %v4202_v49 = vpop.f32.mrb[31].mxu1  ;;  %v9565_v20 = vld [vmem:[#allocation67_spill] sm:$0xff]  ;;  %v9570_v46 = vand.u32 4294901760, %v9483_v1  ;;  %v9571_v0 = vand.u32 4294901760, %v9482_v43  ;;  %v9578_v1 = vld [vmem:[#allocation56_spill] sm:$0xff] }
 0x1a9   :  { %5331 = vmatpush3.bf16.msra.mxu0 %v5330_v14  ;;  %v5336_v54 = vpack.c.bf16 %v9563_v47, %v9561_v2  ;;  %5371 = vmatpush3.bf16.msra.mxu1 %v9564_v44  ;;  %v9566_v14 = vand.u32 4294901760, %v9565_v20  ;;  %v4203_v38 = vadd.f32 %v4202_v49, %v4201_v30  ;;  %v4116_v50 = vpop.f32.mrb[27].mxu0  ;;  %v9573_v30 = vld [vmem:[#allocation40_spill] sm:$0xff] }
 0x1aa   :  { %5333 = vmatprep.subr.bf16.mxu0 %v5332_v27  ;;  %5373 = vmatprep.subr.bf16.mxu1 %v9567_v45  ;;  %v9568_v27 = vld [vmem:[#allocation33_spill] sm:$0xff]  ;;  %v4117_v63 = vadd.f32 %v4116_v50, %v4115_v13  ;;  %v5338_v4 = vpack.c.bf16 %v9571_v0, %v9570_v46  ;;  %v9574_v40 = vand.u32 4294901760, %v9573_v30  ;;  %v9586_v0 = vld [vmem:[#allocation19_spill] sm:$0xff] }
 0x1ab   :  { %3147 = vmatmul.mubr.f32.gmra.mrb[136].mxu1 %v9566_v14  ;;  %2878 = vmatmul.mubr.f32.gmra.mrb[132].mxu0 %v7629_v8  ;;  %v9569_v52 = vand.u32 4294901760, %v9568_v27  ;;  %v4316_v22 = vpop.f32.mrb[32].mxu1  ;;  %v9575_v8 = vld [vmem:[#allocation55_spill] sm:$0xff]  ;;  %v9582_v14 = vld [vmem:[#allocation18_spill] sm:$0xff] }
 0x1ac   :  { %2884 = vmatprep.mubr.f32.mxu0 %v9543_v56  ;;  %v5340_v2 = vpack.c.bf16 %v9574_v40, %v9572_v61  ;;  %v8245_v10 = vadd.f32 %v4197_v17, %v4117_v63  ;;  %v4118_v47 = vpop.f32.mrb[28].mxu0  ;;  %v4317_v44 = vpop.f32.mrb[33].mxu1  ;;  %v9576_v56 = vld [vmem:[#allocation28_spill] sm:$0xff]  ;;  %v9581_v17 = vand.u32 4294901760, %v9491_v60  ;;  %v9583_v45 = vand.u32 4294901760, %v9582_v14  ;;  %v9584_v63 = vld [vmem:[#allocation42_spill] sm:$0xff] }
 0x1ad   :  { %3154 = vmatprep.mubr.f32.mxu1 %v9569_v52  ;;  %5335 = vmatpush3.bf16.msra.mxu0 %v5334_v34  ;;  %v9577_v34 = vand.u32 4294901760, %v9576_v56  ;;  %v4318_v43 = vadd.f32 %v4317_v44, %v4316_v22  ;;  %v4119_v13 = vpop.f32.mrb[29].mxu0  ;;  %v9585_v46 = vand.u32 4294901760, %v9584_v63  ;;  %v9587_v22 = vand.u32 4294901760, %v9586_v0  ;;  %v9591_v60 = vld [vmem:[#allocation58_spill] sm:$0xff] }
 0x1ae   :  { %5337 = vmatprep.subr.bf16.mxu0 %v5336_v54  ;;  %5375 = vmatpush3.bf16.msra.mxu1 %v9575_v8  ;;  %v9579_v54 = vld [vmem:[#allocation68_spill] sm:$0xff]  ;;  %v4120_v49 = vadd.f32 %v4119_v13, %v4118_v47  ;;  %v5342_v50 = vpack.c.bf16 %v9583_v45, %v9581_v17  ;;  %v9595_v13 = vld [vmem:[#allocation22_spill] sm:$0xff]  ;;  %v9597_v14 = vand.u32 4294901760, %v9502_v51  ;;  %v9598_v45 = vand.u32 4294901760, %v9501_v58 }
 0x1af   :  { %3158 = vmatmul.mubr.f32.gmra.mrb[138].mxu1 %v9577_v34  ;;  %5377 = vmatprep.subr.bf16.mxu1 %v9578_v1  ;;  %v9580_v53 = vand.u32 4294901760, %v9579_v54  ;;  %v4319_v52 = vpop.f32.mrb[34].mxu1  ;;  %v5344_v61 = vpack.c.bf16 %v9587_v22, %v9585_v46  ;;  %v9603_v51 = vand.u32 4294901760, %v7830_v24 }
 0x1b0   :  { %2887 = vmatmul.mubr.f32.gmra.mrb[134].mxu0 %v9553_v33  ;;  %v9588_v33 = vld [vmem:[#allocation57_spill] sm:$0xff]  ;;  %v8263_v30 = vadd.f32 %v4200_v18, %v4120_v49  ;;  %v4121_v40 = vpop.f32.mrb[30].mxu0  ;;  %v4320_v8 = vpop.f32.mrb[35].mxu1  ;;  %v9594_v18 = vand.u32 4294901760, %v9499_v57  ;;  %v9602_v57 = vld [vmem:[#allocation60_spill] sm:$0xff] }
 0x1b1   :  { %3165 = vmatprep.mubr.f32.mxu1 %v9580_v53  ;;  %2893 = vmatprep.mubr.f32.mxu0 %v9556_v36  ;;  %v9589_v36 = vld [vmem:[#allocation34_spill] sm:$0xff]  ;;  %v4321_v47 = vadd.f32 %v4320_v8, %v4319_v52  ;;  %v4122_v44 = vpop.f32.mrb[31].mxu0  ;;  %v9596_v53 = vand.u32 4294901760, %v9595_v13  ;;  %v5348_v52 = vpack.c.bf16 %v9598_v45, %v9597_v14  ;;  %v9613_v45 = vand.u32 4294901760, %v7872_v9 }
 0x1b2   :  { %5339 = vmatpush3.bf16.msra.mxu0 %v5338_v4  ;;  %5379 = vmatpush3.bf16.msra.mxu1 %v9588_v33  ;;  %v9590_v4 = vand.u32 4294901760, %v9589_v36  ;;  %v4123_v1 = vadd.f32 %v4122_v44, %v4121_v40  ;;  %v9606_v40 = vld [vmem:[#allocation49_spill] sm:$0xff] }
 0x1b3   :  { %5341 = vmatprep.subr.bf16.mxu0 %v5340_v2  ;;  %5381 = vmatprep.subr.bf16.mxu1 %v9591_v60  ;;  %v9592_v2 = vld [vmem:[#allocation13_spill] sm:$0xff]  ;;  %v5346_v49 = vpack.c.bf16 %v9596_v53, %v9594_v18  ;;  %v4322_v17 = vpop.f32.mrb[36].mxu1  ;;  %v9607_v8 = vand.u32 4294901760, %v9606_v40  ;;  %v9611_v18 = vld [vmem:[#allocation12_spill] sm:$0xff]  ;;  %v9618_v40 = vand.u32 4294901760, %v7948_v42 }
 0x1b4   :  { %3169 = vmatmul.mubr.f32.gmra.mrb[140].mxu1 %v9590_v4  ;;  %2896 = vmatmul.mubr.f32.gmra.mrb[136].mxu0 %v9565_v20  ;;  %v9593_v34 = vand.u32 4294901760, %v9592_v2  ;;  %v9599_v20 = vld [vmem:[#allocation59_spill] sm:$0xff]  ;;  %v8281_v63 = vadd.f32 %v4203_v38, %v4123_v1  ;;  %v4236_v46 = vpop.f32.mrb[32].mxu0  ;;  %v4323_v0 = vpop.f32.mrb[37].mxu1  ;;  %v9608_v44 = vld [vmem:[#allocation61_spill] sm:$0xff] }
 0x1b5   :  { %2902 = vmatprep.mubr.f32.mxu0 %v9568_v27  ;;  %v9600_v27 = vld [vmem:[#allocation10_spill] sm:$0xff]  ;;  %v4324_v22 = vadd.f32 %v4323_v0, %v4322_v17  ;;  %v4237_v33 = vpop.f32.mrb[33].mxu0  ;;  %v9604_v38 = vld [vmem:[#allocation47_spill] sm:$0xff] }
 0x1b6   :  { %3176 = vmatprep.mubr.f32.mxu1 %v9593_v34  ;;  %5343 = vmatpush3.bf16.msra.mxu0 %v5342_v50  ;;  %v9601_v50 = vand.u32 4294901760, %v9600_v27  ;;  %v4238_v58 = vadd.f32 %v4237_v33, %v4236_v46  ;;  %v9609_v34 = vand.u32 4294901760, %v7174_v59  ;;  %v9615_v59 = vand.u32 4294901760, %v7214_v26 }
 0x1b7   :  { %5345 = vmatprep.subr.bf16.mxu0 %v5344_v61  ;;  %5383 = vmatpush3.bf16.msra.mxu1 %v9599_v20  ;;  %v9605_v61 = vand.u32 4294901760, %v9604_v38  ;;  %v4325_v60 = vpop.f32.mrb[38].mxu1  ;;  %v9616_v33 = vand.u32 4294901760, %v7905_v11 }
 0x1b8   :  { %3180 = vmatmul.mubr.f32.gmra.mrb[142].mxu1 %v9601_v50  ;;  %5385 = vmatprep.subr.bf16.mxu1 %v9602_v57  ;;  %v1160_v13 = vadd.f32 %v4238_v58, %v9611_v18  ;;  %v4239_v53 = vpop.f32.mrb[34].mxu0  ;;  %v4326_v17 = vpop.f32.mrb[39].mxu1  ;;  %v9622_v18 = vld [vmem:[#allocation16_spill] sm:$0xff] }
 0x1b9   :  { %2905 = vmatmul.mubr.f32.gmra.mrb[138].mxu0 %v9576_v56  ;;  %3187 = vmatprep.mubr.f32.mxu1 %v9603_v51  ;;  %v5350_v4 = vpack.c.bf16 %v9607_v8, %v9605_v61  ;;  %v9610_v56 = vand.u32 4294901760, %v7179_v3  ;;  %v4240_v14 = vpop.f32.mrb[35].mxu0  ;;  %v9614_v3 = vand.u32 4294901760, %v7209_v19  ;;  %v9617_v19 = vand.u32 4294901760, %v7932_v48 }
 0x1ba   :  { %2911 = vmatprep.mubr.f32.mxu0 %v9579_v54  ;;  %5347 = vmatpush3.bf16.msra.mxu0 %v5346_v49  ;;  %v9612_v54 = vand.u32 4294901760, %v7864_v15  ;;  %v4327_v49 = vadd.f32 %v4326_v17, %v4325_v60  ;;  %v8310_v46 = vadd.f32 %v4318_v43, %v1160_v13  ;;  %v9623_v13 = vand.u32 4294901760, %v9622_v18 }
 0x1bb   :  { %5349 = vmatprep.subr.bf16.mxu0 %v5348_v52  ;;  %5387 = vmatpush3.bf16.msra.mxu1 %v9608_v44  ;;  %v5352_v1 = vpack.c.bf16 %v9610_v56, %v9609_v34  ;;  %v4241_v52 = vadd.f32 %v4240_v14, %v4239_v53  ;;  %v5354_v20 = vpack.c.bf16 %v9615_v59, %v9614_v3  ;;  %v4328_v0 = vpop.f32.mrb[40].mxu1  ;;  %v9621_v34 = vld [vmem:[#allocation21_spill] sm:$0xff] }
 0x1bc   :  { %3191 = vmatmul.mubr.f32.gmra.mrb[144].mxu1 %v9612_v54  ;;  %v4242_v57 = vpop.f32.mrb[36].mxu0 }
 0x1bd   :  { %2914 = vmatmul.mubr.f32.gmra.mrb[140].mxu0 %v9589_v36  ;;  %3198 = vmatprep.mubr.f32.mxu1 %v9613_v45  ;;  %v1169_v50 = vadd.f32 %v4241_v52, %v7976_v39  ;;  %v4329_v36 = vpop.f32.mrb[41].mxu1  ;;  %v4243_v58 = vpop.f32.mrb[37].mxu0  ;;  %v9626_v45 = vld [vmem:[#allocation46_spill] sm:$0xff] }
 0x1be   :  { %2920 = vmatprep.mubr.f32.mxu0 %v9592_v2  ;;  %5351 = vmatpush3.bf16.msra.mxu0 %v5350_v4  ;;  %v4330_v51 = vadd.f32 %v4329_v36, %v4328_v0  ;;  %v4244_v26 = vadd.f32 %v4243_v58, %v4242_v57 }
 0x1bf   :  { %5353 = vmatprep.subr.bf16.mxu0 %v5352_v1  ;;  %v8319_v43 = vadd.f32 %v4321_v47, %v1169_v50  ;;  %v4331_v2 = vpop.f32.mrb[42].mxu1 }
 0x1c0   :  { %3202 = vmatmul.mubr.f32.gmra.mrb[146].mxu1 %v9616_v33  ;;  %v1178_v39 = vadd.f32 %v4244_v26, %v8010_v29  ;;  %v4245_v38 = vpop.f32.mrb[38].mxu0  ;;  %v4332_v61 = vpop.f32.mrb[43].mxu1 }
 0x1c1   :  { %2923 = vmatmul.mubr.f32.gmra.mrb[142].mxu0 %v9600_v27  ;;  %3209 = vmatprep.mubr.f32.mxu1 %v9617_v19  ;;  %v4333_v8 = vadd.f32 %v4332_v61, %v4331_v2  ;;  %v4246_v4 = vpop.f32.mrb[39].mxu0  ;;  %v9619_v27 = vld [vmem:[#allocation11_spill] sm:$0xff]  ;;  %v9629_v19 = vand.u32 4294901760, %v8068_v6  ;;  %v9631_v61 = vld [vmem:[#allocation20_spill] sm:$0xff] }
 0x1c2   :  { %2929 = vmatprep.mubr.f32.mxu0 %v7830_v24  ;;  %5355 = vmatpush3.bf16.msra.mxu0 %v5354_v20  ;;  %v9620_v60 = vand.u32 4294901760, %v9619_v27  ;;  %v4247_v44 = vadd.f32 %v4246_v4, %v4245_v38  ;;  %v8328_v24 = vadd.f32 %v4324_v22, %v1178_v39  ;;  %v9627_v20 = vand.u32 4294901760, %v8039_v5 }
 0x1c3   :  { %v4334_v47 = vpop.f32.mrb[44].mxu1 }
 0x1c4   :  { %3213 = vmatmul.mubr.f32.gmra.mrb[148].mxu1 %v9618_v40  ;;  %v1187_v29 = vadd.f32 %v4247_v44, %v9621_v34  ;;  %v4248_v56 = vpop.f32.mrb[40].mxu0  ;;  %v4335_v1 = vpop.f32.mrb[45].mxu1 }
 0x1c5   :  { %2932 = vmatmul.mubr.f32.gmra.mrb[144].mxu0 %v7864_v15  ;;  %3220 = vmatprep.mubr.f32.mxu1 %v9620_v60  ;;  %v4336_v53 = vadd.f32 %v4335_v1, %v4334_v47  ;;  %v4249_v17 = vpop.f32.mrb[41].mxu0  ;;  %v9624_v15 = vld [vmem:[#allocation17_spill] sm:$0xff]  ;;  %v9633_v47 = vand.u32 4294901760, %v8119_v55 }
 0x1c6   :  { %2938 = vmatprep.mubr.f32.mxu0 %v7872_v9  ;;  %v9625_v54 = vand.u32 4294901760, %v9624_v15  ;;  %v4250_v14 = vadd.f32 %v4249_v17, %v4248_v56  ;;  %v8337_v9 = vadd.f32 %v4327_v49, %v1187_v29 }
 0x1c7   :  { %v4337_v22 = vpop.f32.mrb[46].mxu1 }
 0x1c8   :  { %3224 = vmatmul.mubr.f32.gmra.mrb[150].mxu1 %v9623_v13  ;;  %v1196_v52 = vadd.f32 %v4250_v14, %v9626_v45  ;;  %v4251_v3 = vpop.f32.mrb[42].mxu0  ;;  %v4338_v59 = vpop.f32.mrb[47].mxu1 }
 0x1c9   :  { %2941 = vmatmul.mubr.f32.gmra.mrb[146].mxu0 %v7905_v11  ;;  %3231 = vmatprep.mubr.f32.mxu1 %v9625_v54  ;;  %v4339_v0 = vadd.f32 %v4338_v59, %v4337_v22  ;;  %v4252_v50 = vpop.f32.mrb[43].mxu0  ;;  %v9628_v11 = vand.u32 4294901760, %v8056_v62 }
 0x1ca   :  { %2947 = vmatprep.mubr.f32.mxu0 %v7932_v48  ;;  %v4253_v57 = vadd.f32 %v4252_v50, %v4251_v3  ;;  %v8346_v48 = vadd.f32 %v4330_v51, %v1196_v52 }
 0x1cb   :  { %v4340_v49 = vpop.f32.mrb[48].mxu1 }
 0x1cc   :  { %3235 = vmatmul.mubr.f32.gmra.mrb[152].mxu1 %v9627_v20  ;;  %v1205_v36 = vadd.f32 %v4253_v57, %v8113_v41  ;;  %v4254_v33 = vpop.f32.mrb[44].mxu0  ;;  %v4341_v58 = vpop.f32.mrb[49].mxu1 }
 0x1cd   :  { %2950 = vmatmul.mubr.f32.gmra.mrb[148].mxu0 %v7948_v42  ;;  %3242 = vmatprep.mubr.f32.mxu1 %v9628_v11  ;;  %v4342_v26 = vadd.f32 %v4341_v58, %v4340_v49  ;;  %v4255_v2 = vpop.f32.mrb[45].mxu0  ;;  %v9630_v42 = vand.u32 4294901760, %v8090_v21 }
 0x1ce   :  { %2956 = vmatprep.mubr.f32.mxu0 %v9619_v27  ;;  %v4256_v39 = vadd.f32 %v4255_v2, %v4254_v33  ;;  %v8355_v51 = vadd.f32 %v4333_v8, %v1205_v36  ;;  %v9632_v27 = vand.u32 4294901760, %v8103_v32 }
 0x1cf   :  { %v4343_v38 = vpop.f32.mrb[50].mxu1 }
 0x1d0   :  { %3246 = vmatmul.mubr.f32.gmra.mrb[154].mxu1 %v9629_v19  ;;  %v1214_v41 = vadd.f32 %v4256_v39, %v9631_v61  ;;  %v4257_v40 = vpop.f32.mrb[46].mxu0  ;;  %v4344_v4 = vpop.f32.mrb[51].mxu1 }
 0x1d1   :  { %2959 = vmatmul.mubr.f32.gmra.mrb[150].mxu0 %v9622_v18  ;;  %3253 = vmatprep.mubr.f32.mxu1 %v9630_v42  ;;  %v4345_v60 = vadd.f32 %v4344_v4, %v4343_v38  ;;  %v4258_v44 = vpop.f32.mrb[47].mxu0 }
 0x1d2   :  { %2965 = vmatprep.mubr.f32.mxu0 %v9624_v15  ;;  %v4259_v34 = vadd.f32 %v4258_v44, %v4257_v40  ;;  %v8364_v8 = vadd.f32 %v4336_v53, %v1214_v41  ;;  %v9635_v15 = vld [vmem:[#allocation62_spill] sm:$0xff]  ;;  %v9640_v40 = vld [vmem:[#allocation35_spill] sm:$0xff] }
 0x1d3   :  { %v4346_v29 = vpop.f32.mrb[52].mxu1 }
 0x1d4   :  { %3257 = vmatmul.mubr.f32.gmra.mrb[156].mxu1 %v9632_v27  ;;  %v1223_v56 = vadd.f32 %v4259_v34, %v8153_v12  ;;  %v4260_v1 = vpop.f32.mrb[48].mxu0  ;;  %v4347_v18 = vpop.f32.mrb[53].mxu1 }
 0x1d5   :  { %2968 = vmatmul.mubr.f32.gmra.mrb[152].mxu0 %v8039_v5  ;;  %3264 = vmatprep.mubr.f32.mxu1 %v9633_v47  ;;  %v4348_v13 = vadd.f32 %v4347_v18, %v4346_v29  ;;  %v4261_v17 = vpop.f32.mrb[49].mxu0 }
 0x1d6   :  { %2974 = vmatprep.mubr.f32.mxu0 %v8056_v62  ;;  %v4262_v62 = vadd.f32 %v4261_v17, %v4260_v1  ;;  %v8375_v53 = vadd.f32 %v4339_v0, %v1223_v56  ;;  %v9642_v56 = vld [vmem:[#allocation36_spill] sm:$0xff] }
 0x1d7   :  { %v4349_v12 = vpop.f32.mrb[54].mxu1 }
 0x1d8   :  { %3268 = vmatmul.mubr.f32.gmra.mrb[158].mxu1 %v2382_v35  ;;  %v1232_v54 = vadd.f32 %v4262_v62, %v8167_v31  ;;  %v4263_v14 = vpop.f32.mrb[50].mxu0  ;;  %v4350_v22 = vpop.f32.mrb[55].mxu1  ;;  %v9636_v35 = vld [vmem:[#allocation63_spill] sm:$0xff] }
 0x1d9   :  { %2977 = vmatmul.mubr.f32.gmra.mrb[154].mxu0 %v8068_v6  ;;  %4012 = vmatprep.mubr.msk.f32.mxu1 %vm98_vm1, %v9335_v23  ;;  %v4351_v6 = vadd.f32 %v4350_v22, %v4349_v12  ;;  %v4264_v45 = vpop.f32.mrb[51].mxu0 }
 0x1da   :  { %2983 = vmatprep.mubr.f32.mxu0 %v8090_v21  ;;  %v4265_v21 = vadd.f32 %v4264_v45, %v4263_v14  ;;  %v8388_v31 = vadd.f32 %v4342_v26, %v1232_v54  ;;  %v9645_v54 = vld [vmem:[#allocation37_spill] sm:$0xff] }
 0x1db   :  { %v4352_v3 = vpop.f32.mrb[56].mxu1 }
 0x1dc   :  { %4013 = vmatmul.mubr.msk.f32.vlgmr.msra.gmra.mrb[160].mxu1 %vm97_vm4, %v9335_v23  ;;  %v1241_v59 = vadd.f32 %v4265_v21, %v8175_v28  ;;  %v4266_v20 = vpop.f32.mrb[52].mxu0  ;;  %v4353_v0 = vpop.f32.mrb[57].mxu1 }
 0x1dd   :  { %2986 = vmatmul.mubr.f32.gmra.mrb[156].mxu0 %v8103_v32  ;;  %4014 = vmatprep.mubr.msk.f32.mxu1 %vm102_vm6, %v9335_v23  ;;  %v4354_v32 = vadd.f32 %v4353_v0, %v4352_v3  ;;  %v4267_v50 = vpop.f32.mrb[53].mxu0 }
 0x1de   :  { %2992 = vmatprep.mubr.f32.mxu0 %v8119_v55  ;;  %v4268_v55 = vadd.f32 %v4267_v50, %v4266_v20  ;;  %v8404_v28 = vadd.f32 %v4345_v60, %v1241_v59  ;;  %v9649_v59 = vld [vmem:[#allocation39_spill] sm:$0xff] }
 0x1df   :  { %v4355_v57 = vpop.f32.mrb[58].mxu1 }
 0x1e0   :  { %4015 = vmatmul.mubr.msk.f32.gmra.mrb[162].mxu1 %vm101_vm7, %v9335_v23  ;;  %v1250_v49 = vadd.f32 %v4268_v55, %v8192_v7  ;;  %v4269_v36 = vpop.f32.mrb[54].mxu0  ;;  %v4356_v33 = vpop.f32.mrb[59].mxu1 }
 0x1e1   :  { %2995 = vmatmul.mubr.f32.gmra.mrb[158].mxu0 %v8129_v37  ;;  %4016 = vmatprep.mubr.msk.f32.mxu1 %vm106_vm8, %v9335_v23  ;;  %v4357_v37 = vadd.f32 %v4356_v33, %v4355_v57  ;;  %v4270_v58 = vpop.f32.mrb[55].mxu0 }
 0x1e2   :  { %3980 = vmatprep.mubr.msk.f32.mxu0 %vm98_vm1, %v9335_v23  ;;  %v4271_v7 = vadd.f32 %v4270_v58, %v4269_v36  ;;  %v8423_v26 = vadd.f32 %v4348_v13, %v1250_v49  ;;  %vm9641_vm1 = vcmp.eq.s32.totalorder %v9640_v40, %v9636_v35  ;;  %v9654_v49 = vld [vmem:[#allocation41_spill] sm:$0xff] }
 0x1e3   :  { %v4358_v2 = vpop.f32.mrb[60].mxu1 }
 0x1e4   :  { %4017 = vmatmul.mubr.msk.f32.gmra.mrb[164].mxu1 %vm105_vm11, %v9335_v23  ;;  %v1259_v42 = vadd.f32 %v4271_v7, %v8209_v16  ;;  %v4272_v39 = vpop.f32.mrb[56].mxu0  ;;  %v4359_v38 = vpop.f32.mrb[61].mxu1 }
 0x1e5   :  { %3981 = vmatmul.mubr.msk.f32.vlgmr.msra.gmra.mrb[160].mxu0 %vm97_vm4, %v9335_v23  ;;  %4018 = vmatprep.mubr.msk.f32.mxu1 %vm110_vm0, %v9335_v23  ;;  %v4360_v61 = vadd.f32 %v4359_v38, %v4358_v2  ;;  %v4273_v41 = vpop.f32.mrb[57].mxu0  ;;  %vm9643_vm4 = vcmp.eq.s32.totalorder %v9642_v56, %v9635_v15 }
 0x1e6   :  { %3982 = vmatprep.mubr.msk.f32.mxu0 %vm102_vm6, %v9335_v23  ;;  %v4274_v16 = vadd.f32 %v4273_v41, %v4272_v39  ;;  %v8442_v4 = vadd.f32 %v4351_v6, %v1259_v42  ;;  %vm9644_vm6 = vcmp.eq.s32.totalorder %v9642_v56, %v9636_v35  ;;  %v9658_v42 = vld [vmem:[#allocation43_spill] sm:$0xff] }
 0x1e7   :  { %v4361_v27 = vpop.f32.mrb[62].mxu1 }
 0x1e8   :  { %4019 = vmatmul.mubr.msk.f32.gmra.mrb[166].mxu1 %vm109_vm13, %v9335_v23  ;;  %v1268_v60 = vadd.f32 %v4274_v16, %v8227_v25  ;;  %v4275_v44 = vpop.f32.mrb[58].mxu0  ;;  %v4362_v47 = vpop.f32.mrb[63].mxu1 }
 0x1e9   :  { %3983 = vmatmul.mubr.msk.f32.gmra.mrb[162].mxu0 %vm101_vm7, %v9335_v23  ;;  %4020 = vmatprep.mubr.msk.f32.mxu1 %vm114_vm14, %v9335_v23  ;;  %v4363_v34 = vadd.f32 %v4362_v47, %v4361_v27  ;;  %v4276_v29 = vpop.f32.mrb[59].mxu0  ;;  %vm9646_vm7 = vcmp.eq.s32.totalorder %v9645_v54, %v9635_v15 }
 0x1ea   :  { %3984 = vmatprep.mubr.msk.f32.mxu0 %vm106_vm8, %v9335_v23  ;;  %v4277_v25 = vadd.f32 %v4276_v29, %v4275_v44  ;;  %v8461_v1 = vadd.f32 %v4354_v32, %v1268_v60  ;;  %vm9647_vm8 = vcmp.eq.s32.totalorder %v9645_v54, %v9636_v35  ;;  %v9661_v60 = vld [vmem:[#allocation44_spill] sm:$0xff] }
 0x1eb   :  { %v4476_v18 = vpop.f32.mrb[64].mxu1 }
 0x1ec   :  { %4021 = vmatmul.mubr.msk.f32.gmra.mrb[168].mxu1 %vm9641_vm1, %v9335_v23  ;;  %v1277_v13 = vadd.f32 %v4277_v25, %v8245_v10  ;;  %v4278_v17 = vpop.f32.mrb[60].mxu0  ;;  %v4477_v5 = vpop.f32.mrb[65].mxu1 }
 0x1ed   :  { %3985 = vmatmul.mubr.msk.f32.gmra.mrb[164].mxu0 %vm105_vm11, %v9335_v23  ;;  %4022 = vmatprep.mubr.msk.f32.mxu1 %vm9643_vm4, %v9335_v23  ;;  %v4478_v62 = vadd.f32 %v4477_v5, %v4476_v18  ;;  %v4279_v12 = vpop.f32.mrb[61].mxu0  ;;  %vm9648_vm11 = vmmov %vm9641_vm1 }
 0x1ee   :  { %3986 = vmatprep.mubr.msk.f32.mxu0 %vm110_vm0, %v9335_v23  ;;  %v4280_v10 = vadd.f32 %v4279_v12, %v4278_v17  ;;  %v8480_v14 = vadd.f32 %v4357_v37, %v1277_v13  ;;  %vm9650_vm0 = vcmp.eq.s32.totalorder %v9649_v59, %v9635_v15  ;;  %vm9653_vm1 = vmmov %vm9644_vm6  ;;  %v9664_v13 = vld [vmem:[#allocation45_spill] sm:$0xff] }
 0x1ef   :  { %v4479_v22 = vpop.f32.mrb[66].mxu1 }
 0x1f0   :  { %4023 = vmatmul.mubr.msk.f32.gmra.mrb[170].mxu1 %vm9644_vm6, %v9335_v23  ;;  %v1286_v6 = vadd.f32 %v4280_v10, %v8263_v30  ;;  %v4281_v45 = vpop.f32.mrb[62].mxu0  ;;  %v4480_v52 = vpop.f32.mrb[67].mxu1  ;;  %vm9656_vm6 = vmmov %vm9646_vm7 }
 0x1f1   :  { %3987 = vmatmul.mubr.msk.f32.gmra.mrb[166].mxu0 %vm109_vm13, %v9335_v23  ;;  %4024 = vmatprep.mubr.msk.f32.mxu1 %vm9646_vm7, %v9335_v23  ;;  %v4481_v21 = vadd.f32 %v4480_v52, %v4479_v22  ;;  %v4282_v3 = vpop.f32.mrb[63].mxu0  ;;  %vm9651_vm13 = vmmov %vm9643_vm4  ;;  %vm9655_vm4 = vcmp.eq.s32.totalorder %v9654_v49, %v9635_v15  ;;  %vm9657_vm7 = vcmp.eq.s32.totalorder %v9654_v49, %v9636_v35 }
 0x1f2   :  { %3988 = vmatprep.mubr.msk.f32.mxu0 %vm114_vm14, %v9335_v23  ;;  %v4283_v30 = vadd.f32 %v4282_v3, %v4281_v45  ;;  %v8499_v20 = vadd.f32 %v4360_v61, %v1286_v6  ;;  %vm9652_vm14 = vcmp.eq.s32.totalorder %v9649_v59, %v9636_v35  ;;  %v9667_v6 = vld [vmem:[#allocation48_spill] sm:$0xff] }
 0x1f3   :  { %v4482_v0 = vpop.f32.mrb[68].mxu1 }
 0x1f4   :  { %4025 = vmatmul.mubr.msk.f32.gmra.mrb[172].mxu1 %vm9647_vm8, %v9335_v23  ;;  %v1295_v32 = vadd.f32 %v4283_v30, %v8281_v63  ;;  %v4396_v50 = vpop.f32.mrb[64].mxu0  ;;  %v4483_v11 = vpop.f32.mrb[69].mxu1 }
 0x1f5   :  { %3989 = vmatmul.mubr.msk.f32.gmra.mrb[168].mxu0 %vm9648_vm11, %v9335_v23  ;;  %4026 = vmatprep.mubr.msk.f32.mxu1 %vm9650_vm0, %v9335_v23  ;;  %v4484_v55 = vadd.f32 %v4483_v11, %v4482_v0  ;;  %v4397_v57 = vpop.f32.mrb[65].mxu0  ;;  %vm9659_vm11 = vcmp.eq.s32.totalorder %v9658_v42, %v9635_v15 }
 0x1f6   :  { %3990 = vmatprep.mubr.msk.f32.mxu0 %vm9651_vm13, %v9335_v23  ;;  %v4398_v63 = vadd.f32 %v4397_v57, %v4396_v50  ;;  %v8518_v36 = vadd.f32 %v4363_v34, %v1295_v32  ;;  %vm9660_vm13 = vcmp.eq.s32.totalorder %v9658_v42, %v9636_v35 }
 0x1f7   :  { %v4485_v33 = vpop.f32.mrb[70].mxu1 }
 0x1f8   :  { %4027 = vmatmul.mubr.msk.f32.gmra.mrb[174].mxu1 %vm9652_vm14, %v9335_v23  ;;  %v1736_v37 = vadd.f32 %v4398_v63, %v8310_v46  ;;  %v4399_v58 = vpop.f32.mrb[66].mxu0  ;;  %v4486_v19 = vpop.f32.mrb[71].mxu1 }
 0x1f9   :  { %3991 = vmatmul.mubr.msk.f32.gmra.mrb[170].mxu0 %vm9653_vm1, %v9335_v23  ;;  %4028 = vmatprep.mubr.msk.f32.mxu1 %vm9655_vm4, %v9335_v23  ;;  %v4487_v7 = vadd.f32 %v4486_v19, %v4485_v33  ;;  %v4400_v2 = vpop.f32.mrb[67].mxu0  ;;  %vm9662_vm1 = vcmp.eq.s32.totalorder %v9661_v60, %v9635_v15 }
 0x1fa   :  { %3992 = vmatprep.mubr.msk.f32.mxu0 %vm9656_vm6, %v9335_v23  ;;  %v4401_v46 = vadd.f32 %v4400_v2, %v4399_v58  ;;  %v8537_v39 = vadd.f32 %v4478_v62, %v1736_v37  ;;  %vm9663_vm6 = vcmp.eq.s32.totalorder %v9661_v60, %v9636_v35 }
 0x1fb   :  { %v4488_v38 = vpop.f32.mrb[72].mxu1 }
 0x1fc   :  { %4029 = vmatmul.mubr.msk.f32.gmra.mrb[176].mxu1 %vm9657_vm7, %v9335_v23  ;;  %v1743_v61 = vadd.f32 %v4401_v46, %v8319_v43  ;;  %v4402_v41 = vpop.f32.mrb[68].mxu0  ;;  %v4489_v40 = vpop.f32.mrb[73].mxu1 }
 0x1fd   :  { %3993 = vmatmul.mubr.msk.f32.gmra.mrb[172].mxu0 %vm9647_vm8, %v9335_v23  ;;  %4030 = vmatprep.mubr.msk.f32.mxu1 %vm9659_vm11, %v9335_v23  ;;  %v4490_v16 = vadd.f32 %v4489_v40, %v4488_v38  ;;  %v4403_v27 = vpop.f32.mrb[69].mxu0  ;;  %vm9665_vm8 = vcmp.eq.s32.totalorder %v9664_v13, %v9635_v15 }
 0x1fe   :  { %3994 = vmatprep.mubr.msk.f32.mxu0 %vm9650_vm0, %v9335_v23  ;;  %v4404_v43 = vadd.f32 %v4403_v27, %v4402_v41  ;;  %v8556_v44 = vadd.f32 %v4481_v21, %v1743_v61  ;;  %vm9666_vm0 = vcmp.eq.s32.totalorder %v9664_v13, %v9636_v35 }
 0x200   :  { %4031 = vmatmul.mubr.msk.f32.gmra.mrb[178].mxu1 %vm9660_vm13, %v9335_v23  ;;  %v4491_v47 = vpop.f32.mrb[74].mxu1  ;;  %v1750_v34 = vadd.f32 %v4404_v43, %v8328_v24  ;;  %v4405_v29 = vpop.f32.mrb[70].mxu0 }
 0x201   :  { %3995 = vmatmul.mubr.msk.f32.gmra.mrb[174].mxu0 %vm9652_vm14, %v9335_v23  ;;  %4032 = vmatprep.mubr.msk.f32.mxu1 %vm9662_vm1, %v9335_v23  ;;  %v4492_v56 = vpop.f32.mrb[75].mxu1  ;;  %v4406_v18 = vpop.f32.mrb[71].mxu0  ;;  %vm9668_vm14 = vcmp.eq.s32.totalorder %v9667_v6, %v9635_v15 }
 0x202   :  { %3996 = vmatprep.mubr.msk.f32.mxu0 %vm9655_vm4, %v9335_v23  ;;  %v4493_v25 = vadd.f32 %v4492_v56, %v4491_v47  ;;  %v4407_v24 = vadd.f32 %v4406_v18, %v4405_v29  ;;  %v8575_v17 = vadd.f32 %v4484_v55, %v1750_v34  ;;  %vm9669_vm4 = vmmov %vm9663_vm6 }
 0x204   :  { %4033 = vmatmul.mubr.msk.f32.gmra.mrb[180].mxu1 %vm9663_vm6, %v9335_v23  ;;  %v4494_v5 = vpop.f32.mrb[76].mxu1  ;;  %v1757_v62 = vadd.f32 %v4407_v24, %v8337_v9  ;;  %v4408_v12 = vpop.f32.mrb[72].mxu0  ;;  %vm9671_vm6 = vmmov %vm9665_vm8 }
 0x205   :  { %3997 = vmatmul.mubr.msk.f32.gmra.mrb[176].mxu0 %vm9657_vm7, %v9335_v23  ;;  %4034 = vmatprep.mubr.msk.f32.mxu1 %vm9665_vm8, %v9335_v23  ;;  %v4495_v54 = vpop.f32.mrb[77].mxu1  ;;  %v4409_v22 = vpop.f32.mrb[73].mxu0  ;;  %vm9672_vm7 = vmmov %vm9666_vm0 }
 0x206   :  { %3998 = vmatprep.mubr.msk.f32.mxu0 %vm9659_vm11, %v9335_v23  ;;  %v4496_v10 = vadd.f32 %v4495_v54, %v4494_v5  ;;  %v4410_v9 = vadd.f32 %v4409_v22, %v4408_v12  ;;  %v8594_v45 = vadd.f32 %v4487_v7, %v1757_v62  ;;  %vm9674_vm8 = vmmov %vm9668_vm14 }
 0x208   :  { %4035 = vmatmul.mubr.msk.f32.gmra.mrb[182].mxu1 %vm9666_vm0, %v9335_v23  ;;  %v4497_v52 = vpop.f32.mrb[78].mxu1  ;;  %v1764_v21 = vadd.f32 %v4410_v9, %v8346_v48  ;;  %v4411_v3 = vpop.f32.mrb[74].mxu0 }
 0x209   :  { %3999 = vmatmul.mubr.msk.f32.gmra.mrb[178].mxu0 %vm9660_vm13, %v9335_v23  ;;  %4036 = vmatprep.mubr.msk.f32.mxu1 %vm9668_vm14, %v9335_v23  ;;  %v4498_v59 = vpop.f32.mrb[79].mxu1  ;;  %v4412_v0 = vpop.f32.mrb[75].mxu0 }
 0x20a   :  { %4000 = vmatprep.mubr.msk.f32.mxu0 %vm9662_vm1, %v9335_v23  ;;  %v4499_v30 = vadd.f32 %v4498_v59, %v4497_v52  ;;  %v4413_v48 = vadd.f32 %v4412_v0, %v4411_v3  ;;  %v8613_v50 = vadd.f32 %v4490_v16, %v1764_v21 }
 0x20c   :  { %4037 = vmatmul.mubr.msk.f32.gmra.mrb[184].mxu1 %vm145_vm2, %v9335_v23  ;;  %v4500_v11 = vpop.f32.mrb[80].mxu1  ;;  %v1771_v55 = vadd.f32 %v4413_v48, %v8355_v51  ;;  %v4414_v57 = vpop.f32.mrb[76].mxu0 }
 0x20d   :  { %4001 = vmatmul.mubr.msk.f32.gmra.mrb[180].mxu0 %vm9669_vm4, %v9335_v23  ;;  %4038 = vmatprep.mubr.msk.f32.mxu1 %vm150_vm12, %v9335_v23  ;;  %v4501_v49 = vpop.f32.mrb[81].mxu1  ;;  %v4415_v33 = vpop.f32.mrb[77].mxu0 }
 0x20e   :  { %4002 = vmatprep.mubr.msk.f32.mxu0 %vm9671_vm6, %v9335_v23  ;;  %v4502_v63 = vadd.f32 %v4501_v49, %v4500_v11  ;;  %v4416_v51 = vadd.f32 %v4415_v33, %v4414_v57  ;;  %v8632_v58 = vadd.f32 %v4493_v25, %v1771_v55 }
 0x210   :  { %4039 = vmatmul.mubr.msk.f32.gmra.mrb[186].mxu1 %vm149_vm3, %v9335_v23  ;;  %v4503_v19 = vpop.f32.mrb[82].mxu1  ;;  %v1778_v7 = vadd.f32 %v4416_v51, %v8364_v8  ;;  %v4417_v2 = vpop.f32.mrb[78].mxu0 }
 0x211   :  { %4003 = vmatmul.mubr.msk.f32.gmra.mrb[182].mxu0 %vm9672_vm7, %v9335_v23  ;;  %4040 = vmatprep.mubr.msk.f32.mxu1 %vm154_vm5, %v9335_v23  ;;  %v4504_v42 = vpop.f32.mrb[83].mxu1  ;;  %v4418_v38 = vpop.f32.mrb[79].mxu0 }
 0x212   :  { %4004 = vmatprep.mubr.msk.f32.mxu0 %vm9674_vm8, %v9335_v23  ;;  %v4505_v46 = vadd.f32 %v4504_v42, %v4503_v19  ;;  %v4419_v8 = vadd.f32 %v4418_v38, %v4417_v2  ;;  %v8651_v41 = vadd.f32 %v4496_v10, %v1778_v7 }
 0x214   :  { %4041 = vmatmul.mubr.msk.f32.gmra.mrb[188].mxu1 %vm153_vm9, %v9335_v23  ;;  %v4506_v40 = vpop.f32.mrb[84].mxu1  ;;  %v1785_v16 = vadd.f32 %v4419_v8, %v8375_v53  ;;  %v4420_v27 = vpop.f32.mrb[80].mxu0 }
 0x215   :  { %4005 = vmatmul.mubr.msk.f32.gmra.mrb[184].mxu0 %vm145_vm2, %v9335_v23  ;;  %4042 = vmatprep.mubr.msk.f32.mxu1 %vm158_vm10, %v9335_v23  ;;  %v4507_v60 = vpop.f32.mrb[85].mxu1  ;;  %v4421_v47 = vpop.f32.mrb[81].mxu0 }
 0x216   :  { %4006 = vmatprep.mubr.msk.f32.mxu0 %vm150_vm12, %v9335_v23  ;;  %v4508_v43 = vadd.f32 %v4507_v60, %v4506_v40  ;;  %v4422_v34 = vadd.f32 %v4421_v47, %v4420_v27  ;;  %v8666_v53 = vadd.f32 %v4499_v30, %v1785_v16 }
 0x218   :  { %4043 = vmatmul.mubr.msk.f32.gmra.mrb[190].mxu1 %vm157_vm15, %v9335_v23  ;;  %v4509_v29 = vpop.f32.mrb[86].mxu1  ;;  %v1792_v56 = vadd.f32 %v4422_v34, %v8388_v31  ;;  %v4423_v25 = vpop.f32.mrb[82].mxu0 }
 0x219   :  { %4007 = vmatmul.mubr.msk.f32.gmra.mrb[186].mxu0 %vm149_vm3, %v9335_v23  ;;  %v4510_v18 = vpop.f32.mrb[87].mxu1  ;;  %v4424_v24 = vpop.f32.mrb[83].mxu0 }
 0x21a   :  { %4008 = vmatprep.mubr.msk.f32.mxu0 %vm154_vm5, %v9335_v23  ;;  %v4511_v13 = vadd.f32 %v4510_v18, %v4509_v29  ;;  %v4425_v5 = vadd.f32 %v4424_v24, %v4423_v25  ;;  %v8677_v62 = vadd.f32 %v4502_v63, %v1792_v56 }
 0x21c   :  { %v4512_v12 = vpop.f32.mrb[88].mxu1  ;;  %v1799_v31 = vadd.f32 %v4425_v5, %v8404_v28  ;;  %v4426_v54 = vpop.f32.mrb[84].mxu0 }
 0x21d   :  { %4009 = vmatmul.mubr.msk.f32.gmra.mrb[188].mxu0 %vm153_vm9, %v9335_v23  ;;  %v4513_v10 = vpop.f32.mrb[89].mxu1  ;;  %v4427_v6 = vpop.f32.mrb[85].mxu0 }
 0x21e   :  { %4010 = vmatprep.mubr.msk.f32.mxu0 %vm158_vm10, %v9335_v23  ;;  %v4514_v22 = vadd.f32 %v4513_v10, %v4512_v12  ;;  %v4428_v9 = vadd.f32 %v4427_v6, %v4426_v54  ;;  %v8684_v52 = vadd.f32 %v4505_v46, %v1799_v31 }
 0x220   :  { %v4515_v21 = vpop.f32.mrb[90].mxu1  ;;  %v1806_v15 = vadd.f32 %v4428_v9, %v8423_v26  ;;  %v4429_v3 = vpop.f32.mrb[86].mxu0 }
 0x221   :  { %4011 = vmatmul.mubr.msk.f32.gmra.mrb[190].mxu0 %vm157_vm15, %v9335_v23  ;;  %v4516_v59 = vpop.f32.mrb[91].mxu1  ;;  %v4430_v0 = vpop.f32.mrb[87].mxu0 }
 0x222   :  { %v4517_v30 = vadd.f32 %v4516_v59, %v4515_v21  ;;  %v4431_v28 = vadd.f32 %v4430_v0, %v4429_v3  ;;  %v8687_v32 = vadd.f32 %v4508_v43, %v1806_v15 }
 0x224   :  { %v4518_v48 = vpop.f32.mrb[92].mxu1  ;;  %v1813_v11 = vadd.f32 %v4431_v28, %v8442_v4  ;;  %v4432_v55 = vpop.f32.mrb[88].mxu0 }
 0x225   :  { %v4519_v57 = vpop.f32.mrb[93].mxu1  ;;  %v4433_v23 = vpop.f32.mrb[89].mxu0 }
 0x226   :  { %v4520_v35 = vadd.f32 %v4519_v57, %v4518_v48  ;;  %v4434_v49 = vadd.f32 %v4433_v23, %v4432_v55  ;;  %v8690_v63 = vadd.f32 %v4511_v13, %v1813_v11 }
 0x228   :  { %v4521_v33 = vpop.f32.mrb[94].mxu1  ;;  %v1820_v26 = vadd.f32 %v4434_v49, %v8461_v1  ;;  %v4435_v37 = vpop.f32.mrb[90].mxu0 }
 0x229   :  { %v4522_v51 = vpop.f32.mrb[95].mxu1  ;;  %v4436_v7 = vpop.f32.mrb[91].mxu0 }
 0x22a   :  { %v4523_v19 = vadd.f32 %v4522_v51, %v4521_v33  ;;  %v4437_v2 = vadd.f32 %v4436_v7, %v4435_v37  ;;  %v8693_v42 = vadd.f32 %v4514_v22, %v1820_v26 }
 0x22c   :  { %v4636_v46 = vpop.f32.mrb[96].mxu1  ;;  %v1827_v4 = vadd.f32 %v4437_v2, %v8480_v14  ;;  %v4438_v38 = vpop.f32.mrb[92].mxu0 }
 0x22d   :  { %v4637_v61 = vpop.f32.mrb[97].mxu1  ;;  %v4439_v40 = vpop.f32.mrb[93].mxu0 }
 0x22e   :  { %v4638_v8 = vadd.f32 %v4637_v61, %v4636_v46  ;;  %v4440_v16 = vadd.f32 %v4439_v40, %v4438_v38  ;;  %v8696_v27 = vadd.f32 %v4517_v30, %v1827_v4 }
 0x230   :  { %v4639_v60 = vpop.f32.mrb[98].mxu1  ;;  %v1834_v1 = vadd.f32 %v4440_v16, %v8499_v20  ;;  %v4441_v43 = vpop.f32.mrb[94].mxu0 }
 0x231   :  { %v4640_v47 = vpop.f32.mrb[99].mxu1  ;;  %v4442_v29 = vpop.f32.mrb[95].mxu0 }
 0x232   :  { %v4641_v34 = vadd.f32 %v4640_v47, %v4639_v60  ;;  %v4443_v56 = vadd.f32 %v4442_v29, %v4441_v43  ;;  %v8699_v25 = vadd.f32 %v4520_v35, %v1834_v1 }
 0x234   :  { %v4642_v18 = vpop.f32.mrb[100].mxu1  ;;  %v1841_v14 = vadd.f32 %v4443_v56, %v8518_v36  ;;  %v4556_v13 = vpop.f32.mrb[96].mxu0 }
 0x235   :  { %v4643_v24 = vpop.f32.mrb[101].mxu1  ;;  %v4557_v12 = vpop.f32.mrb[97].mxu0 }
 0x236   :  { %v4644_v5 = vadd.f32 %v4643_v24, %v4642_v18  ;;  %v4558_v31 = vadd.f32 %v4557_v12, %v4556_v13  ;;  %v8702_v54 = vadd.f32 %v4523_v19, %v1841_v14 }
 0x238   :  { %v4645_v10 = vpop.f32.mrb[102].mxu1  ;;  %v2162_v20 = vadd.f32 %v4558_v31, %v8537_v39 }
 0x239   :  { %v4559_v22 = vpop.f32.mrb[98].mxu0  ;;  %v4646_v6 = vpop.f32.mrb[103].mxu1 }
 0x23a   :  { %v4647_v9 = vadd.f32 %v4646_v6, %v4645_v10  ;;  %v4560_v21 = vpop.f32.mrb[99].mxu0  ;;  %v8705_v3 = vadd.f32 %v4638_v8, %v2162_v20 }
 0x23b   :  { %v4561_v15 = vadd.f32 %v4560_v21, %v4559_v22 }
 0x23c   :  { %v4648_v59 = vpop.f32.mrb[104].mxu1 }
 0x23d   :  { %v2177_v36 = vadd.f32 %v4561_v15, %v8556_v44  ;;  %v4562_v30 = vpop.f32.mrb[100].mxu0  ;;  %v4649_v0 = vpop.f32.mrb[105].mxu1 }
 0x23e   :  { %v4650_v28 = vadd.f32 %v4649_v0, %v4648_v59  ;;  %v4563_v48 = vpop.f32.mrb[101].mxu0 }
 0x23f   :  { %v4564_v11 = vadd.f32 %v4563_v48, %v4562_v30  ;;  %v8708_v55 = vadd.f32 %v4641_v34, %v2177_v36 }
 0x240   :  { %v4651_v57 = vpop.f32.mrb[106].mxu1 }
 0x241   :  { %v2192_v39 = vadd.f32 %v4564_v11, %v8575_v17  ;;  %v4565_v35 = vpop.f32.mrb[102].mxu0  ;;  %v4652_v23 = vpop.f32.mrb[107].mxu1 }
 0x242   :  { %v4653_v49 = vadd.f32 %v4652_v23, %v4651_v57  ;;  %v4566_v33 = vpop.f32.mrb[103].mxu0 }
 0x243   :  { %v4567_v26 = vadd.f32 %v4566_v33, %v4565_v35  ;;  %v8711_v37 = vadd.f32 %v4644_v5, %v2192_v39 }
 0x244   :  { %v4654_v51 = vpop.f32.mrb[108].mxu1 }
 0x245   :  { %v2207_v44 = vadd.f32 %v4567_v26, %v8594_v45  ;;  %v4655_v7 = vpop.f32.mrb[109].mxu1 }
 0x246   :  { %v4568_v19 = vpop.f32.mrb[104].mxu0  ;;  %v4656_v2 = vadd.f32 %v4655_v7, %v4654_v51 }
 0x247   :  { %v4569_v46 = vpop.f32.mrb[105].mxu0  ;;  %v8714_v38 = vadd.f32 %v4647_v9, %v2207_v44 }
 0x248   :  { %v4570_v4 = vadd.f32 %v4569_v46, %v4568_v19  ;;  %v4657_v61 = vpop.f32.mrb[110].mxu1 }
 0x249   :  { %v4658_v40 = vpop.f32.mrb[111].mxu1 }
 0x24a   :  { %v2222_v17 = vadd.f32 %v4570_v4, %v8613_v50  ;;  %v4571_v8 = vpop.f32.mrb[106].mxu0  ;;  %v4659_v16 = vadd.f32 %v4658_v40, %v4657_v61 }
 0x24b   :  { %v4572_v60 = vpop.f32.mrb[107].mxu0 }
 0x24c   :  { %v4573_v1 = vadd.f32 %v4572_v60, %v4571_v8  ;;  %v8717_v43 = vadd.f32 %v4650_v28, %v2222_v17  ;;  %v4660_v47 = vpop.f32.mrb[112].mxu1 }
 0x24d   :  { %v4661_v29 = vpop.f32.mrb[113].mxu1 }
 0x24e   :  { %v2237_v45 = vadd.f32 %v4573_v1, %v8632_v58  ;;  %v4574_v34 = vpop.f32.mrb[108].mxu0  ;;  %v4662_v56 = vadd.f32 %v4661_v29, %v4660_v47 }
 0x24f   :  { %v4575_v18 = vpop.f32.mrb[109].mxu0 }
 0x250   :  { %v4576_v14 = vadd.f32 %v4575_v18, %v4574_v34  ;;  %v8720_v13 = vadd.f32 %v4653_v49, %v2237_v45  ;;  %v4663_v24 = vpop.f32.mrb[114].mxu1 }
 0x251   :  { %v4664_v12 = vpop.f32.mrb[115].mxu1 }
 0x252   :  { %v2252_v50 = vadd.f32 %v4576_v14, %v8651_v41  ;;  %v4577_v5 = vpop.f32.mrb[110].mxu0  ;;  %v4665_v31 = vadd.f32 %v4664_v12, %v4663_v24 }
 0x253   :  { %v4578_v10 = vpop.f32.mrb[111].mxu0 }
 0x254   :  { %v4579_v20 = vadd.f32 %v4578_v10, %v4577_v5  ;;  %v8723_v22 = vadd.f32 %v4656_v2, %v2252_v50  ;;  %v4666_v6 = vpop.f32.mrb[116].mxu1 }
 0x255   :  { %v4667_v21 = vpop.f32.mrb[117].mxu1 }
 0x256   :  { %v2267_v58 = vadd.f32 %v4579_v20, %v8666_v53  ;;  %v4580_v9 = vpop.f32.mrb[112].mxu0  ;;  %v4668_v15 = vadd.f32 %v4667_v21, %v4666_v6 }
 0x257   :  { %v4581_v59 = vpop.f32.mrb[113].mxu0 }
 0x258   :  { %v4582_v36 = vadd.f32 %v4581_v59, %v4580_v9  ;;  %v8726_v30 = vadd.f32 %v4659_v16, %v2267_v58  ;;  %v4669_v0 = vpop.f32.mrb[118].mxu1 }
 0x259   :  { %v4670_v48 = vpop.f32.mrb[119].mxu1 }
 0x25a   :  { %v2282_v41 = vadd.f32 %v4582_v36, %v8677_v62  ;;  %v4583_v28 = vpop.f32.mrb[114].mxu0  ;;  %v4671_v11 = vadd.f32 %v4670_v48, %v4669_v0 }
 0x25b   :  { %v4584_v57 = vpop.f32.mrb[115].mxu0 }
 0x25c   :  { %v4585_v39 = vadd.f32 %v4584_v57, %v4583_v28  ;;  %v8729_v35 = vadd.f32 %v4662_v56, %v2282_v41  ;;  %v4672_v23 = vpop.f32.mrb[120].mxu1 }
 0x25d   :  { %v4673_v33 = vpop.f32.mrb[121].mxu1 }
 0x25e   :  { %v2297_v53 = vadd.f32 %v4585_v39, %v8684_v52  ;;  %v4586_v49 = vpop.f32.mrb[116].mxu0  ;;  %v4674_v26 = vadd.f32 %v4673_v33, %v4672_v23 }
 0x25f   :  { %v4587_v51 = vpop.f32.mrb[117].mxu0 }
 0x260   :  { %v4588_v44 = vadd.f32 %v4587_v51, %v4586_v49  ;;  %v8732_v19 = vadd.f32 %v4665_v31, %v2297_v53  ;;  %v4675_v7 = vpop.f32.mrb[122].mxu1 }
 0x261   :  { %v4676_v46 = vpop.f32.mrb[123].mxu1 }
 0x262   :  { %v2312_v62 = vadd.f32 %v4588_v44, %v8687_v32  ;;  %v4589_v2 = vpop.f32.mrb[118].mxu0  ;;  %v4677_v4 = vadd.f32 %v4676_v46, %v4675_v7 }
 0x263   :  { %v4590_v61 = vpop.f32.mrb[119].mxu0 }
 0x264   :  { %v4591_v17 = vadd.f32 %v4590_v61, %v4589_v2  ;;  %v8735_v8 = vadd.f32 %v4668_v15, %v2312_v62  ;;  %v4678_v40 = vpop.f32.mrb[124].mxu1 }
 0x265   :  { %v4679_v60 = vpop.f32.mrb[125].mxu1 }
 0x266   :  { %v2327_v52 = vadd.f32 %v4591_v17, %v8690_v63  ;;  %v4592_v16 = vpop.f32.mrb[120].mxu0  ;;  %v4680_v1 = vadd.f32 %v4679_v60, %v4678_v40 }
 0x267   :  { %v4593_v47 = vpop.f32.mrb[121].mxu0 }
 0x268   :  { %v4594_v45 = vadd.f32 %v4593_v47, %v4592_v16  ;;  %v8738_v34 = vadd.f32 %v4671_v11, %v2327_v52  ;;  %v4681_v29 = vpop.f32.mrb[126].mxu1 }
 0x269   :  { %v4682_v18 = vpop.f32.mrb[127].mxu1 }
 0x26a   :  { %v2342_v32 = vadd.f32 %v4594_v45, %v8693_v42  ;;  %v4595_v56 = vpop.f32.mrb[122].mxu0  ;;  %v4683_v14 = vadd.f32 %v4682_v18, %v4681_v29 }
 0x26b   :  { %v4596_v24 = vpop.f32.mrb[123].mxu0 }
 0x26c   :  { %v4597_v50 = vadd.f32 %v4596_v24, %v4595_v56  ;;  %v8741_v5 = vadd.f32 %v4674_v26, %v2342_v32  ;;  %v4796_v12 = vpop.f32.mrb[128].mxu1 }
 0x26d   :  { %v4797_v10 = vpop.f32.mrb[129].mxu1 }
 0x26e   :  { %v2357_v63 = vadd.f32 %v4597_v50, %v8696_v27  ;;  %v4598_v31 = vpop.f32.mrb[124].mxu0  ;;  %v4798_v20 = vadd.f32 %v4797_v10, %v4796_v12 }
 0x26f   :  { %v4599_v6 = vpop.f32.mrb[125].mxu0 }
 0x270   :  { %v4600_v58 = vadd.f32 %v4599_v6, %v4598_v31  ;;  %v8744_v9 = vadd.f32 %v4677_v4, %v2357_v63  ;;  %v4799_v21 = vpop.f32.mrb[130].mxu1 }
 0x271   :  { %v4800_v59 = vpop.f32.mrb[131].mxu1 }
 0x272   :  { %v2372_v42 = vadd.f32 %v4600_v58, %v8699_v25  ;;  %v4601_v15 = vpop.f32.mrb[126].mxu0  ;;  %v4801_v36 = vadd.f32 %v4800_v59, %v4799_v21 }
 0x273   :  { %v4602_v0 = vpop.f32.mrb[127].mxu0 }
 0x274   :  { %v4603_v41 = vadd.f32 %v4602_v0, %v4601_v15  ;;  %v8747_v28 = vadd.f32 %v4680_v1, %v2372_v42 }
 0x275   :  { %v4802_v48 = vpop.f32.mrb[132].mxu1 }
 0x276   :  { %v2387_v27 = vadd.f32 %v4603_v41, %v8702_v54  ;;  %v4716_v11 = vpop.f32.mrb[128].mxu0  ;;  %v4803_v57 = vpop.f32.mrb[133].mxu1 }
 0x277   :  { %v4804_v39 = vadd.f32 %v4803_v57, %v4802_v48  ;;  %v4717_v23 = vpop.f32.mrb[129].mxu0 }
 0x278   :  { %v4718_v53 = vadd.f32 %v4717_v23, %v4716_v11  ;;  %v8750_v49 = vadd.f32 %v4683_v14, %v2387_v27 }
 0x279   :  { %v4805_v33 = vpop.f32.mrb[134].mxu1 }
 0x27a   :  { %v2862_v25 = vadd.f32 %v4718_v53, %v8705_v3  ;;  %v4719_v26 = vpop.f32.mrb[130].mxu0  ;;  %v4806_v51 = vpop.f32.mrb[135].mxu1 }
 0x27b   :  { %v4807_v44 = vadd.f32 %v4806_v51, %v4805_v33  ;;  %v4720_v7 = vpop.f32.mrb[131].mxu0 }
 0x27c   :  { %v4721_v62 = vadd.f32 %v4720_v7, %v4719_v26  ;;  %v8753_v2 = vadd.f32 %v4798_v20, %v2862_v25 }
 0x27e   :  { %v4808_v46 = vpop.f32.mrb[136].mxu1  ;;  %v2871_v54 = vadd.f32 %v4721_v62, %v8708_v55  ;;  %v4722_v4 = vpop.f32.mrb[132].mxu0 }
 0x27f   :  { %v4809_v61 = vpop.f32.mrb[137].mxu1  ;;  %v4723_v40 = vpop.f32.mrb[133].mxu0 }
 0x280   :  { %v4810_v17 = vadd.f32 %v4809_v61, %v4808_v46  ;;  %v4724_v52 = vadd.f32 %v4723_v40, %v4722_v4  ;;  %v8756_v16 = vadd.f32 %v4801_v36, %v2871_v54 }
 0x282   :  { %v4811_v60 = vpop.f32.mrb[138].mxu1  ;;  %v2880_v3 = vadd.f32 %v4724_v52, %v8711_v37 }
 0x283   :  { %v4725_v1 = vpop.f32.mrb[134].mxu0  ;;  %v4812_v47 = vpop.f32.mrb[139].mxu1 }
 0x284   :  { %v4813_v45 = vadd.f32 %v4812_v47, %v4811_v60  ;;  %v4726_v29 = vpop.f32.mrb[135].mxu0  ;;  %v8759_v56 = vadd.f32 %v4804_v39, %v2880_v3 }
 0x285   :  { %v4727_v32 = vadd.f32 %v4726_v29, %v4725_v1 }
 0x287   :  { %v4814_v18 = vpop.f32.mrb[140].mxu1  ;;  %v2889_v55 = vadd.f32 %v4727_v32, %v8714_v38  ;;  %v4728_v14 = vpop.f32.mrb[136].mxu0 }
 0x288   :  { %v4815_v24 = vpop.f32.mrb[141].mxu1  ;;  %v4729_v12 = vpop.f32.mrb[137].mxu0 }
 0x289   :  { %v4816_v50 = vadd.f32 %v4815_v24, %v4814_v18  ;;  %v4730_v63 = vadd.f32 %v4729_v12, %v4728_v14  ;;  %v8762_v31 = vadd.f32 %v4807_v44, %v2889_v55 }
 0x28b   :  { %v4817_v10 = vpop.f32.mrb[142].mxu1  ;;  %v2898_v37 = vadd.f32 %v4730_v63, %v8717_v43 }
 0x28c   :  { %v4731_v20 = vpop.f32.mrb[138].mxu0  ;;  %v4818_v6 = vpop.f32.mrb[143].mxu1 }
 0x28d   :  { %v4819_v58 = vadd.f32 %v4818_v6, %v4817_v10  ;;  %v4732_v21 = vpop.f32.mrb[139].mxu0  ;;  %v8765_v15 = vadd.f32 %v4810_v17, %v2898_v37 }
 0x28e   :  { %v4733_v42 = vadd.f32 %v4732_v21, %v4731_v20 }
 0x28f   :  { %v4820_v59 = vpop.f32.mrb[144].mxu1 }
 0x290   :  { %v2907_v38 = vadd.f32 %v4733_v42, %v8720_v13  ;;  %v4734_v36 = vpop.f32.mrb[140].mxu0  ;;  %v4821_v0 = vpop.f32.mrb[145].mxu1 }
 0x291   :  { %v4822_v41 = vadd.f32 %v4821_v0, %v4820_v59  ;;  %v4735_v48 = vpop.f32.mrb[141].mxu0 }
 0x292   :  { %v4736_v27 = vadd.f32 %v4735_v48, %v4734_v36  ;;  %v8768_v11 = vadd.f32 %v4813_v45, %v2907_v38 }
 0x293   :  { %v4823_v57 = vpop.f32.mrb[146].mxu1 }
 0x294   :  { %v2916_v43 = vadd.f32 %v4736_v27, %v8723_v22  ;;  %v4737_v39 = vpop.f32.mrb[142].mxu0  ;;  %v4824_v23 = vpop.f32.mrb[147].mxu1 }
 0x295   :  { %v4825_v53 = vadd.f32 %v4824_v23, %v4823_v57  ;;  %v4738_v33 = vpop.f32.mrb[143].mxu0 }
 0x296   :  { %v4739_v25 = vadd.f32 %v4738_v33, %v4737_v39  ;;  %v8771_v26 = vadd.f32 %v4816_v50, %v2916_v43 }
 0x297   :  { %v4826_v51 = vpop.f32.mrb[148].mxu1 }
 0x298   :  { %v2925_v13 = vadd.f32 %v4739_v25, %v8726_v30  ;;  %v4740_v44 = vpop.f32.mrb[144].mxu0  ;;  %v4827_v7 = vpop.f32.mrb[149].mxu1 }
 0x299   :  { %v4828_v62 = vadd.f32 %v4827_v7, %v4826_v51  ;;  %v4741_v46 = vpop.f32.mrb[145].mxu0 }
 0x29a   :  { %v4742_v54 = vadd.f32 %v4741_v46, %v4740_v44  ;;  %v8774_v4 = vadd.f32 %v4819_v58, %v2925_v13 }
 0x29b   :  { %v4829_v61 = vpop.f32.mrb[150].mxu1 }
 0x29c   :  { %v2934_v22 = vadd.f32 %v4742_v54, %v8729_v35  ;;  %v4743_v17 = vpop.f32.mrb[146].mxu0  ;;  %v4830_v40 = vpop.f32.mrb[151].mxu1 }
 0x29d   :  { %v4831_v52 = vadd.f32 %v4830_v40, %v4829_v61  ;;  %v4744_v60 = vpop.f32.mrb[147].mxu0 }
 0x29e   :  { %v4745_v3 = vadd.f32 %v4744_v60, %v4743_v17  ;;  %v8777_v1 = vadd.f32 %v4822_v41, %v2934_v22 }
 0x29f   :  { %v4832_v47 = vpop.f32.mrb[152].mxu1 }
 0x2a0   :  { %v2943_v30 = vadd.f32 %v4745_v3, %v8732_v19  ;;  %v4746_v45 = vpop.f32.mrb[148].mxu0  ;;  %v4833_v29 = vpop.f32.mrb[153].mxu1 }
 0x2a1   :  { %v4834_v32 = vadd.f32 %v4833_v29, %v4832_v47  ;;  %v4747_v18 = vpop.f32.mrb[149].mxu0 }
 0x2a2   :  { %v4748_v55 = vadd.f32 %v4747_v18, %v4746_v45  ;;  %v8780_v14 = vadd.f32 %v4825_v53, %v2943_v30 }
 0x2a3   :  { %v4835_v24 = vpop.f32.mrb[154].mxu1 }
 0x2a4   :  { %v2952_v35 = vadd.f32 %v4748_v55, %v8735_v8  ;;  %v4749_v50 = vpop.f32.mrb[150].mxu0  ;;  %v4836_v12 = vpop.f32.mrb[155].mxu1 }
 0x2a5   :  { %v4837_v63 = vadd.f32 %v4836_v12, %v4835_v24  ;;  %v4750_v10 = vpop.f32.mrb[151].mxu0 }
 0x2a6   :  { %v4751_v37 = vadd.f32 %v4750_v10, %v4749_v50  ;;  %v8783_v20 = vadd.f32 %v4828_v62, %v2952_v35 }
 0x2a7   :  { %v4838_v6 = vpop.f32.mrb[156].mxu1 }
 0x2a8   :  { %v2961_v19 = vadd.f32 %v4751_v37, %v8738_v34  ;;  %v4752_v58 = vpop.f32.mrb[152].mxu0  ;;  %v4839_v21 = vpop.f32.mrb[157].mxu1 }
 0x2a9   :  { %v4840_v42 = vadd.f32 %v4839_v21, %v4838_v6  ;;  %v4753_v59 = vpop.f32.mrb[153].mxu0 }
 0x2aa   :  { %v4754_v38 = vadd.f32 %v4753_v59, %v4752_v58  ;;  %v8786_v36 = vadd.f32 %v4831_v52, %v2961_v19 }
 0x2ab   :  { %v4841_v0 = vpop.f32.mrb[158].mxu1 }
 0x2ac   :  { %v2970_v8 = vadd.f32 %v4754_v38, %v8741_v5  ;;  %v4755_v41 = vpop.f32.mrb[154].mxu0  ;;  %v4842_v48 = vpop.f32.mrb[159].mxu1 }
 0x2ad   :  { %v4843_v27 = vadd.f32 %v4842_v48, %v4841_v0  ;;  %v4756_v57 = vpop.f32.mrb[155].mxu0 }
 0x2ae   :  { %v4757_v43 = vadd.f32 %v4756_v57, %v4755_v41  ;;  %v8789_v39 = vadd.f32 %v4834_v32, %v2970_v8 }
 0x2af   :  { %v4956_v23 = vpop.f32.mrb[160].mxu1 }
 0x2b0   :  { %v2979_v34 = vadd.f32 %v4757_v43, %v8744_v9  ;;  %v4758_v53 = vpop.f32.mrb[156].mxu0  ;;  %v4957_v33 = vpop.f32.mrb[161].mxu1 }
 0x2b1   :  { %v4958_v25 = vadd.f32 %v4957_v33, %v4956_v23  ;;  %v4759_v51 = vpop.f32.mrb[157].mxu0 }
 0x2b2   :  { %v4760_v13 = vadd.f32 %v4759_v51, %v4758_v53  ;;  %v8792_v44 = vadd.f32 %v4837_v63, %v2979_v34 }
 0x2b3   :  { %v4959_v7 = vpop.f32.mrb[162].mxu1 }
 0x2b4   :  { %v2988_v5 = vadd.f32 %v4760_v13, %v8747_v28  ;;  %v4761_v62 = vpop.f32.mrb[158].mxu0  ;;  %v4960_v46 = vpop.f32.mrb[163].mxu1 }
 0x2b5   :  { %v4961_v54 = vadd.f32 %v4960_v46, %v4959_v7  ;;  %v4762_v61 = vpop.f32.mrb[159].mxu0 }
 0x2b6   :  { %v4763_v22 = vadd.f32 %v4762_v61, %v4761_v62  ;;  %v8795_v17 = vadd.f32 %v4840_v42, %v2988_v5 }
 0x2b7   :  { %v4962_v40 = vpop.f32.mrb[164].mxu1 }
 0x2b8   :  { %v2997_v9 = vadd.f32 %v4763_v22, %v8750_v49  ;;  %v4876_v52 = vpop.f32.mrb[160].mxu0  ;;  %v4963_v60 = vpop.f32.mrb[165].mxu1 }
 0x2b9   :  { %v4964_v3 = vadd.f32 %v4963_v60, %v4962_v40  ;;  %v4877_v47 = vpop.f32.mrb[161].mxu0 }
 0x2ba   :  { %v4878_v30 = vadd.f32 %v4877_v47, %v4876_v52  ;;  %v8798_v45 = vadd.f32 %v4843_v27, %v2997_v9 }
 0x2bb   :  { %v4965_v29 = vpop.f32.mrb[166].mxu1 }
 0x2bc   :  { %v3438_v28 = vadd.f32 %v4878_v30, %v8753_v2  ;;  %v4879_v32 = vpop.f32.mrb[162].mxu0  ;;  %v4966_v18 = vpop.f32.mrb[167].mxu1 }
 0x2bd   :  { %v4967_v55 = vadd.f32 %v4966_v18, %v4965_v29  ;;  %v4880_v24 = vpop.f32.mrb[163].mxu0 }
 0x2be   :  { %v3647_v35 = vadd.f32 %v4958_v25, %v3438_v28  ;;  %v4881_v50 = vadd.f32 %v4880_v24, %v4879_v32 }
 0x2bf   :  { %v4968_v12 = vpop.f32.mrb[168].mxu1 }
 0x2c0   :  { %3755 = vst [vmem:[#allocation5] sm:$0xff] %v3647_v35  ;;  %v3445_v49 = vadd.f32 %v4881_v50, %v8756_v16  ;;  %v4882_v63 = vpop.f32.mrb[164].mxu0  ;;  %v4969_v10 = vpop.f32.mrb[169].mxu1 }
 0x2c1   :  { %v4970_v37 = vadd.f32 %v4969_v10, %v4968_v12  ;;  %v4883_v6 = vpop.f32.mrb[165].mxu0 }
 0x2c2   :  { %v3654_v19 = vadd.f32 %v4961_v54, %v3445_v49  ;;  %v4884_v58 = vadd.f32 %v4883_v6, %v4882_v63 }
 0x2c3   :  { %v4971_v21 = vpop.f32.mrb[170].mxu1 }
 0x2c4   :  { %3756 = vst [vmem:[#allocation5 + $0x8] sm:$0xff] %v3654_v19  ;;  %v3452_v2 = vadd.f32 %v4884_v58, %v8759_v56  ;;  %v4885_v42 = vpop.f32.mrb[166].mxu0  ;;  %v4972_v59 = vpop.f32.mrb[171].mxu1 }
 0x2c5   :  { %v4973_v38 = vadd.f32 %v4972_v59, %v4971_v21  ;;  %v4886_v0 = vpop.f32.mrb[167].mxu0 }
 0x2c6   :  { %v3661_v8 = vadd.f32 %v4964_v3, %v3452_v2  ;;  %v4887_v41 = vadd.f32 %v4886_v0, %v4885_v42 }
 0x2c7   :  { %v4974_v48 = vpop.f32.mrb[172].mxu1 }
 0x2c8   :  { %3757 = vst [vmem:[#allocation5 + $0x10] sm:$0xff] %v3661_v8  ;;  %v3459_v16 = vadd.f32 %v4887_v41, %v8762_v31  ;;  %v4888_v27 = vpop.f32.mrb[168].mxu0  ;;  %v4975_v57 = vpop.f32.mrb[173].mxu1 }
 0x2c9   :  { %v4976_v43 = vadd.f32 %v4975_v57, %v4974_v48  ;;  %v4889_v23 = vpop.f32.mrb[169].mxu0 }
 0x2ca   :  { %v3668_v34 = vadd.f32 %v4967_v55, %v3459_v16  ;;  %v4890_v53 = vadd.f32 %v4889_v23, %v4888_v27 }
 0x2cb   :  { %v4977_v33 = vpop.f32.mrb[174].mxu1 }
 0x2cc   :  { %3758 = vst [vmem:[#allocation5 + $0x18] sm:$0xff] %v3668_v34  ;;  %v3466_v56 = vadd.f32 %v4890_v53, %v8765_v15  ;;  %v4891_v25 = vpop.f32.mrb[170].mxu0  ;;  %v4978_v51 = vpop.f32.mrb[175].mxu1 }
 0x2cd   :  { %v4979_v13 = vadd.f32 %v4978_v51, %v4977_v33  ;;  %v4892_v7 = vpop.f32.mrb[171].mxu0 }
 0x2ce   :  { %v3675_v5 = vadd.f32 %v4970_v37, %v3466_v56  ;;  %v4893_v62 = vadd.f32 %v4892_v7, %v4891_v25 }
 0x2cf   :  { %v4980_v46 = vpop.f32.mrb[176].mxu1 }
 0x2d0   :  { %3759 = vst [vmem:[#allocation5 + $0x20] sm:$0xff] %v3675_v5  ;;  %v3473_v31 = vadd.f32 %v4893_v62, %v8768_v11  ;;  %v4894_v54 = vpop.f32.mrb[172].mxu0  ;;  %v4981_v61 = vpop.f32.mrb[177].mxu1 }
 0x2d1   :  { %v4982_v22 = vadd.f32 %v4981_v61, %v4980_v46  ;;  %v4895_v40 = vpop.f32.mrb[173].mxu0 }
 0x2d2   :  { %v3682_v9 = vadd.f32 %v4973_v38, %v3473_v31  ;;  %v4896_v52 = vadd.f32 %v4895_v40, %v4894_v54 }
 0x2d3   :  { %v4983_v60 = vpop.f32.mrb[178].mxu1 }
 0x2d4   :  { %3760 = vst [vmem:[#allocation5 + $0x28] sm:$0xff] %v3682_v9  ;;  %v3480_v15 = vadd.f32 %v4896_v52, %v8771_v26  ;;  %v4897_v3 = vpop.f32.mrb[174].mxu0  ;;  %v4984_v47 = vpop.f32.mrb[179].mxu1 }
 0x2d5   :  { %v4985_v30 = vadd.f32 %v4984_v47, %v4983_v60  ;;  %v4898_v29 = vpop.f32.mrb[175].mxu0 }
 0x2d6   :  { %v3689_v28 = vadd.f32 %v4976_v43, %v3480_v15  ;;  %v4899_v32 = vadd.f32 %v4898_v29, %v4897_v3 }
 0x2d7   :  { %v4986_v18 = vpop.f32.mrb[180].mxu1 }
 0x2d8   :  { %3761 = vst [vmem:[#allocation5 + $0x30] sm:$0xff] %v3689_v28  ;;  %v3487_v11 = vadd.f32 %v4899_v32, %v8774_v4  ;;  %v4900_v55 = vpop.f32.mrb[176].mxu0  ;;  %v4987_v24 = vpop.f32.mrb[181].mxu1 }
 0x2d9   :  { %v4988_v35 = vadd.f32 %v4987_v24, %v4986_v18  ;;  %v4901_v50 = vpop.f32.mrb[177].mxu0 }
 0x2da   :  { %v3696_v12 = vadd.f32 %v4979_v13, %v3487_v11  ;;  %v4902_v49 = vadd.f32 %v4901_v50, %v4900_v55 }
 0x2db   :  { %v4989_v63 = vpop.f32.mrb[182].mxu1 }
 0x2dc   :  { %3762 = vst [vmem:[#allocation5 + $0x38] sm:$0xff] %v3696_v12  ;;  %v3494_v26 = vadd.f32 %v4902_v49, %v8777_v1  ;;  %v4903_v10 = vpop.f32.mrb[178].mxu0  ;;  %v4990_v37 = vpop.f32.mrb[183].mxu1 }
 0x2dd   :  { %v4991_v6 = vadd.f32 %v4990_v37, %v4989_v63  ;;  %v4904_v19 = vpop.f32.mrb[179].mxu0 }
 0x2de   :  { %v3703_v58 = vadd.f32 %v4982_v22, %v3494_v26  ;;  %v4905_v21 = vadd.f32 %v4904_v19, %v4903_v10 }
 0x2df   :  { %v4992_v2 = vpop.f32.mrb[184].mxu1 }
 0x2e0   :  { %3763 = vst [vmem:[#allocation5 + $0x40] sm:$0xff] %v3703_v58  ;;  %v3501_v4 = vadd.f32 %v4905_v21, %v8780_v14  ;;  %v4906_v42 = vpop.f32.mrb[180].mxu0  ;;  %v4993_v59 = vpop.f32.mrb[185].mxu1 }
 0x2e1   :  { %v4994_v38 = vadd.f32 %v4993_v59, %v4992_v2  ;;  %v4907_v0 = vpop.f32.mrb[181].mxu0 }
 0x2e2   :  { %v3710_v8 = vadd.f32 %v4985_v30, %v3501_v4  ;;  %v4908_v41 = vadd.f32 %v4907_v0, %v4906_v42 }
 0x2e3   :  { %v4995_v48 = vpop.f32.mrb[186].mxu1 }
 0x2e4   :  { %3764 = vst [vmem:[#allocation5 + $0x48] sm:$0xff] %v3710_v8  ;;  %v3508_v1 = vadd.f32 %v4908_v41, %v8783_v20  ;;  %v4909_v16 = vpop.f32.mrb[182].mxu0  ;;  %v4996_v27 = vpop.f32.mrb[187].mxu1 }
 0x2e5   :  { %v4997_v57 = vadd.f32 %v4996_v27, %v4995_v48  ;;  %v4910_v43 = vpop.f32.mrb[183].mxu0 }
 0x2e6   :  { %v3717_v23 = vadd.f32 %v4988_v35, %v3508_v1  ;;  %v4911_v34 = vadd.f32 %v4910_v43, %v4909_v16 }
 0x2e7   :  { %v4998_v53 = vpop.f32.mrb[188].mxu1 }
 0x2e8   :  { %3765 = vst [vmem:[#allocation5 + $0x50] sm:$0xff] %v3717_v23  ;;  %v3515_v14 = vadd.f32 %v4911_v34, %v8786_v36  ;;  %v4912_v33 = vpop.f32.mrb[184].mxu0  ;;  %v4999_v56 = vpop.f32.mrb[189].mxu1 }
 0x2e9   :  { %v5000_v25 = vadd.f32 %v4999_v56, %v4998_v53  ;;  %v4913_v51 = vpop.f32.mrb[185].mxu0 }
 0x2ea   :  { %v3724_v13 = vadd.f32 %v4991_v6, %v3515_v14  ;;  %v4914_v7 = vadd.f32 %v4913_v51, %v4912_v33 }
 0x2eb   :  { %v5001_v5 = vpop.f32.mrb[190].mxu1 }
 0x2ec   :  { %3766 = vst [vmem:[#allocation5 + $0x58] sm:$0xff] %v3724_v13  ;;  %v3522_v20 = vadd.f32 %v4914_v7, %v8789_v39  ;;  %v4915_v62 = vpop.f32.mrb[186].mxu0  ;;  %v5002_v46 = vpop.f32.mrb[191].mxu1 }
 0x2ed   :  { %v5003_v31 = vadd.f32 %v5002_v46, %v5001_v5  ;;  %v4916_v54 = vpop.f32.mrb[187].mxu0 }
 0x2ee   :  { %v3731_v61 = vadd.f32 %v4994_v38, %v3522_v20  ;;  %v4917_v22 = vadd.f32 %v4916_v54, %v4915_v62 }
 0x2f0   :  { %3767 = vst [vmem:[#allocation5 + $0x60] sm:$0xff] %v3731_v61  ;;  %v3529_v40 = vadd.f32 %v4917_v22, %v8792_v44  ;;  %v4918_v36 = vpop.f32.mrb[188].mxu0 }
 0x2f1   :  { %v4919_v9 = vpop.f32.mrb[189].mxu0 }
 0x2f2   :  { %v3738_v52 = vadd.f32 %v4997_v57, %v3529_v40  ;;  %v4920_v60 = vadd.f32 %v4919_v9, %v4918_v36 }
 0x2f4   :  { %3768 = vst [vmem:[#allocation5 + $0x68] sm:$0xff] %v3738_v52  ;;  %v3536_v15 = vadd.f32 %v4920_v60, %v8795_v17  ;;  %v4921_v3 = vpop.f32.mrb[190].mxu0 }
 0x2f5   :  { %v4922_v47 = vpop.f32.mrb[191].mxu0 }
 0x2f6   :  { %v3745_v30 = vadd.f32 %v5000_v25, %v3536_v15  ;;  %v4923_v39 = vadd.f32 %v4922_v47, %v4921_v3 }
 0x2f8   :  { %3769 = vst [vmem:[#allocation5 + $0x70] sm:$0xff] %v3745_v30  ;;  %v3543_v29 = vadd.f32 %v4923_v39, %v8798_v45 }
 0x2fa   :  { %v3752_v28 = vadd.f32 %v5003_v31, %v3543_v29 }
 0x2fc   :  { %3770 = vst [vmem:[#allocation5 + $0x78] sm:$0xff] %v3752_v28 }
 0x2fd   :  { %5430 = shalt.err (!%p5427_p12)
}
 0x2fe   :  { %s5431_s3 = scalar_lea.hbm %s8833_s2, 2048 }
 0x2ff   :  { %p5432_p13 = scmp.ne.s32.totalorder %s8833_s2, %s5431_s3  ;;  %p5435_p0 = scmp.lt.u32.totalorder %s5431_s3, %s8833_s2 }
 0x301   :  { %p5437_p1 = pnand %p5435_p0, %p5432_p13 }
 0x303   :  { %5440 = shalt.err (!%p5437_p1)
}
 0x304   :  { %3782 = dma.vmem_to_hbm [thread:$0]  %s3777_s28, 2048, %s8833_s2, [#allocation4], %s5446_s19, %s5446_s19, %s5447_s20  }
 0x305   :  { %5443 = dma.done.wait [#allocation4], 2048  }
 0x306   :  { %5444 = vsyncadd [#allocation4], 4294965248 }
 0x307   :  { %3786 = vsyncpa [#allocation3], 1 }
 0x308   :  { %3787 = vsyncpa [#allocation4], 1 }

</bundles_post_ra>
